<compile_context>
chip_gen: v6e
topology: v6e:2x2x1
jax: 0.10.0
libtpu: 0.0.40
codegen_flags: <defaults>
</compile_context>

<pallas_src>
import math
import numpy as np

import jax
import jax.numpy as jnp
from jax.experimental import pallas as pl
from jax.experimental.pallas import tpu as pltpu

# ----------------------------- MFCC defaults --------------------------------
SAMPLE_RATE = 16000
F_MIN = 0.0
F_MAX = SAMPLE_RATE / 2
N_FFT = 400
N_MELS = 23
N_MFCC = 20
WIN_MS = 25
HOP_MS = 10
LEFT_FRAMES = 5
RIGHT_FRAMES = 5

WIN_LENGTH = int(round(SAMPLE_RATE / 1000.0 * WIN_MS))   # 400 samples
HOP_LENGTH = int(round(SAMPLE_RATE / 1000.0 * HOP_MS))   # 160 samples
N_FREQ = N_FFT // 2 + 1                                  # 201 (onesided)
N_FREQ_PAD = 256                                         # 128-lane aligned
CONTEXT = LEFT_FRAMES + RIGHT_FRAMES + 1                 # 11
N_FEAT = 3 * N_MFCC                                      # 60 (mfcc + d1 + d2)
F_OUT = N_FEAT * CONTEXT                                 # 660

AMIN = 1e-10
TOP_DB = 80.0
DB_MULT = 10.0                                           # power spectrogram
DELTA_N = 2                                              # (window_length-1)//2
DELTA_DENOM = float(DELTA_N * (DELTA_N + 1) * (2 * DELTA_N + 1) / 3)  # 10.0


# ----------------------- deterministic constant "weights" -------------------
def _build_constants():
    # Hamming window (torch.hamming_window, periodic=True)
    n = np.arange(N_FFT, dtype=np.float64)
    window = 0.54 - 0.46 * np.cos(2.0 * np.pi * n / N_FFT)

    # Fused onesided DFT matrix [cos | sin], zero-padded 201 -> 256 freq cols,
    # with the window baked into the rows: (x*w) @ C == x @ (diag(w) @ C).
    f = np.arange(N_FREQ_PAD, dtype=np.float64)
    ang = 2.0 * np.pi * np.outer(n, f) / N_FFT            # (400, 256)
    cos_mat = np.cos(ang)
    sin_mat = np.sin(ang)
    cos_mat[:, N_FREQ:] = 0.0
    sin_mat[:, N_FREQ:] = 0.0
    dft = np.concatenate([cos_mat, sin_mat], axis=1)      # (400, 512)
    dft_w = window[:, None] * dft
    # Frame t = [chunk[t], chunk[t+1], chunk[t+2][:80]]  ->  three (160, 512)
    # chunk-aligned weights; rows 400..479 are zero (tail of chunk t+2 unused).
    dft_pad = np.concatenate(
        [dft_w, np.zeros((3 * HOP_LENGTH - N_FFT, 2 * N_FREQ_PAD))], axis=0)
    w0 = dft_pad[0 * HOP_LENGTH:1 * HOP_LENGTH]           # (160, 512)
    w1 = dft_pad[1 * HOP_LENGTH:2 * HOP_LENGTH]
    w2 = dft_pad[2 * HOP_LENGTH:3 * HOP_LENGTH]

    # Mel filterbank (triangular), speechbrain Filterbank construction.
    def to_mel(hz):
        return 2595.0 * np.log10(1.0 + hz / 700.0)

    def to_hz(mel):
        return 700.0 * (10.0 ** (mel / 2595.0) - 1.0)

    mel_pts = np.linspace(to_mel(F_MIN), to_mel(F_MAX), N_MELS + 2)
    hz = to_hz(mel_pts)
    band = (hz[1:] - hz[:-1])[:-1]                        # (N_MELS,)
    f_central = hz[1:-1]                                  # (N_MELS,)
    all_freqs = np.linspace(0.0, SAMPLE_RATE // 2, N_FREQ)
    slope = (all_freqs[None, :] - f_central[:, None]) / band[:, None]
    fbank = np.maximum(0.0, np.minimum(slope + 1.0, -slope + 1.0)).T  # (201,23)
    fbank_pad = np.zeros((N_FREQ_PAD, N_MELS))
    fbank_pad[:N_FREQ] = fbank                            # padded rows -> 0

    # DCT matrix (ortho norm), same as speechbrain DCT.
    nn_ = np.arange(N_MELS, dtype=np.float64)
    kk = np.arange(N_MFCC, dtype=np.float64)[:, None]
    dct = np.cos(np.pi / float(N_MELS) * (nn_ + 0.5) * kk)
    dct[0] *= 1.0 / math.sqrt(2.0)
    dct *= math.sqrt(2.0 / float(N_MELS))
    dct_mat = dct.T                                       # (23, 20)

    # Context-window interleave operator: out[t, f*11+j] = feat_pad[t+j, f].
    # sel[j] is a (60, 660) 0/1 matrix placing feature f at lane f*11+j, so the
    # interleave is 11 accumulated MXU matmuls and the output stays lane-dense.
    sel = np.zeros((CONTEXT, N_FEAT, F_OUT), dtype=np.float64)
    for j in range(CONTEXT):
        for ff in range(N_FEAT):
            sel[j, ff, ff * CONTEXT + j] = 1.0

    f32 = lambda a: np.asarray(a, dtype=np.float32)
    return (f32(w0), f32(w1), f32(w2), f32(fbank_pad), f32(dct_mat), f32(sel))


_CONSTS = _build_constants()


# ------------------------------ fused kernel ---------------------------------
def mfcc_fused_kernel(chunks_ref, w0_ref, w1_ref, w2_ref, fbank_ref, dct_ref,
                      sel_ref, out_ref):
    T = out_ref.shape[0]

    # Windowed onesided DFT built from hop-sized chunks (frames never formed).
    y = jnp.dot(chunks_ref[pl.ds(0, T), :], w0_ref[...],
                preferred_element_type=jnp.float32)
    y = y + jnp.dot(chunks_ref[pl.ds(1, T), :], w1_ref[...],
                    preferred_element_type=jnp.float32)
    y = y + jnp.dot(chunks_ref[pl.ds(2, T), :], w2_ref[...],
                    preferred_element_type=jnp.float32)   # (T, 512)
    real = y[:, :N_FREQ_PAD]
    imag = y[:, N_FREQ_PAD:]
    power = real * real + imag * imag                     # (T, 256), pad cols 0

    # Mel filterbank -> log-mel in dB with per-sequence top_db clamp.
    mel = jnp.dot(power, fbank_ref[...], preferred_element_type=jnp.float32)
    x_db = DB_MULT * jnp.log10(jnp.maximum(mel, AMIN))
    x_db = jnp.maximum(x_db, jnp.max(x_db) - TOP_DB)      # per-sequence max

    # DCT -> MFCC
    mfcc = jnp.dot(x_db, dct_ref[...], preferred_element_type=jnp.float32)

    # Deltas: replicate-padded conv along time with kernel [-2,-1,0,1,2]/10.
    def delta(v):
        vp = jnp.concatenate(
            [v[0:1], v[0:1], v, v[T - 1:T], v[T - 1:T]], axis=0)  # (T+4, F)
        return (2.0 * (vp[4:4 + T] - vp[0:T])
                + (vp[3:3 + T] - vp[1:1 + T])) / DELTA_DENOM

    d1 = delta(mfcc)
    d2 = delta(d1)
    feat = jnp.concatenate([mfcc, d1, d2], axis=-1)       # (T, 60)

    # Context window (+/-5 frames, zero-padded at sequence ends), interleaved
    # into the PyTorch channel order f*11+j via the 0/1 selection operator.
    zpad = jnp.zeros((LEFT_FRAMES, N_FEAT), jnp.float32)
    fp = jnp.concatenate([zpad, feat, zpad], axis=0)      # (T+10, 60)
    acc = jnp.dot(fp[0:T], sel_ref[0], preferred_element_type=jnp.float32)
    for j in range(1, CONTEXT):
        acc = acc + jnp.dot(fp[j:j + T], sel_ref[j],
                            preferred_element_type=jnp.float32)
    out_ref[...] = acc                                    # (T, 660) lane-dense


def mfcc_pallas(chunks, consts):
    """chunks: (B, T+2, HOP_LENGTH) f32 hop-chunked, center-padded waveform."""
    B, n_chunks, _ = chunks.shape
    T = n_chunks - 2
    w0, w1, w2, fbank, dct, sel = consts
    return pl.pallas_call(
        mfcc_fused_kernel,
        out_shape=jax.ShapeDtypeStruct((B, T, F_OUT), jnp.float32),
        grid=(B,),
        in_specs=[
            pl.BlockSpec((None, n_chunks, HOP_LENGTH), lambda b: (b, 0, 0)),
            pl.BlockSpec((HOP_LENGTH, 2 * N_FREQ_PAD), lambda b: (0, 0)),
            pl.BlockSpec((HOP_LENGTH, 2 * N_FREQ_PAD), lambda b: (0, 0)),
            pl.BlockSpec((HOP_LENGTH, 2 * N_FREQ_PAD), lambda b: (0, 0)),
            pl.BlockSpec((N_FREQ_PAD, N_MELS), lambda b: (0, 0)),
            pl.BlockSpec((N_MELS, N_MFCC), lambda b: (0, 0)),
            pl.BlockSpec((CONTEXT, N_FEAT, F_OUT), lambda b: (0, 0, 0)),
        ],
        out_specs=pl.BlockSpec((None, T, F_OUT), lambda b: (b, 0, 0)),
        compiler_params=pltpu.CompilerParams(
            dimension_semantics=("parallel",),          # shard batch across TCs
            vmem_limit_bytes=64 * 1024 * 1024,
        ),
    )(chunks, w0, w1, w2, fbank, dct, sel)


# ------------------------------ full forward ---------------------------------
@jax.jit
def mfcc_forward(wav):
    """wav: (B, L) float32 -> (B, L//160 + 1, 660) float32 MFCC+deltas+context."""
    wav = wav.astype(jnp.float32)
    B, L = wav.shape
    T = L // HOP_LENGTH + 1                               # torch.stft, center=True
    n_chunks = T + 2                                      # covers all frames
    pad_left = N_FFT // 2                                 # STFT center padding
    pad_right = n_chunks * HOP_LENGTH - L - pad_left      # >= 0 by construction
    wav_p = jnp.pad(wav, ((0, 0), (pad_left, pad_right)))  # constant (zeros)
    chunks = wav_p.reshape(B, n_chunks, HOP_LENGTH)       # hop-sized chunks
    return mfcc_pallas(chunks, _CONSTS)


if __name__ == "__main__":
    key = jax.random.PRNGKey(0)
    # small waveform: 3200 samples -> 21 frames
    wav = jax.random.normal(key, (2, 3200), dtype=jnp.float32)
    feats = mfcc_forward(wav)
    jax.block_until_ready(feats)
    expected_T = 3200 // HOP_LENGTH + 1
    assert feats.shape == (2, expected_T, F_OUT), feats.shape
    assert feats.dtype == jnp.float32
    assert bool(jnp.all(jnp.isfinite(feats)))
    print("KERNEL_OK")
</pallas_src>

<mosaic_0001>
module attributes {stable_mosaic.version = 11 : i64} {
  func.func @mfcc_fused_kernel(%arg0: i32, %arg1: memref<1x23x160xf32, #tpu.memory_space<vmem>>, %arg2: memref<160x512xf32, #tpu.memory_space<vmem>>, %arg3: memref<160x512xf32, #tpu.memory_space<vmem>>, %arg4: memref<160x512xf32, #tpu.memory_space<vmem>>, %arg5: memref<256x23xf32, #tpu.memory_space<vmem>>, %arg6: memref<23x20xf32, #tpu.memory_space<vmem>>, %arg7: memref<11x60x660xf32, #tpu.memory_space<vmem>>, %arg8: memref<1x21x660xf32, #tpu.memory_space<vmem>>) attributes {dimension_semantics = [#tpu.dimension_semantics<parallel>], iteration_bounds = array<i64: 2>, scalar_prefetch = 0 : i64, scratch_operands = 0 : i64, tpu.core_type = #tpu.core_type<tc>, window_params = [{transform_indices = @transform_0, window_bounds = array<i64: 1, 23, 160>}, {pipeline_mode = #tpu.pipeline_mode<synchronous>, transform_indices = @transform_1, window_bounds = array<i64: 160, 512>}, {pipeline_mode = #tpu.pipeline_mode<synchronous>, transform_indices = @transform_2, window_bounds = array<i64: 160, 512>}, {pipeline_mode = #tpu.pipeline_mode<synchronous>, transform_indices = @transform_3, window_bounds = array<i64: 160, 512>}, {pipeline_mode = #tpu.pipeline_mode<synchronous>, transform_indices = @transform_4, window_bounds = array<i64: 256, 23>}, {pipeline_mode = #tpu.pipeline_mode<synchronous>, transform_indices = @transform_5, window_bounds = array<i64: 23, 20>}, {pipeline_mode = #tpu.pipeline_mode<synchronous>, transform_indices = @transform_6, window_bounds = array<i64: 11, 60, 660>}, {transform_indices = @transform_7, window_bounds = array<i64: 1, 21, 660>}]} {
    %c0 = arith.constant 0 : index
    %c0_0 = arith.constant 0 : index
    %c0_1 = arith.constant 0 : index
    %0 = vector.load %arg1[%c0, %c0_0, %c0_1] : memref<1x23x160xf32, #tpu.memory_space<vmem>>, vector<1x21x160xf32>
    %1 = vector.shape_cast %0 : vector<1x21x160xf32> to vector<21x160xf32>
    %c0_2 = arith.constant 0 : index
    %c0_3 = arith.constant 0 : index
    %2 = vector.load %arg2[%c0_2, %c0_3] : memref<160x512xf32, #tpu.memory_space<vmem>>, vector<160x512xf32>
    %cst = arith.constant dense<0.000000e+00> : vector<21x512xf32>
    %3 = tpu.matmul %1, %2, %cst {dimension_numbers = #tpu.dot_dimension_numbers<[1], [0], [0], [1], [0, 0, 1, 1], [], []>} : vector<21x160xf32>, vector<160x512xf32>, vector<21x512xf32> -> vector<21x512xf32>
    %c0_4 = arith.constant 0 : index
    %c1 = arith.constant 1 : index
    %c0_5 = arith.constant 0 : index
    %4 = vector.load %arg1[%c0_4, %c1, %c0_5] : memref<1x23x160xf32, #tpu.memory_space<vmem>>, vector<1x21x160xf32>
    %5 = vector.shape_cast %4 : vector<1x21x160xf32> to vector<21x160xf32>
    %c0_6 = arith.constant 0 : index
    %c0_7 = arith.constant 0 : index
    %6 = vector.load %arg3[%c0_6, %c0_7] : memref<160x512xf32, #tpu.memory_space<vmem>>, vector<160x512xf32>
    %cst_8 = arith.constant dense<0.000000e+00> : vector<21x512xf32>
    %7 = tpu.matmul %5, %6, %cst_8 {dimension_numbers = #tpu.dot_dimension_numbers<[1], [0], [0], [1], [0, 0, 1, 1], [], []>} : vector<21x160xf32>, vector<160x512xf32>, vector<21x512xf32> -> vector<21x512xf32>
    %8 = arith.addf %3, %7 : vector<21x512xf32>
    %c0_9 = arith.constant 0 : index
    %c2 = arith.constant 2 : index
    %c0_10 = arith.constant 0 : index
    %9 = vector.load %arg1[%c0_9, %c2, %c0_10] : memref<1x23x160xf32, #tpu.memory_space<vmem>>, vector<1x21x160xf32>
    %10 = vector.shape_cast %9 : vector<1x21x160xf32> to vector<21x160xf32>
    %c0_11 = arith.constant 0 : index
    %c0_12 = arith.constant 0 : index
    %11 = vector.load %arg4[%c0_11, %c0_12] : memref<160x512xf32, #tpu.memory_space<vmem>>, vector<160x512xf32>
    %cst_13 = arith.constant dense<0.000000e+00> : vector<21x512xf32>
    %12 = tpu.matmul %10, %11, %cst_13 {dimension_numbers = #tpu.dot_dimension_numbers<[1], [0], [0], [1], [0, 0, 1, 1], [], []>} : vector<21x160xf32>, vector<160x512xf32>, vector<21x512xf32> -> vector<21x512xf32>
    %13 = arith.addf %8, %12 : vector<21x512xf32>
    %14 = vector.extract_strided_slice %13 {offsets = [0, 0], sizes = [21, 256], strides = [1, 1]} : vector<21x512xf32> to vector<21x256xf32>
    %15 = vector.extract_strided_slice %13 {offsets = [0, 256], sizes = [21, 256], strides = [1, 1]} : vector<21x512xf32> to vector<21x256xf32>
    %16 = arith.mulf %14, %14 : vector<21x256xf32>
    %17 = arith.mulf %15, %15 : vector<21x256xf32>
    %18 = arith.addf %16, %17 : vector<21x256xf32>
    %c0_14 = arith.constant 0 : index
    %c0_15 = arith.constant 0 : index
    %19 = vector.load %arg5[%c0_14, %c0_15] : memref<256x23xf32, #tpu.memory_space<vmem>>, vector<256x23xf32>
    %cst_16 = arith.constant dense<0.000000e+00> : vector<21x23xf32>
    %20 = tpu.matmul %18, %19, %cst_16 {dimension_numbers = #tpu.dot_dimension_numbers<[1], [0], [0], [1], [0, 0, 1, 1], [], []>} : vector<21x256xf32>, vector<256x23xf32>, vector<21x23xf32> -> vector<21x23xf32>
    %cst_17 = arith.constant 1.000000e-10 : f32
    %21 = vector.broadcast %cst_17 : f32 to vector<21x23xf32>
    %22 = arith.maximumf %20, %21 : vector<21x23xf32>
    %23 = math.log %22 : vector<21x23xf32>
    %cst_18 = arith.constant 0.434294492 : f32
    %24 = vector.broadcast %cst_18 : f32 to vector<21x23xf32>
    %25 = arith.mulf %23, %24 : vector<21x23xf32>
    %cst_19 = arith.constant 1.000000e+01 : f32
    %26 = vector.broadcast %cst_19 : f32 to vector<21x23xf32>
    %27 = arith.mulf %26, %25 : vector<21x23xf32>
    %28 = vector.shape_cast %27 : vector<21x23xf32> to vector<1x21x23xf32>
    %cst_20 = arith.constant dense<0xFF800000> : vector<1xf32>
    %29 = vector.multi_reduction <maximumf>, %28, %cst_20 [1, 2] : vector<1x21x23xf32> to vector<1xf32>
    %30 = vector.shape_cast %29 : vector<1xf32> to vector<1x1x1xf32>
    %31 = vector.extract %30[0, 0, 0] : f32 from vector<1x1x1xf32>
    %cst_21 = arith.constant 8.000000e+01 : f32
    %32 = arith.subf %31, %cst_21 : f32
    %33 = vector.broadcast %32 : f32 to vector<21x23xf32>
    %34 = arith.maximumf %27, %33 : vector<21x23xf32>
    %c0_22 = arith.constant 0 : index
    %c0_23 = arith.constant 0 : index
    %35 = vector.load %arg6[%c0_22, %c0_23] : memref<23x20xf32, #tpu.memory_space<vmem>>, vector<23x20xf32>
    %cst_24 = arith.constant dense<0.000000e+00> : vector<21x20xf32>
    %36 = tpu.matmul %34, %35, %cst_24 {dimension_numbers = #tpu.dot_dimension_numbers<[1], [0], [0], [1], [0, 0, 1, 1], [], []>} : vector<21x23xf32>, vector<23x20xf32>, vector<21x20xf32> -> vector<21x20xf32>
    %37 = vector.extract_strided_slice %36 {offsets = [0, 0], sizes = [1, 20], strides = [1, 1]} : vector<21x20xf32> to vector<1x20xf32>
    %38 = vector.extract_strided_slice %36 {offsets = [0, 0], sizes = [1, 20], strides = [1, 1]} : vector<21x20xf32> to vector<1x20xf32>
    %39 = vector.extract_strided_slice %36 {offsets = [20, 0], sizes = [1, 20], strides = [1, 1]} : vector<21x20xf32> to vector<1x20xf32>
    %40 = vector.extract_strided_slice %36 {offsets = [20, 0], sizes = [1, 20], strides = [1, 1]} : vector<21x20xf32> to vector<1x20xf32>
    %41 = tpu.concatenate %37, %38, %36, %39, %40 in 0 : vector<1x20xf32>, vector<1x20xf32>, vector<21x20xf32>, vector<1x20xf32>, vector<1x20xf32> -> vector<25x20xf32>
    %42 = vector.extract_strided_slice %41 {offsets = [4, 0], sizes = [21, 20], strides = [1, 1]} : vector<25x20xf32> to vector<21x20xf32>
    %43 = vector.extract_strided_slice %41 {offsets = [0, 0], sizes = [21, 20], strides = [1, 1]} : vector<25x20xf32> to vector<21x20xf32>
    %44 = arith.subf %42, %43 : vector<21x20xf32>
    %cst_25 = arith.constant 2.000000e+00 : f32
    %45 = vector.broadcast %cst_25 : f32 to vector<21x20xf32>
    %46 = arith.mulf %45, %44 : vector<21x20xf32>
    %47 = vector.extract_strided_slice %41 {offsets = [3, 0], sizes = [21, 20], strides = [1, 1]} : vector<25x20xf32> to vector<21x20xf32>
    %48 = vector.extract_strided_slice %41 {offsets = [1, 0], sizes = [21, 20], strides = [1, 1]} : vector<25x20xf32> to vector<21x20xf32>
    %49 = arith.subf %47, %48 : vector<21x20xf32>
    %50 = arith.addf %46, %49 : vector<21x20xf32>
    %cst_26 = arith.constant 1.000000e+01 : f32
    %51 = vector.broadcast %cst_26 : f32 to vector<21x20xf32>
    %52 = arith.divf %50, %51 : vector<21x20xf32>
    %53 = vector.extract_strided_slice %52 {offsets = [0, 0], sizes = [1, 20], strides = [1, 1]} : vector<21x20xf32> to vector<1x20xf32>
    %54 = vector.extract_strided_slice %52 {offsets = [0, 0], sizes = [1, 20], strides = [1, 1]} : vector<21x20xf32> to vector<1x20xf32>
    %55 = vector.extract_strided_slice %52 {offsets = [20, 0], sizes = [1, 20], strides = [1, 1]} : vector<21x20xf32> to vector<1x20xf32>
    %56 = vector.extract_strided_slice %52 {offsets = [20, 0], sizes = [1, 20], strides = [1, 1]} : vector<21x20xf32> to vector<1x20xf32>
    %57 = tpu.concatenate %53, %54, %52, %55, %56 in 0 : vector<1x20xf32>, vector<1x20xf32>, vector<21x20xf32>, vector<1x20xf32>, vector<1x20xf32> -> vector<25x20xf32>
    %58 = vector.extract_strided_slice %57 {offsets = [4, 0], sizes = [21, 20], strides = [1, 1]} : vector<25x20xf32> to vector<21x20xf32>
    %59 = vector.extract_strided_slice %57 {offsets = [0, 0], sizes = [21, 20], strides = [1, 1]} : vector<25x20xf32> to vector<21x20xf32>
    %60 = arith.subf %58, %59 : vector<21x20xf32>
    %cst_27 = arith.constant 2.000000e+00 : f32
    %61 = vector.broadcast %cst_27 : f32 to vector<21x20xf32>
    %62 = arith.mulf %61, %60 : vector<21x20xf32>
    %63 = vector.extract_strided_slice %57 {offsets = [3, 0], sizes = [21, 20], strides = [1, 1]} : vector<25x20xf32> to vector<21x20xf32>
    %64 = vector.extract_strided_slice %57 {offsets = [1, 0], sizes = [21, 20], strides = [1, 1]} : vector<25x20xf32> to vector<21x20xf32>
    %65 = arith.subf %63, %64 : vector<21x20xf32>
    %66 = arith.addf %62, %65 : vector<21x20xf32>
    %cst_28 = arith.constant 1.000000e+01 : f32
    %67 = vector.broadcast %cst_28 : f32 to vector<21x20xf32>
    %68 = arith.divf %66, %67 : vector<21x20xf32>
    %69 = tpu.concatenate %36, %52, %68 in 1 : vector<21x20xf32>, vector<21x20xf32>, vector<21x20xf32> -> vector<21x60xf32>
    %cst_29 = arith.constant 0.000000e+00 : f32
    %70 = vector.broadcast %cst_29 : f32 to vector<5x60xf32>
    %71 = tpu.concatenate %70, %69, %70 in 0 : vector<5x60xf32>, vector<21x60xf32>, vector<5x60xf32> -> vector<31x60xf32>
    %72 = vector.extract_strided_slice %71 {offsets = [0, 0], sizes = [21, 60], strides = [1, 1]} : vector<31x60xf32> to vector<21x60xf32>
    %c0_30 = arith.constant 0 : index
    %c0_31 = arith.constant 0 : index
    %c0_32 = arith.constant 0 : index
    %73 = vector.load %arg7[%c0_30, %c0_31, %c0_32] : memref<11x60x660xf32, #tpu.memory_space<vmem>>, vector<1x60x660xf32>
    %74 = vector.shape_cast %73 : vector<1x60x660xf32> to vector<60x660xf32>
    %cst_33 = arith.constant dense<0.000000e+00> : vector<21x660xf32>
    %75 = tpu.matmul %72, %74, %cst_33 {dimension_numbers = #tpu.dot_dimension_numbers<[1], [0], [0], [1], [0, 0, 1, 1], [], []>} : vector<21x60xf32>, vector<60x660xf32>, vector<21x660xf32> -> vector<21x660xf32>
    %76 = vector.extract_strided_slice %71 {offsets = [1, 0], sizes = [21, 60], strides = [1, 1]} : vector<31x60xf32> to vector<21x60xf32>
    %c1_34 = arith.constant 1 : index
    %c0_35 = arith.constant 0 : index
    %c0_36 = arith.constant 0 : index
    %77 = vector.load %arg7[%c1_34, %c0_35, %c0_36] : memref<11x60x660xf32, #tpu.memory_space<vmem>>, vector<1x60x660xf32>
    %78 = vector.shape_cast %77 : vector<1x60x660xf32> to vector<60x660xf32>
    %cst_37 = arith.constant dense<0.000000e+00> : vector<21x660xf32>
    %79 = tpu.matmul %76, %78, %cst_37 {dimension_numbers = #tpu.dot_dimension_numbers<[1], [0], [0], [1], [0, 0, 1, 1], [], []>} : vector<21x60xf32>, vector<60x660xf32>, vector<21x660xf32> -> vector<21x660xf32>
    %80 = arith.addf %75, %79 : vector<21x660xf32>
    %81 = vector.extract_strided_slice %71 {offsets = [2, 0], sizes = [21, 60], strides = [1, 1]} : vector<31x60xf32> to vector<21x60xf32>
    %c2_38 = arith.constant 2 : index
    %c0_39 = arith.constant 0 : index
    %c0_40 = arith.constant 0 : index
    %82 = vector.load %arg7[%c2_38, %c0_39, %c0_40] : memref<11x60x660xf32, #tpu.memory_space<vmem>>, vector<1x60x660xf32>
    %83 = vector.shape_cast %82 : vector<1x60x660xf32> to vector<60x660xf32>
    %cst_41 = arith.constant dense<0.000000e+00> : vector<21x660xf32>
    %84 = tpu.matmul %81, %83, %cst_41 {dimension_numbers = #tpu.dot_dimension_numbers<[1], [0], [0], [1], [0, 0, 1, 1], [], []>} : vector<21x60xf32>, vector<60x660xf32>, vector<21x660xf32> -> vector<21x660xf32>
    %85 = arith.addf %80, %84 : vector<21x660xf32>
    %86 = vector.extract_strided_slice %71 {offsets = [3, 0], sizes = [21, 60], strides = [1, 1]} : vector<31x60xf32> to vector<21x60xf32>
    %c3 = arith.constant 3 : index
    %c0_42 = arith.constant 0 : index
    %c0_43 = arith.constant 0 : index
    %87 = vector.load %arg7[%c3, %c0_42, %c0_43] : memref<11x60x660xf32, #tpu.memory_space<vmem>>, vector<1x60x660xf32>
    %88 = vector.shape_cast %87 : vector<1x60x660xf32> to vector<60x660xf32>
    %cst_44 = arith.constant dense<0.000000e+00> : vector<21x660xf32>
    %89 = tpu.matmul %86, %88, %cst_44 {dimension_numbers = #tpu.dot_dimension_numbers<[1], [0], [0], [1], [0, 0, 1, 1], [], []>} : vector<21x60xf32>, vector<60x660xf32>, vector<21x660xf32> -> vector<21x660xf32>
    %90 = arith.addf %85, %89 : vector<21x660xf32>
    %91 = vector.extract_strided_slice %71 {offsets = [4, 0], sizes = [21, 60], strides = [1, 1]} : vector<31x60xf32> to vector<21x60xf32>
    %c4 = arith.constant 4 : index
    %c0_45 = arith.constant 0 : index
    %c0_46 = arith.constant 0 : index
    %92 = vector.load %arg7[%c4, %c0_45, %c0_46] : memref<11x60x660xf32, #tpu.memory_space<vmem>>, vector<1x60x660xf32>
    %93 = vector.shape_cast %92 : vector<1x60x660xf32> to vector<60x660xf32>
    %cst_47 = arith.constant dense<0.000000e+00> : vector<21x660xf32>
    %94 = tpu.matmul %91, %93, %cst_47 {dimension_numbers = #tpu.dot_dimension_numbers<[1], [0], [0], [1], [0, 0, 1, 1], [], []>} : vector<21x60xf32>, vector<60x660xf32>, vector<21x660xf32> -> vector<21x660xf32>
    %95 = arith.addf %90, %94 : vector<21x660xf32>
    %96 = vector.extract_strided_slice %71 {offsets = [5, 0], sizes = [21, 60], strides = [1, 1]} : vector<31x60xf32> to vector<21x60xf32>
    %c5 = arith.constant 5 : index
    %c0_48 = arith.constant 0 : index
    %c0_49 = arith.constant 0 : index
    %97 = vector.load %arg7[%c5, %c0_48, %c0_49] : memref<11x60x660xf32, #tpu.memory_space<vmem>>, vector<1x60x660xf32>
    %98 = vector.shape_cast %97 : vector<1x60x660xf32> to vector<60x660xf32>
    %cst_50 = arith.constant dense<0.000000e+00> : vector<21x660xf32>
    %99 = tpu.matmul %96, %98, %cst_50 {dimension_numbers = #tpu.dot_dimension_numbers<[1], [0], [0], [1], [0, 0, 1, 1], [], []>} : vector<21x60xf32>, vector<60x660xf32>, vector<21x660xf32> -> vector<21x660xf32>
    %100 = arith.addf %95, %99 : vector<21x660xf32>
    %101 = vector.extract_strided_slice %71 {offsets = [6, 0], sizes = [21, 60], strides = [1, 1]} : vector<31x60xf32> to vector<21x60xf32>
    %c6 = arith.constant 6 : index
    %c0_51 = arith.constant 0 : index
    %c0_52 = arith.constant 0 : index
    %102 = vector.load %arg7[%c6, %c0_51, %c0_52] : memref<11x60x660xf32, #tpu.memory_space<vmem>>, vector<1x60x660xf32>
    %103 = vector.shape_cast %102 : vector<1x60x660xf32> to vector<60x660xf32>
    %cst_53 = arith.constant dense<0.000000e+00> : vector<21x660xf32>
    %104 = tpu.matmul %101, %103, %cst_53 {dimension_numbers = #tpu.dot_dimension_numbers<[1], [0], [0], [1], [0, 0, 1, 1], [], []>} : vector<21x60xf32>, vector<60x660xf32>, vector<21x660xf32> -> vector<21x660xf32>
    %105 = arith.addf %100, %104 : vector<21x660xf32>
    %106 = vector.extract_strided_slice %71 {offsets = [7, 0], sizes = [21, 60], strides = [1, 1]} : vector<31x60xf32> to vector<21x60xf32>
    %c7 = arith.constant 7 : index
    %c0_54 = arith.constant 0 : index
    %c0_55 = arith.constant 0 : index
    %107 = vector.load %arg7[%c7, %c0_54, %c0_55] : memref<11x60x660xf32, #tpu.memory_space<vmem>>, vector<1x60x660xf32>
    %108 = vector.shape_cast %107 : vector<1x60x660xf32> to vector<60x660xf32>
    %cst_56 = arith.constant dense<0.000000e+00> : vector<21x660xf32>
    %109 = tpu.matmul %106, %108, %cst_56 {dimension_numbers = #tpu.dot_dimension_numbers<[1], [0], [0], [1], [0, 0, 1, 1], [], []>} : vector<21x60xf32>, vector<60x660xf32>, vector<21x660xf32> -> vector<21x660xf32>
    %110 = arith.addf %105, %109 : vector<21x660xf32>
    %111 = vector.extract_strided_slice %71 {offsets = [8, 0], sizes = [21, 60], strides = [1, 1]} : vector<31x60xf32> to vector<21x60xf32>
    %c8 = arith.constant 8 : index
    %c0_57 = arith.constant 0 : index
    %c0_58 = arith.constant 0 : index
    %112 = vector.load %arg7[%c8, %c0_57, %c0_58] : memref<11x60x660xf32, #tpu.memory_space<vmem>>, vector<1x60x660xf32>
    %113 = vector.shape_cast %112 : vector<1x60x660xf32> to vector<60x660xf32>
    %cst_59 = arith.constant dense<0.000000e+00> : vector<21x660xf32>
    %114 = tpu.matmul %111, %113, %cst_59 {dimension_numbers = #tpu.dot_dimension_numbers<[1], [0], [0], [1], [0, 0, 1, 1], [], []>} : vector<21x60xf32>, vector<60x660xf32>, vector<21x660xf32> -> vector<21x660xf32>
    %115 = arith.addf %110, %114 : vector<21x660xf32>
    %116 = vector.extract_strided_slice %71 {offsets = [9, 0], sizes = [21, 60], strides = [1, 1]} : vector<31x60xf32> to vector<21x60xf32>
    %c9 = arith.constant 9 : index
    %c0_60 = arith.constant 0 : index
    %c0_61 = arith.constant 0 : index
    %117 = vector.load %arg7[%c9, %c0_60, %c0_61] : memref<11x60x660xf32, #tpu.memory_space<vmem>>, vector<1x60x660xf32>
    %118 = vector.shape_cast %117 : vector<1x60x660xf32> to vector<60x660xf32>
    %cst_62 = arith.constant dense<0.000000e+00> : vector<21x660xf32>
    %119 = tpu.matmul %116, %118, %cst_62 {dimension_numbers = #tpu.dot_dimension_numbers<[1], [0], [0], [1], [0, 0, 1, 1], [], []>} : vector<21x60xf32>, vector<60x660xf32>, vector<21x660xf32> -> vector<21x660xf32>
    %120 = arith.addf %115, %119 : vector<21x660xf32>
    %121 = vector.extract_strided_slice %71 {offsets = [10, 0], sizes = [21, 60], strides = [1, 1]} : vector<31x60xf32> to vector<21x60xf32>
    %c10 = arith.constant 10 : index
    %c0_63 = arith.constant 0 : index
    %c0_64 = arith.constant 0 : index
    %122 = vector.load %arg7[%c10, %c0_63, %c0_64] : memref<11x60x660xf32, #tpu.memory_space<vmem>>, vector<1x60x660xf32>
    %123 = vector.shape_cast %122 : vector<1x60x660xf32> to vector<60x660xf32>
    %cst_65 = arith.constant dense<0.000000e+00> : vector<21x660xf32>
    %124 = tpu.matmul %121, %123, %cst_65 {dimension_numbers = #tpu.dot_dimension_numbers<[1], [0], [0], [1], [0, 0, 1, 1], [], []>} : vector<21x60xf32>, vector<60x660xf32>, vector<21x660xf32> -> vector<21x660xf32>
    %125 = arith.addf %120, %124 : vector<21x660xf32>
    %c0_66 = arith.constant 0 : index
    %c0_67 = arith.constant 0 : index
    %c0_68 = arith.constant 0 : index
    %126 = vector.load %arg8[%c0_66, %c0_67, %c0_68] : memref<1x21x660xf32, #tpu.memory_space<vmem>>, vector<1x21x660xf32>
    %127 = vector.shape_cast %126 : vector<1x21x660xf32> to vector<21x660xf32>
    %128 = vector.shape_cast %125 : vector<21x660xf32> to vector<1x21x660xf32>
    tpu.vector_store %arg8[%c0_66, %c0_67, %c0_68], %128 {strides = array<i32>} : memref<1x21x660xf32, #tpu.memory_space<vmem>>, vector<1x21x660xf32>,
    return
  }
  func.func @transform_0(%arg0: i32) -> (i32, i32, i32) {
    %c0_i32 = arith.constant 0 : i32
    %c0_i32_0 = arith.constant 0 : i32
    %c0_i32_1 = arith.constant 0 : i32
    return %arg0, %c0_i32, %c0_i32_0 : i32, i32, i32
  }
  func.func @transform_1(%arg0: i32) -> (i32, i32) {
    %c0_i32 = arith.constant 0 : i32
    %c0_i32_0 = arith.constant 0 : i32
    %c0_i32_1 = arith.constant 0 : i32
    return %c0_i32, %c0_i32_0 : i32, i32
  }
  func.func @transform_2(%arg0: i32) -> (i32, i32) {
    %c0_i32 = arith.constant 0 : i32
    %c0_i32_0 = arith.constant 0 : i32
    %c0_i32_1 = arith.constant 0 : i32
    return %c0_i32, %c0_i32_0 : i32, i32
  }
  func.func @transform_3(%arg0: i32) -> (i32, i32) {
    %c0_i32 = arith.constant 0 : i32
    %c0_i32_0 = arith.constant 0 : i32
    %c0_i32_1 = arith.constant 0 : i32
    return %c0_i32, %c0_i32_0 : i32, i32
  }
  func.func @transform_4(%arg0: i32) -> (i32, i32) {
    %c0_i32 = arith.constant 0 : i32
    %c0_i32_0 = arith.constant 0 : i32
    %c0_i32_1 = arith.constant 0 : i32
    return %c0_i32, %c0_i32_0 : i32, i32
  }
  func.func @transform_5(%arg0: i32) -> (i32, i32) {
    %c0_i32 = arith.constant 0 : i32
    %c0_i32_0 = arith.constant 0 : i32
    %c0_i32_1 = arith.constant 0 : i32
    return %c0_i32, %c0_i32_0 : i32, i32
  }
  func.func @transform_6(%arg0: i32) -> (i32, i32, i32) {
    %c0_i32 = arith.constant 0 : i32
    %c0_i32_0 = arith.constant 0 : i32
    %c0_i32_1 = arith.constant 0 : i32
    %c0_i32_2 = arith.constant 0 : i32
    return %c0_i32, %c0_i32_0, %c0_i32_1 : i32, i32, i32
  }
  func.func @transform_7(%arg0: i32) -> (i32, i32, i32) {
    %c0_i32 = arith.constant 0 : i32
    %c0_i32_0 = arith.constant 0 : i32
    %c0_i32_1 = arith.constant 0 : i32
    return %arg0, %c0_i32, %c0_i32_0 : i32, i32, i32
  }
}

</mosaic_0001>

<bundles_post_ra>
// kernel: mfcc_forward.1
= control target key start
LH: loop header
LB: loop body
LE: loop exit
PB: predicated region body
PF: predicated region fallthrough
CT: control target
= control target key end

     0   :  { %12 = vsyncpa [#allocation3], 0  ;;  %s7202_s0 = inlined_call_operand.vmem [shape: f32[2,23,160], index: 0, kind: input, shape index: {}]   ;;  %s7203_s1 = inlined_call_operand.hbm [shape: f32[160,512], index: 1, kind: input, shape index: {}]   ;;  %s7204_s2 = inlined_call_operand.hbm [shape: f32[160,512], index: 2, kind: input, shape index: {}]   ;;  %s7205_s3 = inlined_call_operand.hbm [shape: f32[160,512], index: 3, kind: input, shape index: {}]   ;;  %s7206_s4 = inlined_call_operand.hbm [shape: f32[256,23], index: 4, kind: input, shape index: {}]   ;;  %s7207_s5 = inlined_call_operand.hbm [shape: f32[23,20], index: 5, kind: input, shape index: {}]   ;;  %s7208_s6 = inlined_call_operand.hbm [shape: f32[11,60,660], index: 6, kind: input, shape index: {}]   ;;  %s7209_s7 = inlined_call_operand.vmem [shape: f32[2,21,660], index: 7, kind: output, shape index: {}]  }
   0x1   :  { %13 = vsyncpa [#allocation5], 0 }
   0x2   :  { %14 = vsyncpa [#allocation8], 0 }
   0x3   :  { %15 = vsyncpa [#allocation11], 0  ;;  %s6130_s24 = smov 0  }
   0x4 LB: > { %s6136_s25 = sadd.s32 4294967295, %s6072_s24   ;;  %p5536_p0 = scmp.ge.s32.totalorder %s6072_s24, 1  ;;  %s6072_s24 = sphi %s6130_s24, %s21_s24  }
   0x5   : > { %p204_p1 = scmp.lt.s32.totalorder %s6072_s24, 3  ;;  %p5852_p2 = scmp.eq.s32.totalorder %s6136_s25, 0 }
   0x6   : > { %s6074_s27 = smov [#allocation4]   ;;  %s6075_s29 = smov [#allocation7]  }
   0x7   : > { %p6141_p3 = pnand %p5536_p0, %p204_p1  ;;  %s229_s28 = sshll.u32 %s6074_s27, 4  ;;  %s230_s28 = int_to_ptr.vmem [resolvable:$true] %s229_s28 }
   0x8   : > { %s255_s30 = sshll.u32 %s6075_s29, 4  ;;  %s6076_s9 = smov [#allocation2]   ;;  %s6147_s30 = int_to_ptr.vmem [resolvable:$true] %s255_s30 }
   0x9   : > { %p5833_p4 = pneg %p6141_p3  ;;  %s6155_s10 = sshll.u32 %s6076_s9, 4  ;;  %s217_s10 = int_to_ptr.vmem [resolvable:$true] %s6155_s10 }
   0xa   : > { %s5905_s12 = scalar_lea.vmem %s230_s28, 10240  ;;  %p5913_p10 = scmp.lt.s32.totalorder %s230_s28, %s230_s28 }
   0xb   : > { %p6151_p5 = pnand %p5852_p2, %p5833_p4  ;;  %p5906_p7 = scmp.ne.s32.totalorder %s230_s28, %s5905_s12 }
   0xc   : > { %p5914_p11 = scmp.lt.s32.totalorder %s5905_s12, %s5905_s12 }
   0xd   : > { %p6159_p6 = pneg %p6151_p5 }
   0xe   : > { %p5915_p12 = por %p5914_p11, %p5913_p10 }
   0xf   : > { %p5908_p8 = pnand %p5906_p7, %p6159_p6 }
  0x11   : > { %p5909_p9 = pneg %p5908_p8 }
  0x13   : > { %p5916_p13 = pnand %p5915_p12, %p5909_p9 }
  0x15   : > { %5919 = shalt.err (!%p5916_p13)
}
  0x16   : > { %s6077_s13 = smov 512   ;;  %s6078_s14 = smov 32  }
  0x17   : > { %5839 = dma.hbm_to_vmem [thread:$0]  (!%p6151_p5), %s7204_s2, 10240, %s230_s28, [#allocation5], %s6077_s13, %s6077_s13, %s6078_s14  }
  0x18   : > { %s5931_s17 = scalar_lea.vmem %s6147_s30, 4096  ;;  %p5939_p7 = scmp.lt.s32.totalorder %s6147_s30, %s6147_s30 }
  0x19   : > { %p5932_p0 = scmp.ne.s32.totalorder %s6147_s30, %s5931_s17  ;;  %p5940_p8 = scmp.lt.s32.totalorder %s5931_s17, %s5931_s17 }
  0x1b   : > { %p5934_p1 = pnand %p5932_p0, %p6159_p6  ;;  %p5941_p9 = por %p5940_p8, %p5939_p7 }
  0x1d   : > { %p5935_p4 = pneg %p5934_p1 }
  0x1f   : > { %p5942_p10 = pnand %p5941_p9, %p5935_p4 }
  0x21   : > { %5945 = shalt.err (!%p5942_p10)
}
  0x22   : > { %s6079_s18 = smov 128   ;;  %s6080_s19 = smov 8  }
  0x23   : > { %5845 = dma.hbm_to_vmem [thread:$0]  (!%p6151_p5), %s7206_s4, 4096, %s6147_s30, [#allocation8], %s6079_s18, %s6079_s18, %s6080_s19  }
  0x24   : > { %s6081_s22 = smov [#allocation6]   ;;  %s5957_s27 = scalar_lea.vmem %s217_s10, 10240 }
  0x25   : > { %s242_s23 = sshll.u32 %s6081_s22, 4  ;;  %p5958_p11 = scmp.ne.s32.totalorder %s217_s10, %s5957_s27  ;;  %s243_s23 = int_to_ptr.vmem [resolvable:$true] %s242_s23 }
  0x26   : > { %p5965_p0 = scmp.lt.s32.totalorder %s217_s10, %s217_s10  ;;  %p5966_p1 = scmp.lt.s32.totalorder %s5957_s27, %s5957_s27 }
  0x27   : > { %p5960_p12 = pnand %p5958_p11, %p6159_p6 }
  0x28   : > { %p5967_p4 = por %p5966_p1, %p5965_p0 }
  0x29   : > { %p5961_p13 = pneg %p5960_p12 }
  0x2b   : > { %p5968_p7 = pnand %p5967_p4, %p5961_p13 }
  0x2d   : > { %5971 = shalt.err (!%p5968_p7)
}
  0x2e   : > { %5836 = dma.hbm_to_vmem [thread:$0]  (!%p6151_p5), %s7203_s1, 10240, %s217_s10, [#allocation3], %s6077_s13, %s6077_s13, %s6078_s14  }
  0x2f   : > { %s5983_s30 = scalar_lea.vmem %s243_s23, 10240  ;;  %p5991_p11 = scmp.lt.s32.totalorder %s243_s23, %s243_s23 }
  0x30   : > { %p5984_p8 = scmp.ne.s32.totalorder %s243_s23, %s5983_s30  ;;  %p5992_p12 = scmp.lt.s32.totalorder %s5983_s30, %s5983_s30 }
  0x32   : > { %p5986_p9 = pnand %p5984_p8, %p6159_p6  ;;  %p5993_p13 = por %p5992_p12, %p5991_p11 }
  0x34   : > { %p5987_p10 = pneg %p5986_p9 }
  0x36   : > { %p5994_p0 = pnand %p5993_p13, %p5987_p10 }
  0x38   : > { %5997 = shalt.err (!%p5994_p0)
}
  0x39   : > { %5842 = dma.hbm_to_vmem [thread:$0]  (!%p6151_p5), %s7205_s3, 10240, %s243_s23, [#allocation5], %s6077_s13, %s6077_s13, %s6078_s14  }
  0x3a   : > { %s6082_s10 = smov [#allocation9]   ;;  %s6083_s16 = smov [#allocation10]  }
  0x3b   : > { %s268_s15 = sshll.u32 %s6082_s10, 4  ;;  %s281_s17 = sshll.u32 %s6083_s16, 4  ;;  %s269_s15 = int_to_ptr.vmem [resolvable:$true] %s268_s15  ;;  %s282_s17 = int_to_ptr.vmem [resolvable:$true] %s281_s17 }
  0x3c   : > { %s6009_s20 = scalar_lea.vmem %s269_s15, 384  ;;  %p6017_p8 = scmp.lt.s32.totalorder %s269_s15, %s269_s15 }
  0x3d   : > { %p6010_p1 = scmp.ne.s32.totalorder %s269_s15, %s6009_s20  ;;  %p6018_p9 = scmp.lt.s32.totalorder %s6009_s20, %s6009_s20 }
  0x3f   : > { %p6012_p4 = pnand %p6010_p1, %p6159_p6  ;;  %p6019_p10 = por %p6018_p9, %p6017_p8 }
  0x41   : > { %p6013_p7 = pneg %p6012_p4 }
  0x43   : > { %p6020_p11 = pnand %p6019_p10, %p6013_p7 }
  0x45   : > { %6023 = shalt.err (!%p6020_p11)
}
  0x46   : > { %5848 = dma.hbm_to_vmem [thread:$0]  (!%p6151_p5), %s7207_s5, 384, %s269_s15, [#allocation8], %s6079_s18, %s6079_s18, %s6080_s19  }
  0x47   : > { %s6035_s21 = scalar_lea.vmem %s282_s17, 67584  ;;  %p6043_p1 = scmp.lt.s32.totalorder %s282_s17, %s282_s17 }
  0x48   : > { %p6036_p12 = scmp.ne.s32.totalorder %s282_s17, %s6035_s21  ;;  %p6044_p4 = scmp.lt.s32.totalorder %s6035_s21, %s6035_s21 }
  0x4a   : > { %p6038_p13 = pnand %p6036_p12, %p6159_p6  ;;  %p6045_p7 = por %p6044_p4, %p6043_p1 }
  0x4c   : > { %p6039_p0 = pneg %p6038_p13 }
  0x4e   : > { %p6046_p8 = pnand %p6045_p7, %p6039_p0 }
  0x50   : > { %6049 = shalt.err (!%p6046_p8)
}
  0x51   : > { %s6084_s22 = smov 768   ;;  %s6085_s23 = smov 48  }
  0x52   : > { %5851 = dma.hbm_to_vmem [thread:$0]  (!%p6151_p5), %s7208_s6, 67584, %s282_s17, [#allocation11], %s6084_s22, %s6084_s22, %s6085_s23  }
  0x53   : > { %305 = sbr.rel (%p6141_p3) target bundleno = 1778 (0x6f2), region = 48 }
  0x58   : > { %6055 = dma.done.wait (%p5852_p2), [#allocation3], 10240  }
  0x59   : > { %6057 = vsyncadd (%p5852_p2), [#allocation3], 4294957056 }
  0x5a   : > { %6059 = dma.done.wait (%p5852_p2), [#allocation5], 20480  }
  0x5b   : > { %6061 = vsyncadd (%p5852_p2), [#allocation5], 4294946816 }
  0x5c   : > { %6063 = dma.done.wait (%p5852_p2), [#allocation8], 4480  }
  0x5d   : > { %6065 = vsyncadd (%p5852_p2), [#allocation8], 4294962816 }
  0x5e   : > { %6067 = dma.done.wait (%p5852_p2), [#allocation11], 67584  }
  0x5f   : > { %6069 = vsyncadd (%p5852_p2), [#allocation11], 4294899712  ;;  %v518_v0 = vld [vmem:[#allocation4 + $0x1e8] sm:$0xff]  ;;  %v520_v1 = vld [vmem:[#allocation4 + $0x1f8] sm:$0xff]  ;;  %p357_p2 = scmp.lt.s32.totalorder %s6136_s25, 1  ;;  %vm543_vm0 = vcmask 1046528  }
  0x60   : > { %v517_v2 = vld [vmem:[#allocation4 + $0x1e0] sm:$0xff]  ;;  %564 = vmatprep.subr.mxu0 %v518_v0  ;;  %647 = vmatprep.subr.mxu1 %v520_v1  ;;  %v519_v3 = vld [vmem:[#allocation4 + $0x1f0] sm:$0xff]  ;;  %v514_v4 = vld [vmem:[#allocation4 + $0x1c8] sm:$0xff]  ;;  %vm557_vm1 = vcmask 261120   ;;  %vm992_vm2 = vcmask 1045504   ;;  %vm1335_vm3 = vcmask 187392  }
  0x61   : > { %v516_v5 = vld [vmem:[#allocation4 + $0x1d8] sm:$0xff]  ;;  %565 = vmatpush1.msra.mxu0 %v517_v2  ;;  %648 = vmatpush1.msra.mxu1 %v519_v3  ;;  %v513_v6 = vld [vmem:[#allocation4 + $0x1c0] sm:$0xff]  ;;  %v515_v7 = vld [vmem:[#allocation4 + $0x1d0] sm:$0xff]  ;;  %s7216_s25 = smov (!%p357_p2, %s6136_s25), 1  ;;  %vm1338_vm4 = vcmask 184320   ;;  %vm6087_vm5 = vmmov 0  }
  0x62   : > { %v510_v8 = vld [vmem:[#allocation4 + $0x1a8] sm:$0xff]  ;;  %566 = vmatprep.subr.mxu0 %v514_v4  ;;  %649 = vmatprep.subr.mxu1 %v516_v5  ;;  %v512_v9 = vld [vmem:[#allocation4 + $0x1b8] sm:$0xff]  ;;  %v509_v10 = vld [vmem:[#allocation4 + $0x1a0] sm:$0xff]  ;;  %s5805_s26 = smul.u32 48, %s7216_s25  ;;  %vm1469_vm6 = vcmask 1040384   ;;  %vm1456_vm7 = vcmask 1041408  }
  0x63   : > { %v511_v11 = vld [vmem:[#allocation4 + $0x1b0] sm:$0xff]  ;;  %567 = vmatpush1.msra.mxu0 %v513_v6  ;;  %650 = vmatpush1.msra.mxu1 %v515_v7  ;;  %v506_v12 = vld [vmem:[#allocation4 + $0x188] sm:$0xff]  ;;  %v508_v13 = vld [vmem:[#allocation4 + $0x198] sm:$0xff]  ;;  %vm1475_vm8 = vcmask 1043456   ;;  %s6088_s30 = smov 20   ;;  %s6089_s9 = smov 40  }
  0x64   : > { %568 = vmatprep.subr.mxu0 %v510_v8  ;;  %651 = vmatprep.subr.mxu1 %v512_v9  ;;  %v505_v14 = vld [vmem:[#allocation4 + $0x180] sm:$0xff]  ;;  %v507_v15 = vld [vmem:[#allocation4 + $0x190] sm:$0xff]  ;;  %v502_v16 = vld [vmem:[#allocation4 + $0x168] sm:$0xff]  ;;  %s6254_s18 = scalar_lea.vmem %s7202_s0, %s5805_s26  ;;  %vm1633_vm9 = vcmask 162816   ;;  %vm1637_vm10 = vcmask 326656   ;;  %vm1644_vm11 = vcmask 1044480  }
  0x65   : > { %569 = vmatpush1.msra.mxu0 %v509_v10  ;;  %652 = vmatpush1.msra.mxu1 %v511_v11  ;;  %v504_v17 = vld [vmem:[#allocation4 + $0x178] sm:$0xff]  ;;  %v501_v18 = vld [vmem:[#allocation4 + $0x160] sm:$0xff]  ;;  %v503_v19 = vld [vmem:[#allocation4 + $0x170] sm:$0xff]  ;;  %vm1757_vm12 = vcmask 490496   ;;  %vm3391_vm13 = vcmask 1042432   ;;  %s5806_s12 = smul.u32 144, %s7216_s25 }
  0x66   : > { %570 = vmatprep.subr.mxu0 %v506_v12  ;;  %653 = vmatprep.subr.mxu1 %v508_v13  ;;  %v498_v20 = vld [vmem:[#allocation4 + $0x148] sm:$0xff]  ;;  %v500_v21 = vld [vmem:[#allocation4 + $0x158] sm:$0xff]  ;;  %v497_v22 = vld [vmem:[#allocation4 + $0x140] sm:$0xff]  ;;  %vm5417_vm14 = vcmask 159744  }
  0x67   : > { %571 = vmatpush1.msra.mxu0 %v505_v14  ;;  %654 = vmatpush1.msra.mxu1 %v507_v15  ;;  %v499_v23 = vld [vmem:[#allocation4 + $0x150] sm:$0xff]  ;;  %v494_v24 = vld [vmem:[#allocation4 + $0x128] sm:$0xff]  ;;  %v496_v25 = vld [vmem:[#allocation4 + $0x138] sm:$0xff]  ;;  %s7138_s16 = scalar_lea.vmem %s7209_s7, %s5806_s12 }
  0x68   : > { %572 = vmatprep.subr.mxu0 %v502_v16  ;;  %655 = vmatprep.subr.mxu1 %v504_v17  ;;  %v493_v26 = vld [vmem:[#allocation4 + $0x120] sm:$0xff]  ;;  %v495_v27 = vld [vmem:[#allocation4 + $0x130] sm:$0xff]  ;;  %v490_v28 = vld [vmem:[#allocation4 + $0x108] sm:$0xff] }
  0x69   : > { %573 = vmatpush1.msra.mxu0 %v501_v18  ;;  %656 = vmatpush1.msra.mxu1 %v503_v19  ;;  %v492_v29 = vld [vmem:[#allocation4 + $0x118] sm:$0xff]  ;;  %v489_v30 = vld [vmem:[#allocation4 + $0x100] sm:$0xff]  ;;  %v491_v31 = vld [vmem:[#allocation4 + $0x110] sm:$0xff] }
  0x6a   : > { %574 = vmatprep.subr.mxu0 %v498_v20  ;;  %657 = vmatprep.subr.mxu1 %v500_v21  ;;  %v486_v32 = vld [vmem:[#allocation4 + $0xe8] sm:$0xff]  ;;  %v488_v33 = vld [vmem:[#allocation4 + $0xf8] sm:$0xff]  ;;  %v485_v34 = vld [vmem:[#allocation4 + $0xe0] sm:$0xff] }
  0x6b   : > { %575 = vmatpush1.msra.mxu0 %v497_v22  ;;  %658 = vmatpush1.msra.mxu1 %v499_v23  ;;  %v487_v35 = vld [vmem:[#allocation4 + $0xf0] sm:$0xff]  ;;  %v482_v36 = vld [vmem:[#allocation4 + $0xc8] sm:$0xff]  ;;  %v484_v37 = vld [vmem:[#allocation4 + $0xd8] sm:$0xff] }
  0x6c   : > { %576 = vmatprep.subr.mxu0 %v494_v24  ;;  %659 = vmatprep.subr.mxu1 %v496_v25  ;;  %v481_v38 = vld [vmem:[#allocation4 + $0xc0] sm:$0xff]  ;;  %v483_v39 = vld [vmem:[#allocation4 + $0xd0] sm:$0xff]  ;;  %v478_v40 = vld [vmem:[#allocation4 + $0xa8] sm:$0xff] }
  0x6d   : > { %577 = vmatpush1.msra.mxu0 %v493_v26  ;;  %660 = vmatpush1.msra.mxu1 %v495_v27  ;;  %v480_v41 = vld [vmem:[#allocation4 + $0xb8] sm:$0xff]  ;;  %v477_v42 = vld [vmem:[#allocation4 + $0xa0] sm:$0xff]  ;;  %v479_v43 = vld [vmem:[#allocation4 + $0xb0] sm:$0xff] }
  0x6e   : > { %578 = vmatprep.subr.mxu0 %v490_v28  ;;  %661 = vmatprep.subr.mxu1 %v492_v29  ;;  %v474_v44 = vld [vmem:[#allocation4 + $0x88] sm:$0xff]  ;;  %v476_v45 = vld [vmem:[#allocation4 + $0x98] sm:$0xff]  ;;  %v473_v46 = vld [vmem:[#allocation4 + $0x80] sm:$0xff] }
  0x6f   : > { %579 = vmatpush1.msra.mxu0 %v489_v30  ;;  %662 = vmatpush1.msra.mxu1 %v491_v31  ;;  %v475_v47 = vld [vmem:[#allocation4 + $0x90] sm:$0xff]  ;;  %v470_v48 = vld [vmem:[#allocation4 + $0x68] sm:$0xff]  ;;  %v472_v49 = vld [vmem:[#allocation4 + $0x78] sm:$0xff] }
  0x70   : > { %580 = vmatprep.subr.mxu0 %v486_v32  ;;  %663 = vmatprep.subr.mxu1 %v488_v33  ;;  %v469_v50 = vld [vmem:[#allocation4 + $0x60] sm:$0xff]  ;;  %v471_v51 = vld [vmem:[#allocation4 + $0x70] sm:$0xff]  ;;  %v466_v52 = vld [vmem:[#allocation4 + $0x48] sm:$0xff] }
  0x71   : > { %581 = vmatpush1.msra.mxu0 %v485_v34  ;;  %664 = vmatpush1.msra.mxu1 %v487_v35  ;;  %v468_v53 = vld [vmem:[#allocation4 + $0x58] sm:$0xff]  ;;  %v465_v54 = vld [vmem:[#allocation4 + $0x40] sm:$0xff]  ;;  %v467_v55 = vld [vmem:[#allocation4 + $0x50] sm:$0xff] }
  0x72   : > { %582 = vmatprep.subr.mxu0 %v482_v36  ;;  %665 = vmatprep.subr.mxu1 %v484_v37  ;;  %v462_v56 = vld [vmem:[#allocation4 + $0x28] sm:$0xff]  ;;  %v464_v57 = vld [vmem:[#allocation4 + $0x38] sm:$0xff]  ;;  %v461_v58 = vld [vmem:[#allocation4 + $0x20] sm:$0xff] }
  0x73   : > { %583 = vmatpush1.msra.mxu0 %v481_v38  ;;  %666 = vmatpush1.msra.mxu1 %v483_v39  ;;  %v463_v59 = vld [vmem:[#allocation4 + $0x30] sm:$0xff]  ;;  %v458_v60 = vld [vmem:[#allocation4 + $0x8] sm:$0xff]  ;;  %v460_v61 = vld [vmem:[#allocation4 + $0x18] sm:$0xff] }
  0x74   : > { %584 = vmatprep.subr.mxu0 %v478_v40  ;;  %667 = vmatprep.subr.mxu1 %v480_v41  ;;  %v457_v62 = vld [vmem:[#allocation4] sm:$0xff]  ;;  %v459_v63 = vld [vmem:[#allocation4 + $0x10] sm:$0xff]  ;;  %v534_v0 = vld [vmem:[#allocation4 + $0x268] sm:$0xff] }
  0x75   : > { %585 = vmatpush1.msra.mxu0 %v477_v42  ;;  %668 = vmatpush1.msra.mxu1 %v479_v43  ;;  %v536_v1 = vld [vmem:[#allocation4 + $0x278] sm:$0xff]  ;;  %v454_v3 = vld [vmem:[%s6254_s18 + $0x8] sm:$0xfe]  ;;  %v533_v4 = vld [vmem:[#allocation4 + $0x260] sm:$0xff] }
  0x76   : > { %586 = vmatprep.subr.mxu0 %v474_v44  ;;  %669 = vmatprep.subr.mxu1 %v476_v45  ;;  %v6257_v2 = vld [vmem:[%s6254_s18 + $0x18] sm:$0xff]  ;;  %v535_v5 = vld [vmem:[#allocation4 + $0x270] sm:$0xff]  ;;  %v530_v6 = vld [vmem:[#allocation4 + $0x248] sm:$0xff]  ;;  %v547_v12 = vrot.slane %v454_v3, 1 }
  0x77   : > { %587 = vmatpush1.msra.mxu0 %v473_v46  ;;  %670 = vmatpush1.msra.mxu1 %v475_v47  ;;  %v532_v7 = vld [vmem:[#allocation4 + $0x258] sm:$0xff]  ;;  %v6261_v8 = vld [vmem:[%s6254_s18 + $0x10] sm:$0xff]  ;;  %v453_v9 = vld [vmem:[%s6254_s18] sm:$0xfe]  ;;  %v548_v13 = vrot.slane %v6257_v2, 1 }
  0x78   : > { %588 = vmatprep.subr.mxu0 %v470_v48  ;;  %671 = vmatprep.subr.mxu1 %v472_v49  ;;  %v529_v10 = vld [vmem:[#allocation4 + $0x240] sm:$0xff]  ;;  %v531_v11 = vld [vmem:[#allocation4 + $0x250] sm:$0xff]  ;;  %v526_v14 = vld [vmem:[#allocation4 + $0x228] sm:$0xff]  ;;  %v544_v18 = vrot.slane %v453_v9, 1  ;;  %v545_v19 = vrot.slane %v6261_v8, 1 }
  0x79   : > { %589 = vmatpush1.msra.mxu0 %v469_v50  ;;  %672 = vmatpush1.msra.mxu1 %v471_v51  ;;  %v528_v15 = vld [vmem:[#allocation4 + $0x238] sm:$0xff]  ;;  %v525_v16 = vld [vmem:[#allocation4 + $0x220] sm:$0xff]  ;;  %v527_v17 = vld [vmem:[#allocation4 + $0x230] sm:$0xff]  ;;  %v549_v23 = vsel %vm543_vm0, %v547_v12, %v548_v13 }
  0x7a   : > { %590 = vmatprep.subr.mxu0 %v466_v52  ;;  %673 = vmatprep.subr.mxu1 %v468_v53  ;;  %v522_v20 = vld [vmem:[#allocation4 + $0x208] sm:$0xff]  ;;  %v524_v21 = vld [vmem:[#allocation4 + $0x218] sm:$0xff]  ;;  %v521_v22 = vld [vmem:[#allocation4 + $0x200] sm:$0xff]  ;;  %v546_v25 = vsel %vm543_vm0, %v544_v18, %v545_v19 }
  0x7b   : > { %591 = vmatpush1.msra.mxu0 %v465_v54  ;;  %674 = vmatpush1.msra.mxu1 %v467_v55  ;;  %v523_v24 = vld [vmem:[#allocation4 + $0x210] sm:$0xff]  ;;  %v434_v26 = vld [vmem:[#allocation2 + $0x1e8] sm:$0xff]  ;;  %v436_v27 = vld [vmem:[#allocation2 + $0x1f8] sm:$0xff] }
  0x7c   : > { %592 = vmatprep.subr.mxu0 %v462_v56  ;;  %675 = vmatprep.subr.mxu1 %v464_v57  ;;  %v433_v28 = vld [vmem:[#allocation2 + $0x1e0] sm:$0xff]  ;;  %v435_v29 = vld [vmem:[#allocation2 + $0x1f0] sm:$0xff]  ;;  %v430_v30 = vld [vmem:[#allocation2 + $0x1c8] sm:$0xff] }
  0x7d   : > { %593 = vmatpush1.msra.mxu0 %v461_v58  ;;  %676 = vmatpush1.msra.mxu1 %v463_v59  ;;  %v432_v31 = vld [vmem:[#allocation2 + $0x1d8] sm:$0xff]  ;;  %v429_v32 = vld [vmem:[#allocation2 + $0x1c0] sm:$0xff]  ;;  %v431_v33 = vld [vmem:[#allocation2 + $0x1d0] sm:$0xff] }
  0x7e   : > { %594 = vmatprep.subr.mxu0 %v458_v60  ;;  %677 = vmatprep.subr.mxu1 %v460_v61  ;;  %v426_v34 = vld [vmem:[#allocation2 + $0x1a8] sm:$0xff]  ;;  %v428_v35 = vld [vmem:[#allocation2 + $0x1b8] sm:$0xff]  ;;  %v425_v36 = vld [vmem:[#allocation2 + $0x1a0] sm:$0xff] }
  0x7f   : > { %595 = vmatpush1.msra.mxu0 %v457_v62  ;;  %678 = vmatpush1.msra.mxu1 %v459_v63  ;;  %v427_v37 = vld [vmem:[#allocation2 + $0x1b0] sm:$0xff]  ;;  %v422_v38 = vld [vmem:[#allocation2 + $0x188] sm:$0xff]  ;;  %v424_v39 = vld [vmem:[#allocation2 + $0x198] sm:$0xff] }
  0x80   : > { %620 = vmatprep.subr.mxu0 %v534_v0  ;;  %703 = vmatprep.subr.mxu1 %v536_v1  ;;  %v421_v40 = vld [vmem:[#allocation2 + $0x180] sm:$0xff]  ;;  %v423_v41 = vld [vmem:[#allocation2 + $0x190] sm:$0xff]  ;;  %v418_v42 = vld [vmem:[#allocation2 + $0x168] sm:$0xff] }
  0x81   : > { %621 = vmatpush2.msra.mxu0 %v533_v4  ;;  %704 = vmatpush2.msra.mxu1 %v535_v5  ;;  %v420_v43 = vld [vmem:[#allocation2 + $0x178] sm:$0xff]  ;;  %v417_v44 = vld [vmem:[#allocation2 + $0x160] sm:$0xff]  ;;  %v419_v45 = vld [vmem:[#allocation2 + $0x170] sm:$0xff] }
  0x82   : > { %622 = vmatprep.subr.mxu0 %v530_v6  ;;  %705 = vmatprep.subr.mxu1 %v532_v7  ;;  %v414_v46 = vld [vmem:[#allocation2 + $0x148] sm:$0xff]  ;;  %v416_v47 = vld [vmem:[#allocation2 + $0x158] sm:$0xff]  ;;  %v413_v48 = vld [vmem:[#allocation2 + $0x140] sm:$0xff] }
  0x83   : > { %623 = vmatpush2.msra.mxu0 %v529_v10  ;;  %706 = vmatpush2.msra.mxu1 %v531_v11  ;;  %v415_v49 = vld [vmem:[#allocation2 + $0x150] sm:$0xff]  ;;  %v410_v50 = vld [vmem:[#allocation2 + $0x128] sm:$0xff]  ;;  %v412_v51 = vld [vmem:[#allocation2 + $0x138] sm:$0xff] }
  0x84   : > { %624 = vmatprep.subr.mxu0 %v526_v14  ;;  %707 = vmatprep.subr.mxu1 %v528_v15  ;;  %v409_v52 = vld [vmem:[#allocation2 + $0x120] sm:$0xff]  ;;  %v411_v53 = vld [vmem:[#allocation2 + $0x130] sm:$0xff]  ;;  %v406_v54 = vld [vmem:[#allocation2 + $0x108] sm:$0xff] }
  0x85   : > { %625 = vmatpush2.msra.mxu0 %v525_v16  ;;  %708 = vmatpush2.msra.mxu1 %v527_v17  ;;  %v408_v55 = vld [vmem:[#allocation2 + $0x118] sm:$0xff]  ;;  %v405_v56 = vld [vmem:[#allocation2 + $0x100] sm:$0xff]  ;;  %v407_v57 = vld [vmem:[#allocation2 + $0x110] sm:$0xff] }
  0x86   : > { %626 = vmatprep.subr.mxu0 %v522_v20  ;;  %709 = vmatprep.subr.mxu1 %v524_v21  ;;  %v402_v58 = vld [vmem:[#allocation2 + $0xe8] sm:$0xff]  ;;  %v404_v59 = vld [vmem:[#allocation2 + $0xf8] sm:$0xff]  ;;  %v401_v60 = vld [vmem:[#allocation2 + $0xe0] sm:$0xff] }
  0x87   : > { %627 = vmatpush2.msra.mxu0 %v521_v22  ;;  %5553 = vmatprep.mubr.msk.f32.mxu0 %vm557_vm1, %v549_v23  ;;  %v403_v61 = vld [vmem:[#allocation2 + $0xf0] sm:$0xff]  ;;  %v398_v62 = vld [vmem:[#allocation2 + $0xc8] sm:$0xff]  ;;  %v400_v63 = vld [vmem:[#allocation2 + $0xd8] sm:$0xff] }
  0x88   : > { %710 = vmatpush2.msra.mxu1 %v523_v24  ;;  %5556 = vmatprep.mubr.msk.f32.mxu1 %vm557_vm1, %v549_v23  ;;  %v397_v0 = vld [vmem:[#allocation2 + $0xc0] sm:$0xff]  ;;  %v399_v1 = vld [vmem:[#allocation2 + $0xd0] sm:$0xff]  ;;  %v394_v3 = vld [vmem:[#allocation2 + $0xa8] sm:$0xff] }
  0x89   : > { %629 = vmatmul.mubr.f32.vlgmr.msra.gmra.mxu0 %v546_v25  ;;  %712 = vmatmul.mubr.f32.vlgmr.msra.gmra.mxu1 %v546_v25  ;;  %v396_v4 = vld [vmem:[#allocation2 + $0xb8] sm:$0xff]  ;;  %v393_v5 = vld [vmem:[#allocation2 + $0xa0] sm:$0xff]  ;;  %v395_v6 = vld [vmem:[#allocation2 + $0xb0] sm:$0xff] }
  0x8a   : > { %738 = vmatprep.subr.mxu0 %v434_v26  ;;  %821 = vmatprep.subr.mxu1 %v436_v27  ;;  %v390_v7 = vld [vmem:[#allocation2 + $0x88] sm:$0xff]  ;;  %v392_v9 = vld [vmem:[#allocation2 + $0x98] sm:$0xff]  ;;  %v389_v10 = vld [vmem:[#allocation2 + $0x80] sm:$0xff] }
  0x8b   : > { %739 = vmatpush1.msra.mxu0 %v433_v28  ;;  %822 = vmatpush1.msra.mxu1 %v435_v29  ;;  %v391_v11 = vld [vmem:[#allocation2 + $0x90] sm:$0xff]  ;;  %v456_v12 = vld [vmem:[%s6254_s18 + $0x28] sm:$0x3f]  ;;  %v388_v15 = vld [vmem:[#allocation2 + $0x78] sm:$0xff] }
  0x8c   : > { %740 = vmatprep.subr.mxu0 %v430_v30  ;;  %823 = vmatprep.subr.mxu1 %v432_v31  ;;  %v386_v14 = vld [vmem:[#allocation2 + $0x68] sm:$0xff]  ;;  %v385_v16 = vld [vmem:[#allocation2 + $0x60] sm:$0xff]  ;;  %v387_v17 = vld [vmem:[#allocation2 + $0x70] sm:$0xff]  ;;  %v552_v22 = vrot.slane %v456_v12, 1 }
  0x8d   : > { %741 = vmatpush1.msra.mxu0 %v429_v32  ;;  %824 = vmatpush1.msra.mxu1 %v431_v33  ;;  %v455_v18 = vld [vmem:[%s6254_s18 + $0x20] sm:$0x3f]  ;;  %v382_v20 = vld [vmem:[#allocation2 + $0x48] sm:$0xff]  ;;  %v384_v21 = vld [vmem:[#allocation2 + $0x58] sm:$0xff] }
  0x8e   : > { %742 = vmatprep.subr.mxu0 %v426_v34  ;;  %825 = vmatprep.subr.mxu1 %v428_v35  ;;  %v381_v23 = vld [vmem:[#allocation2 + $0x40] sm:$0xff]  ;;  %v383_v24 = vld [vmem:[#allocation2 + $0x50] sm:$0xff]  ;;  %v378_v25 = vld [vmem:[#allocation2 + $0x28] sm:$0xff]  ;;  %v550_v27 = vrot.slane %v455_v18, 1  ;;  %v553_v30 = vsel %vm543_vm0, %v548_v13, %v552_v22 }
  0x8f   : > { %743 = vmatpush1.msra.mxu0 %v425_v36  ;;  %826 = vmatpush1.msra.mxu1 %v427_v37  ;;  %v380_v26 = vld [vmem:[#allocation2 + $0x38] sm:$0xff]  ;;  %v377_v28 = vld [vmem:[#allocation2 + $0x20] sm:$0xff]  ;;  %v379_v29 = vld [vmem:[#allocation2 + $0x30] sm:$0xff] }
  0x90   : > { %744 = vmatprep.subr.mxu0 %v422_v38  ;;  %827 = vmatprep.subr.mxu1 %v424_v39  ;;  %v374_v31 = vld [vmem:[#allocation2 + $0x8] sm:$0xff]  ;;  %v376_v32 = vld [vmem:[#allocation2 + $0x18] sm:$0xff]  ;;  %v551_v33 = vsel %vm543_vm0, %v545_v19, %v550_v27  ;;  %v373_v34 = vld [vmem:[#allocation2] sm:$0xff] }
  0x91   : > { %745 = vmatpush1.msra.mxu0 %v421_v40  ;;  %828 = vmatpush1.msra.mxu1 %v423_v41  ;;  %v375_v35 = vld [vmem:[#allocation2 + $0x10] sm:$0xff]  ;;  %v450_v36 = vld [vmem:[#allocation2 + $0x268] sm:$0xff]  ;;  %v452_v13 = vld [vmem:[#allocation2 + $0x278] sm:$0xff] }
  0x92   : > { %746 = vmatprep.subr.mxu0 %v418_v42  ;;  %829 = vmatprep.subr.mxu1 %v420_v43  ;;  %v449_v37 = vld [vmem:[#allocation2 + $0x260] sm:$0xff]  ;;  %v451_v38 = vld [vmem:[#allocation2 + $0x270] sm:$0xff]  ;;  %v446_v39 = vld [vmem:[#allocation2 + $0x248] sm:$0xff] }
  0x93   : > { %747 = vmatpush1.msra.mxu0 %v417_v44  ;;  %830 = vmatpush1.msra.mxu1 %v419_v45  ;;  %v448_v19 = vld [vmem:[#allocation2 + $0x258] sm:$0xff]  ;;  %v445_v40 = vld [vmem:[#allocation2 + $0x240] sm:$0xff]  ;;  %v447_v41 = vld [vmem:[#allocation2 + $0x250] sm:$0xff] }
  0x94   : > { %748 = vmatprep.subr.mxu0 %v414_v46  ;;  %831 = vmatprep.subr.mxu1 %v416_v47  ;;  %v442_v42 = vld [vmem:[#allocation2 + $0x228] sm:$0xff]  ;;  %v444_v43 = vld [vmem:[#allocation2 + $0x238] sm:$0xff]  ;;  %v441_v44 = vld [vmem:[#allocation2 + $0x220] sm:$0xff] }
  0x95   : > { %749 = vmatpush1.msra.mxu0 %v413_v48  ;;  %832 = vmatpush1.msra.mxu1 %v415_v49  ;;  %v443_v45 = vld [vmem:[#allocation2 + $0x230] sm:$0xff]  ;;  %v438_v46 = vld [vmem:[#allocation2 + $0x208] sm:$0xff]  ;;  %v440_v47 = vld [vmem:[#allocation2 + $0x218] sm:$0xff] }
  0x96   : > { %750 = vmatprep.subr.mxu0 %v410_v50  ;;  %833 = vmatprep.subr.mxu1 %v412_v51  ;;  %v437_v48 = vld [vmem:[#allocation2 + $0x200] sm:$0xff]  ;;  %v368_v49 = vld [vmem:[%s6254_s18 + $0x8] sm:$0xff]  ;;  %v439_v50 = vld [vmem:[#allocation2 + $0x210] sm:$0xff] }
  0x97   : > { %751 = vmatpush1.msra.mxu0 %v409_v52  ;;  %834 = vmatpush1.msra.mxu1 %v411_v53  ;;  %v367_v51 = vld [vmem:[%s6254_s18] sm:$0xff]  ;;  %v969_v52 = vld [vmem:[#allocation6 + $0x1e8] sm:$0xff]  ;;  %v971_v53 = vld [vmem:[#allocation6 + $0x1f8] sm:$0xff] }
  0x98   : > { %752 = vmatprep.subr.mxu0 %v406_v54  ;;  %835 = vmatprep.subr.mxu1 %v408_v55  ;;  %v968_v54 = vld [vmem:[#allocation6 + $0x1e0] sm:$0xff]  ;;  %v970_v55 = vld [vmem:[#allocation6 + $0x1f0] sm:$0xff]  ;;  %v949_v12 = vld [vmem:[#allocation6 + $0x148] sm:$0xff] }
  0x99   : > { %753 = vmatpush1.msra.mxu0 %v405_v56  ;;  %836 = vmatpush1.msra.mxu1 %v407_v57  ;;  %v965_v56 = vld [vmem:[#allocation6 + $0x1c8] sm:$0xff]  ;;  %v967_v57 = vld [vmem:[#allocation6 + $0x1d8] sm:$0xff] }
  0x9a   : > { %754 = vmatprep.subr.mxu0 %v402_v58  ;;  %837 = vmatprep.subr.mxu1 %v404_v59  ;;  %v964_v58 = vld [vmem:[#allocation6 + $0x1c0] sm:$0xff]  ;;  %v966_v59 = vld [vmem:[#allocation6 + $0x1d0] sm:$0xff]  ;;  %v947_v18 = vld [vmem:[#allocation6 + $0x138] sm:$0xff] }
  0x9b   : > { %755 = vmatpush1.msra.mxu0 %v401_v60  ;;  %838 = vmatpush1.msra.mxu1 %v403_v61  ;;  %v961_v60 = vld [vmem:[#allocation6 + $0x1a8] sm:$0xff]  ;;  %v963_v61 = vld [vmem:[#allocation6 + $0x1b8] sm:$0xff] }
  0x9c   : > { %756 = vmatprep.subr.mxu0 %v398_v62  ;;  %839 = vmatprep.subr.mxu1 %v400_v63  ;;  %v960_v62 = vld [vmem:[#allocation6 + $0x1a0] sm:$0xff]  ;;  %v962_v63 = vld [vmem:[#allocation6 + $0x1b0] sm:$0xff] }
  0x9d   : > { %757 = vmatpush1.msra.mxu0 %v397_v0  ;;  %840 = vmatpush1.msra.mxu1 %v399_v1  ;;  %v957_v0 = vld [vmem:[#allocation6 + $0x188] sm:$0xff]  ;;  %v959_v1 = vld [vmem:[#allocation6 + $0x198] sm:$0xff] }
  0x9e   : > { %758 = vmatprep.subr.mxu0 %v394_v3  ;;  %841 = vmatprep.subr.mxu1 %v396_v4  ;;  %v372_v3 = vld [vmem:[%s6254_s18 + $0x28] sm:$0x1f]  ;;  %v956_v4 = vld [vmem:[#allocation6 + $0x180] sm:$0xff] }
  0x9f   : > { %759 = vmatpush1.msra.mxu0 %v393_v5  ;;  %842 = vmatpush1.msra.mxu1 %v395_v6  ;;  %v958_v5 = vld [vmem:[#allocation6 + $0x190] sm:$0xff]  ;;  %v371_v6 = vld [vmem:[%s6254_s18 + $0x20] sm:$0x1f] }
  0xa0   : > { %760 = vmatprep.subr.mxu0 %v390_v7  ;;  %843 = vmatprep.subr.mxu1 %v392_v9  ;;  %v953_v7 = vld [vmem:[#allocation6 + $0x168] sm:$0xff]  ;;  %v955_v9 = vld [vmem:[#allocation6 + $0x178] sm:$0xff] }
  0xa1   : > { %761 = vmatpush1.msra.mxu0 %v389_v10  ;;  %844 = vmatpush1.msra.mxu1 %v391_v11  ;;  %v952_v10 = vld [vmem:[#allocation6 + $0x160] sm:$0xff]  ;;  %v954_v11 = vld [vmem:[#allocation6 + $0x170] sm:$0xff] }
  0xa2   : > { %762 = vmatprep.subr.mxu0 %v386_v14  ;;  %845 = vmatprep.subr.mxu1 %v388_v15  ;;  %v951_v14 = vld [vmem:[#allocation6 + $0x158] sm:$0xff]  ;;  %v948_v15 = vld [vmem:[#allocation6 + $0x140] sm:$0xff] }
  0xa3   : > { %763 = vmatpush1.msra.mxu0 %v385_v16  ;;  %846 = vmatpush1.msra.mxu1 %v387_v17  ;;  %v950_v16 = vld [vmem:[#allocation6 + $0x150] sm:$0xff]  ;;  %v945_v17 = vld [vmem:[#allocation6 + $0x128] sm:$0xff] }
  0xa4   : > { %764 = vmatprep.subr.mxu0 %v382_v20  ;;  %847 = vmatprep.subr.mxu1 %v384_v21  ;;  %v944_v20 = vld [vmem:[#allocation6 + $0x120] sm:$0xff]  ;;  %v946_v21 = vld [vmem:[#allocation6 + $0x130] sm:$0xff] }
  0xa5   : > { %765 = vmatpush1.msra.mxu0 %v381_v23  ;;  %848 = vmatpush1.msra.mxu1 %v383_v24  ;;  %v943_v23 = vld [vmem:[#allocation6 + $0x118] sm:$0xff]  ;;  %v940_v24 = vld [vmem:[#allocation6 + $0x100] sm:$0xff] }
  0xa6   : > { %766 = vmatprep.subr.mxu0 %v378_v25  ;;  %849 = vmatprep.subr.mxu1 %v380_v26  ;;  %v942_v25 = vld [vmem:[#allocation6 + $0x110] sm:$0xff]  ;;  %v937_v26 = vld [vmem:[#allocation6 + $0xe8] sm:$0xff] }
  0xa7   : > { %767 = vmatpush1.msra.mxu0 %v377_v28  ;;  %850 = vmatpush1.msra.mxu1 %v379_v29  ;;  %v936_v28 = vld [vmem:[#allocation6 + $0xe0] sm:$0xff]  ;;  %v938_v29 = vld [vmem:[#allocation6 + $0xf0] sm:$0xff] }
  0xa8   : > { %5554 = vmatprep.mubr.msk.f32.mxu0 %vm557_vm1, %v553_v30  ;;  %5557 = vmatprep.mubr.msk.f32.mxu1 %vm557_vm1, %v553_v30  ;;  %v933_v30 = vld [vmem:[#allocation6 + $0xc8] sm:$0xff] }
  0xa9   : > { %768 = vmatprep.subr.mxu0 %v374_v31  ;;  %851 = vmatprep.subr.mxu1 %v376_v32  ;;  %v935_v31 = vld [vmem:[#allocation6 + $0xd8] sm:$0xff]  ;;  %v932_v32 = vld [vmem:[#allocation6 + $0xc0] sm:$0xff] }
  0xaa   : > { %635 = vmatmul.mubr.f32.gmra.mxu0 %v551_v33  ;;  %718 = vmatmul.mubr.f32.gmra.mxu1 %v551_v33  ;;  %v934_v33 = vld [vmem:[#allocation6 + $0xd0] sm:$0xff] }
  0xab   : > { %769 = vmatpush1.msra.mxu0 %v373_v34  ;;  %852 = vmatpush1.msra.mxu1 %v375_v35  ;;  %v929_v34 = vld [vmem:[#allocation6 + $0xa8] sm:$0xff]  ;;  %v931_v35 = vld [vmem:[#allocation6 + $0xb8] sm:$0xff] }
  0xac   : > { %794 = vmatprep.subr.mxu0 %v450_v36  ;;  %877 = vmatprep.subr.mxu1 %v452_v13  ;;  %v928_v36 = vld [vmem:[#allocation6 + $0xa0] sm:$0xff]  ;;  %v930_v13 = vld [vmem:[#allocation6 + $0xb0] sm:$0xff] }
  0xad   : > { %795 = vmatpush2.msra.mxu0 %v449_v37  ;;  %878 = vmatpush2.msra.mxu1 %v451_v38  ;;  %v925_v37 = vld [vmem:[#allocation6 + $0x88] sm:$0xff]  ;;  %v927_v38 = vld [vmem:[#allocation6 + $0x98] sm:$0xff] }
  0xae   : > { %5555 = vmatprep.mubr.msk.f32.mxu0 %vm557_vm1, %v552_v22  ;;  %5558 = vmatprep.mubr.msk.f32.mxu1 %vm557_vm1, %v552_v22  ;;  %v941_v22 = vld [vmem:[#allocation6 + $0x108] sm:$0xff] }
  0xaf   : > { %796 = vmatprep.subr.mxu0 %v446_v39  ;;  %879 = vmatprep.subr.mxu1 %v448_v19  ;;  %v924_v39 = vld [vmem:[#allocation6 + $0x80] sm:$0xff]  ;;  %v926_v19 = vld [vmem:[#allocation6 + $0x90] sm:$0xff] }
  0xb0   : > { %641 = vmatmul.mubr.f32.gmra.mxu0 %v550_v27  ;;  %724 = vmatmul.mubr.f32.gmra.mxu1 %v550_v27  ;;  %v939_v27 = vld [vmem:[#allocation6 + $0xf8] sm:$0xff] }
  0xb1   : > { %797 = vmatpush2.msra.mxu0 %v445_v40  ;;  %880 = vmatpush2.msra.mxu1 %v447_v41  ;;  %v921_v40 = vld [vmem:[#allocation6 + $0x68] sm:$0xff]  ;;  %v923_v41 = vld [vmem:[#allocation6 + $0x78] sm:$0xff] }
  0xb2   : > { %798 = vmatprep.subr.mxu0 %v442_v42  ;;  %881 = vmatprep.subr.mxu1 %v444_v43  ;;  %v920_v42 = vld [vmem:[#allocation6 + $0x60] sm:$0xff]  ;;  %v922_v43 = vld [vmem:[#allocation6 + $0x70] sm:$0xff] }
  0xb3   : > { %799 = vmatpush2.msra.mxu0 %v441_v44  ;;  %882 = vmatpush2.msra.mxu1 %v443_v45  ;;  %v917_v44 = vld [vmem:[#allocation6 + $0x48] sm:$0xff]  ;;  %v919_v45 = vld [vmem:[#allocation6 + $0x58] sm:$0xff] }
  0xb4   : > { %800 = vmatprep.subr.mxu0 %v438_v46  ;;  %883 = vmatprep.subr.mxu1 %v440_v47  ;;  %v916_v46 = vld [vmem:[#allocation6 + $0x40] sm:$0xff]  ;;  %v918_v47 = vld [vmem:[#allocation6 + $0x50] sm:$0xff] }
  0xb5   : > { %801 = vmatpush2.msra.mxu0 %v437_v48  ;;  %5559 = vmatprep.mubr.msk.f32.mxu0 %vm557_vm1, %v368_v49  ;;  %v913_v48 = vld [vmem:[#allocation6 + $0x28] sm:$0xff] }
  0xb6   : > { %884 = vmatpush2.msra.mxu1 %v439_v50  ;;  %5562 = vmatprep.mubr.msk.f32.mxu1 %vm557_vm1, %v368_v49  ;;  %v915_v49 = vld [vmem:[#allocation6 + $0x38] sm:$0xff]  ;;  %v912_v50 = vld [vmem:[#allocation6 + $0x20] sm:$0xff] }
  0xb7   : > { %803 = vmatmul.mubr.f32.vlgmr.msra.gmra.mxu0 %v367_v51  ;;  %886 = vmatmul.mubr.f32.vlgmr.msra.gmra.mxu1 %v367_v51  ;;  %v914_v51 = vld [vmem:[#allocation6 + $0x30] sm:$0xff] }
  0xb8   : > { %1012 = vmatprep.subr.mxu0 %v969_v52  ;;  %1095 = vmatprep.subr.mxu1 %v971_v53  ;;  %v909_v52 = vld [vmem:[#allocation6 + $0x8] sm:$0xff]  ;;  %v911_v53 = vld [vmem:[#allocation6 + $0x18] sm:$0xff] }
  0xb9   : > { %1013 = vmatpush1.msra.mxu0 %v968_v54  ;;  %1096 = vmatpush1.msra.mxu1 %v970_v55  ;;  %v908_v54 = vld [vmem:[#allocation6] sm:$0xff]  ;;  %v910_v55 = vld [vmem:[#allocation6 + $0x10] sm:$0xff] }
  0xba   : > { %1014 = vmatprep.subr.mxu0 %v965_v56  ;;  %1097 = vmatprep.subr.mxu1 %v967_v57  ;;  %v985_v56 = vld [vmem:[#allocation6 + $0x268] sm:$0xff]  ;;  %v987_v57 = vld [vmem:[#allocation6 + $0x278] sm:$0xff] }
  0xbb   : > { %5560 = vmatprep.mubr.msk.f32.mxu0 %vm557_vm1, %v6257_v2  ;;  %5563 = vmatprep.mubr.msk.f32.mxu1 %vm557_vm1, %v6257_v2 }
  0xbc   : > { %1015 = vmatpush1.msra.mxu0 %v964_v58  ;;  %1098 = vmatpush1.msra.mxu1 %v966_v59  ;;  %v905_v58 = vld [vmem:[%s6254_s18 + $0x8] sm:$0xfc]  ;;  %v984_v59 = vld [vmem:[#allocation6 + $0x260] sm:$0xff] }
  0xbd   : > { %809 = vmatmul.mubr.f32.gmra.mxu0 %v6261_v8  ;;  %892 = vmatmul.mubr.f32.gmra.mxu1 %v6261_v8 }
  0xbe   : > { %1016 = vmatprep.subr.mxu0 %v961_v60  ;;  %1099 = vmatprep.subr.mxu1 %v963_v61  ;;  %v986_v60 = vld [vmem:[#allocation6 + $0x270] sm:$0xff]  ;;  %v981_v61 = vld [vmem:[#allocation6 + $0x248] sm:$0xff] }
  0xbf   : > { %1017 = vmatpush1.msra.mxu0 %v960_v62  ;;  %1100 = vmatpush1.msra.mxu1 %v962_v63  ;;  %v983_v62 = vld [vmem:[#allocation6 + $0x258] sm:$0xff]  ;;  %v904_v63 = vld [vmem:[%s6254_s18] sm:$0xfc] }
  0xc0   : > { %1018 = vmatprep.subr.mxu0 %v957_v0  ;;  %1101 = vmatprep.subr.mxu1 %v959_v1  ;;  %v980_v0 = vld [vmem:[#allocation6 + $0x240] sm:$0xff]  ;;  %v982_v1 = vld [vmem:[#allocation6 + $0x250] sm:$0xff] }
  0xc1   : > { %5561 = vmatprep.mubr.msk.f32.mxu0 %vm557_vm1, %v372_v3  ;;  %5564 = vmatprep.mubr.msk.f32.mxu1 %vm557_vm1, %v372_v3  ;;  %v996_v3 = vrot.slane %v905_v58, 2 }
  0xc2   : > { %1019 = vmatpush1.msra.mxu0 %v956_v4  ;;  %1102 = vmatpush1.msra.mxu1 %v958_v5  ;;  %v997_v4 = vrot.slane %v6257_v2, 2  ;;  %v907_v5 = vld [vmem:[%s6254_s18 + $0x28] sm:$0x7f]  ;;  %v906_v2 = vld [vmem:[%s6254_s18 + $0x20] sm:$0x7f] }
  0xc3   : > { %815 = vmatmul.mubr.f32.gmra.mxu0 %v371_v6  ;;  %898 = vmatmul.mubr.f32.gmra.mxu1 %v371_v6  ;;  %v977_v6 = vld [vmem:[#allocation6 + $0x228] sm:$0xff] }
  0xc4   : > { %1020 = vmatprep.subr.mxu0 %v953_v7  ;;  %1103 = vmatprep.subr.mxu1 %v955_v9  ;;  %v979_v7 = vld [vmem:[#allocation6 + $0x238] sm:$0xff]  ;;  %v976_v9 = vld [vmem:[#allocation6 + $0x220] sm:$0xff] }
  0xc5   : > { %1021 = vmatpush1.msra.mxu0 %v952_v10  ;;  %1104 = vmatpush1.msra.mxu1 %v954_v11  ;;  %v978_v10 = vld [vmem:[#allocation6 + $0x230] sm:$0xff]  ;;  %v993_v11 = vrot.slane %v904_v63, 2 }
  0xc6   : > { %1022 = vmatprep.subr.mxu0 %v949_v12  ;;  %1105 = vmatprep.subr.mxu1 %v951_v14  ;;  %v994_v12 = vrot.slane %v6261_v8, 2  ;;  %v973_v14 = vld [vmem:[#allocation6 + $0x208] sm:$0xff] }
  0xc7   : > { %1023 = vmatpush1.msra.mxu0 %v948_v15  ;;  %1106 = vmatpush1.msra.mxu1 %v950_v16  ;;  %v975_v15 = vld [vmem:[#allocation6 + $0x218] sm:$0xff]  ;;  %v1001_v16 = vrot.slane %v907_v5, 2 }
  0xc8   : > { %1024 = vmatprep.subr.mxu0 %v945_v17  ;;  %1107 = vmatprep.subr.mxu1 %v947_v18  ;;  %v972_v17 = vld [vmem:[#allocation6 + $0x200] sm:$0xff]  ;;  %v998_v18 = vsel %vm992_vm2, %v996_v3, %v997_v4 }
  0xc9   : > { %1025 = vmatpush1.msra.mxu0 %v944_v20  ;;  %1108 = vmatpush1.msra.mxu1 %v946_v21  ;;  %v974_v20 = vld [vmem:[#allocation6 + $0x210] sm:$0xff]  ;;  %v995_v21 = vsel %vm992_vm2, %v993_v11, %v994_v12  ;;  %v1002_v8 = vsel %vm992_vm2, %v997_v4, %v1001_v16 }
  0xca   : > { %1026 = vmatprep.subr.mxu0 %v941_v22  ;;  %1109 = vmatprep.subr.mxu1 %v943_v23  ;;  %v999_v22 = vrot.slane %v906_v2, 2 }
  0xcb   : > { %1027 = vmatpush1.msra.mxu0 %v940_v24  ;;  %1110 = vmatpush1.msra.mxu1 %v942_v25  ;;  %v1239_v24 = vld [vmem:[#allocation7 + $0xf8] sm:$0xff] }
  0xcc   : > { %1028 = vmatprep.subr.mxu0 %v937_v26  ;;  %1111 = vmatprep.subr.mxu1 %v939_v27  ;;  %v1000_v23 = vsel %vm992_vm2, %v994_v12, %v999_v22  ;;  %v1223_v25 = vld [vmem:[#allocation7 + $0x78] sm:$0xff]  ;;  %v1238_v26 = vld [vmem:[#allocation7 + $0xf0] sm:$0xff] }
  0xcd   : > { %1029 = vmatpush1.msra.mxu0 %v936_v28  ;;  %1112 = vmatpush1.msra.mxu1 %v938_v29  ;;  %v1222_v27 = vld [vmem:[#allocation7 + $0x70] sm:$0xff]  ;;  %v1237_v28 = vld [vmem:[#allocation7 + $0xe8] sm:$0xff] }
  0xce   : > { %1030 = vmatprep.subr.mxu0 %v933_v30  ;;  %1113 = vmatprep.subr.mxu1 %v935_v31  ;;  %v1221_v29 = vld [vmem:[#allocation7 + $0x68] sm:$0xff]  ;;  %v1236_v30 = vld [vmem:[#allocation7 + $0xe0] sm:$0xff] }
  0xcf   : > { %1031 = vmatpush1.msra.mxu0 %v932_v32  ;;  %1114 = vmatpush1.msra.mxu1 %v934_v33  ;;  %v1220_v31 = vld [vmem:[#allocation7 + $0x60] sm:$0xff]  ;;  %v1235_v32 = vld [vmem:[#allocation7 + $0xd8] sm:$0xff] }
  0xd0   : > { %1032 = vmatprep.subr.mxu0 %v929_v34  ;;  %1115 = vmatprep.subr.mxu1 %v931_v35  ;;  %v1219_v33 = vld [vmem:[#allocation7 + $0x58] sm:$0xff]  ;;  %v1234_v34 = vld [vmem:[#allocation7 + $0xd0] sm:$0xff] }
  0xd1   : > { %1033 = vmatpush1.msra.mxu0 %v928_v36  ;;  %1116 = vmatpush1.msra.mxu1 %v930_v13  ;;  %v1218_v35 = vld [vmem:[#allocation7 + $0x50] sm:$0xff]  ;;  %v1233_v36 = vld [vmem:[#allocation7 + $0xc8] sm:$0xff] }
  0xd2   : > { %1034 = vmatprep.subr.mxu0 %v925_v37  ;;  %1117 = vmatprep.subr.mxu1 %v927_v38  ;;  %v1217_v13 = vld [vmem:[#allocation7 + $0x48] sm:$0xff]  ;;  %v1232_v37 = vld [vmem:[#allocation7 + $0xc0] sm:$0xff] }
  0xd3   : > { %1035 = vmatpush1.msra.mxu0 %v924_v39  ;;  %1118 = vmatpush1.msra.mxu1 %v926_v19  ;;  %v1216_v38 = vld [vmem:[#allocation7 + $0x40] sm:$0xff]  ;;  %v1231_v39 = vld [vmem:[#allocation7 + $0xb8] sm:$0xff] }
  0xd4   : > { %1036 = vmatprep.subr.mxu0 %v921_v40  ;;  %1119 = vmatprep.subr.mxu1 %v923_v41  ;;  %v1215_v19 = vld [vmem:[#allocation7 + $0x38] sm:$0xff]  ;;  %v1230_v40 = vld [vmem:[#allocation7 + $0xb0] sm:$0xff] }
  0xd5   : > { %1037 = vmatpush1.msra.mxu0 %v920_v42  ;;  %1120 = vmatpush1.msra.mxu1 %v922_v43  ;;  %v1214_v41 = vld [vmem:[#allocation7 + $0x30] sm:$0xff]  ;;  %v1229_v42 = vld [vmem:[#allocation7 + $0xa8] sm:$0xff] }
  0xd6   : > { %1038 = vmatprep.subr.mxu0 %v917_v44  ;;  %1121 = vmatprep.subr.mxu1 %v919_v45  ;;  %v1213_v43 = vld [vmem:[#allocation7 + $0x28] sm:$0xff]  ;;  %v1228_v44 = vld [vmem:[#allocation7 + $0xa0] sm:$0xff] }
  0xd7   : > { %1039 = vmatpush1.msra.mxu0 %v916_v46  ;;  %1122 = vmatpush1.msra.mxu1 %v918_v47  ;;  %v1212_v45 = vld [vmem:[#allocation7 + $0x20] sm:$0xff]  ;;  %v1227_v46 = vld [vmem:[#allocation7 + $0x98] sm:$0xff] }
  0xd8   : > { %1040 = vmatprep.subr.mxu0 %v913_v48  ;;  %1123 = vmatprep.subr.mxu1 %v915_v49  ;;  %v1211_v47 = vld [vmem:[#allocation7 + $0x18] sm:$0xff]  ;;  %v1226_v48 = vld [vmem:[#allocation7 + $0x90] sm:$0xff] }
  0xd9   : > { %1041 = vmatpush1.msra.mxu0 %v912_v50  ;;  %1124 = vmatpush1.msra.mxu1 %v914_v51  ;;  %v1210_v49 = vld [vmem:[#allocation7 + $0x10] sm:$0xff]  ;;  %v1225_v50 = vld [vmem:[#allocation7 + $0x88] sm:$0xff] }
  0xda   : > { %1042 = vmatprep.subr.mxu0 %v909_v52  ;;  %1125 = vmatprep.subr.mxu1 %v911_v53  ;;  %v1209_v51 = vld [vmem:[#allocation7 + $0x8] sm:$0xff]  ;;  %v1224_v52 = vld [vmem:[#allocation7 + $0x80] sm:$0xff] }
  0xdb   : > { %1043 = vmatpush1.msra.mxu0 %v908_v54  ;;  %1126 = vmatpush1.msra.mxu1 %v910_v55  ;;  %v1208_v53 = vld [vmem:[#allocation7] sm:$0xff] }
  0xdc   : > { %1068 = vmatprep.subr.mxu0 %v985_v56  ;;  %1151 = vmatprep.subr.mxu1 %v987_v57 }
  0xdd   : > { %1069 = vmatpush2.msra.mxu0 %v984_v59  ;;  %1152 = vmatpush2.msra.mxu1 %v986_v60 }
  0xde   : > { %1070 = vmatprep.subr.mxu0 %v981_v61  ;;  %1153 = vmatprep.subr.mxu1 %v983_v62 }
  0xdf   : > { %1071 = vmatpush2.msra.mxu0 %v980_v0  ;;  %1154 = vmatpush2.msra.mxu1 %v982_v1 }
  0xe0   : > { %1072 = vmatprep.subr.mxu0 %v977_v6  ;;  %1155 = vmatprep.subr.mxu1 %v979_v7 }
  0xe1   : > { %1073 = vmatpush2.msra.mxu0 %v976_v9  ;;  %1156 = vmatpush2.msra.mxu1 %v978_v10 }
  0xe2   : > { %1074 = vmatprep.subr.mxu0 %v973_v14  ;;  %1157 = vmatprep.subr.mxu1 %v975_v15 }
  0xe3   : > { %1075 = vmatpush2.msra.mxu0 %v972_v17  ;;  %5565 = vmatprep.mubr.msk.f32.mxu0 %vm557_vm1, %v998_v18 }
  0xe4   : > { %1158 = vmatpush2.msra.mxu1 %v974_v20  ;;  %5568 = vmatprep.mubr.msk.f32.mxu1 %vm557_vm1, %v998_v18 }
  0xe5   : > { %1077 = vmatmul.mubr.f32.vlgmr.msra.gmra.mxu0 %v995_v21  ;;  %1160 = vmatmul.mubr.f32.vlgmr.msra.gmra.mxu1 %v995_v21 }
  0xe6   : > { %5566 = vmatprep.mubr.msk.f32.mxu0 %vm557_vm1, %v1002_v8  ;;  %5569 = vmatprep.mubr.msk.f32.mxu1 %vm557_vm1, %v1002_v8 }
  0xe7   : > { %5743 = vmatprep.subr.mxu0 %v1239_v24 }
  0xe8   : > { %5744 = vmatpush3.msra.mxu0 %v1223_v25 }
  0xe9   : > { %1083 = vmatmul.mubr.f32.gmra.mxu0 %v1000_v23  ;;  %1166 = vmatmul.mubr.f32.gmra.mxu1 %v1000_v23 }
  0xea   : > { %5567 = vmatprep.mubr.msk.f32.mxu0 %vm557_vm1, %v1001_v16  ;;  %5570 = vmatprep.mubr.msk.f32.mxu1 %vm557_vm1, %v1001_v16 }
  0xeb   : > { %5745 = vmatprep.subr.mxu0 %v1238_v26 }
  0xec   : > { %5746 = vmatpush3.msra.mxu0 %v1222_v27 }
  0xed   : > { %1089 = vmatmul.mubr.f32.gmra.mxu0 %v999_v22  ;;  %1172 = vmatmul.mubr.f32.gmra.mxu1 %v999_v22 }
  0xee   : > { %5747 = vmatprep.subr.mxu0 %v1237_v28 }
  0xef   : > { %5748 = vmatpush3.msra.mxu0 %v1221_v29 }
  0xf0   : > { %5749 = vmatprep.subr.mxu0 %v1236_v30 }
  0xf1   : > { %5750 = vmatpush3.msra.mxu0 %v1220_v31 }
  0xf2   : > { %5751 = vmatprep.subr.mxu0 %v1235_v32 }
  0xf3   : > { %5752 = vmatpush3.msra.mxu0 %v1219_v33 }
  0xf4   : > { %5753 = vmatprep.subr.mxu0 %v1234_v34 }
  0xf5   : > { %5754 = vmatpush3.msra.mxu0 %v1218_v35 }
  0xf6   : > { %5755 = vmatprep.subr.mxu0 %v1233_v36 }
  0xf7   : > { %5756 = vmatpush3.msra.mxu0 %v1217_v13 }
  0xf8   : > { %5757 = vmatprep.subr.mxu0 %v1232_v37 }
  0xf9   : > { %5758 = vmatpush3.msra.mxu0 %v1216_v38 }
  0xfa   : > { %5759 = vmatprep.subr.mxu0 %v1231_v39 }
  0xfb   : > { %5760 = vmatpush3.msra.mxu0 %v1215_v19 }
  0xfc   : > { %5761 = vmatprep.subr.mxu0 %v1230_v40 }
  0xfd   : > { %5762 = vmatpush3.msra.mxu0 %v1214_v41 }
  0xfe   : > { %5763 = vmatprep.subr.mxu0 %v1229_v42 }
  0xff   : > { %5764 = vmatpush3.msra.mxu0 %v1213_v43 }
 0x100   : > { %5765 = vmatprep.subr.mxu0 %v1228_v44 }
 0x101   : > { %5766 = vmatpush3.msra.mxu0 %v1212_v45 }
 0x102   : > { %5767 = vmatprep.subr.mxu0 %v1227_v46 }
 0x103   : > { %5768 = vmatpush3.msra.mxu0 %v1211_v47 }
 0x104   : > { %5769 = vmatprep.subr.mxu0 %v1226_v48 }
 0x105   : > { %5770 = vmatpush3.msra.mxu0 %v1210_v49 }
 0x106   : > { %5771 = vmatprep.subr.mxu0 %v1225_v50 }
 0x107   : > { %5772 = vmatpush3.msra.mxu0 %v1209_v51 }
 0x108   : > { %5773 = vmatprep.subr.mxu0 %v1224_v52 }
 0x109   : > { %5774 = vmatpush3.msra.mxu0 %v1208_v53 }
 0x149   : > { %v630_v54 = vpop.f32.mrf.mxu0  ;;  %v713_v55 = vpop.f32.mrf.mxu1 }
 0x14b   : > { %v632_v56 = vpop.f32.mrf.mxu0  ;;  %v715_v57 = vpop.f32.mrf.mxu1 }
 0x16a   : > { %v636_v58 = vpop.f32.mrf.mxu0  ;;  %v719_v59 = vpop.f32.mrf.mxu1 }
 0x16c   : > { %v638_v60 = vpop.f32.mrf.mxu0  ;;  %v721_v61 = vpop.f32.mrf.mxu1 }
 0x170   : > { %v642_v62 = vpop.f32.mrf.mxu0  ;;  %v725_v63 = vpop.f32.mrf.mxu1 }
 0x172   : > { %v644_v0 = vpop.f32.mrf.mxu0  ;;  %v727_v1 = vpop.f32.mrf.mxu1 }
 0x177   : > { %v804_v3 = vpop.f32.mrf.mxu0  ;;  %v887_v4 = vpop.f32.mrf.mxu1 }
 0x178   : > { %v805_v2 = vadd.f32 %v804_v3, %v630_v54  ;;  %v888_v17 = vadd.f32 %v887_v4, %v713_v55 }
 0x179   : > { %v806_v5 = vpop.f32.mrf.mxu0  ;;  %v889_v6 = vpop.f32.mrf.mxu1 }
 0x17a   : > { %v807_v21 = vadd.f32 %v806_v5, %v632_v56  ;;  %v890_v22 = vadd.f32 %v889_v6, %v715_v57 }
 0x17d   : > { %v810_v7 = vpop.f32.mrf.mxu0  ;;  %v893_v9 = vpop.f32.mrf.mxu1 }
 0x17e   : > { %v811_v26 = vadd.f32 %v810_v7, %v636_v58  ;;  %v894_v29 = vadd.f32 %v893_v9, %v719_v59 }
 0x17f   : > { %v812_v10 = vpop.f32.mrf.mxu0  ;;  %v895_v11 = vpop.f32.mrf.mxu1 }
 0x180   : > { %v813_v30 = vadd.f32 %v812_v10, %v638_v60  ;;  %v896_v35 = vadd.f32 %v895_v11, %v721_v61 }
 0x183   : > { %v816_v12 = vpop.f32.mrf.mxu0  ;;  %v899_v14 = vpop.f32.mrf.mxu1 }
 0x184   : > { %v817_v38 = vadd.f32 %v816_v12, %v642_v62  ;;  %v900_v41 = vadd.f32 %v899_v14, %v725_v63 }
 0x185   : > { %v818_v15 = vpop.f32.mrf.mxu0  ;;  %v901_v16 = vpop.f32.mrf.mxu1 }
 0x186   : > { %v819_v45 = vadd.f32 %v818_v15, %v644_v0  ;;  %v902_v55 = vadd.f32 %v901_v16, %v727_v1 }
 0x1a5   : > { %v1078_v18 = vpop.f32.mrf.mxu0  ;;  %v1161_v20 = vpop.f32.mrf.mxu1 }
 0x1a6   : > { %v1178_v8 = vadd.f32 %v1078_v18, %v805_v2  ;;  %v1180_v23 = vadd.f32 %v1161_v20, %v888_v17 }
 0x1a7   : > { %v1080_v24 = vpop.f32.mrf.mxu0  ;;  %v1163_v25 = vpop.f32.mrf.mxu1 }
 0x1a8   : > { %v1179_v27 = vadd.f32 %v1080_v24, %v807_v21  ;;  %v1181_v28 = vadd.f32 %v1163_v25, %v890_v22  ;;  %v1190_v31 = vmul.f32 %v1178_v8, %v1178_v8  ;;  %v1196_v32 = vmul.f32 %v1180_v23, %v1180_v23 }
 0x1a9   : > { %v1084_v33 = vpop.f32.mrf.mxu0  ;;  %v1167_v34 = vpop.f32.mrf.mxu1 }
 0x1aa   : > { %v1191_v36 = vmul.f32 %v1179_v27, %v1179_v27  ;;  %v1197_v13 = vmul.f32 %v1181_v28, %v1181_v28  ;;  %v1182_v37 = vadd.f32 %v1084_v33, %v811_v26  ;;  %v1184_v39 = vadd.f32 %v1167_v34, %v894_v29 }
 0x1ab   : > { %v1086_v19 = vpop.f32.mrf.mxu0  ;;  %v1169_v40 = vpop.f32.mrf.mxu1  ;;  %v1202_v46 = vadd.f32 %v1196_v32, %v1190_v31 }
 0x1ac   : > { %v1183_v42 = vadd.f32 %v1086_v19, %v813_v30  ;;  %v1185_v43 = vadd.f32 %v1169_v40, %v896_v35  ;;  %v1203_v44 = vadd.f32 %v1197_v13, %v1191_v36  ;;  %v1192_v47 = vmul.f32 %v1182_v37, %v1182_v37  ;;  %v1358_v35 = vld [vmem:[#allocation9 + $0x10] sm:$0x7f]  ;;  %v1357_v13 = vld [vmem:[#allocation9 + $0x8] sm:$0xff]  ;;  %v1356_v37 = vld [vmem:[#allocation9] sm:$0xff] }
 0x1ad   : > { %v1198_v48 = vmul.f32 %v1184_v39, %v1184_v39  ;;  %v1090_v49 = vpop.f32.mrf.mxu0  ;;  %v1173_v50 = vpop.f32.mrf.mxu1  ;;  %v6086_v36 = vmov 0.0  }
 0x1ae   : > { %v1193_v51 = vmul.f32 %v1183_v42, %v1183_v42  ;;  %v1199_v52 = vmul.f32 %v1185_v43, %v1185_v43  ;;  %v1186_v53 = vadd.f32 %v1090_v49, %v817_v38  ;;  %v1188_v54 = vadd.f32 %v1173_v50, %v900_v41  ;;  %1304 = vmatprep.mubr.f32.mxu0 %v1203_v44 }
 0x1af   : > { %v1092_v56 = vpop.f32.mrf.mxu0  ;;  %v1175_v57 = vpop.f32.mrf.mxu1  ;;  %1305 = vmatmul.mubr.f32.vlgmr.msra.gmra.mxu0 %v1202_v46  ;;  %v1204_v60 = vadd.f32 %v1198_v48, %v1192_v47  ;;  %5790 = vmatprep.subr.mxu1 %v6086_v36 }
 0x1b0   : > { %v1205_v58 = vadd.f32 %v1199_v52, %v1193_v51  ;;  %v1187_v59 = vadd.f32 %v1092_v56, %v819_v45  ;;  %v1189_v61 = vadd.f32 %v1175_v57, %v902_v55  ;;  %v1194_v62 = vmul.f32 %v1186_v53, %v1186_v53  ;;  %5791 = vmatpush3.msk.msra.mxu1 %vm543_vm0, %v1358_v35 }
 0x1b1   : > { %v1200_v63 = vmul.f32 %v1188_v54, %v1188_v54  ;;  %5792 = vmatprep.subr.mxu1 %v6086_v36  ;;  %5796 = vmatprep.mubr.msk.f32.mxu1 %vm6087_vm5, %v6086_v36 }
 0x1b2   : > { %v1195_v0 = vmul.f32 %v1187_v59, %v1187_v59  ;;  %1309 = vmatprep.mubr.f32.mxu0 %v1205_v58  ;;  %v1201_v3 = vmul.f32 %v1189_v61, %v1189_v61  ;;  %5793 = vmatpush3.msra.mxu1 %v1357_v13 }
 0x1b3   : > { %1310 = vmatmul.mubr.f32.gmra.mxu0 %v1204_v60  ;;  %v1206_v5 = vadd.f32 %v1200_v63, %v1194_v62  ;;  %5794 = vmatprep.subr.mxu1 %v6086_v36 }
 0x1b4   : > { %v1207_v4 = vadd.f32 %v1201_v3, %v1195_v0  ;;  %5795 = vmatpush3.msra.mxu1 %v1356_v37  ;;  %v1739_v37 = vld [vmem:[#allocation10 + $0x2a0] sm:$0xff] }
 0x1b6   : > { %1314 = vmatprep.mubr.f32.mxu0 %v1207_v4 }
 0x1b7   : > { %1315 = vmatmul.mubr.f32.gmra.mxu0 %v1206_v5 }
 0x1b8   : > { %2012 = vmatprep.mubr.f32.mxu0 %v6086_v36 }
 0x26f   : > { %v5775_v6 = vpop.f32.mrf.mxu0 }
 0x271   : > { %v5776_v7 = vpop.f32.mrf.mxu0 }
 0x272   : > { %v5777_v1 = vadd.f32 %v5776_v7, %v5775_v6 }
 0x273   : > { %v5778_v9 = vpop.f32.mrf.mxu0 }
 0x274   : > { %v1320_v10 = vmax.f32 %v5777_v1, 1e-10 }
 0x275   : > { %v5779_v11 = vpop.f32.mrf.mxu0 }
 0x276   : > { %5888 = vlog2.f32 %v1320_v10  ;;  %v5780_v12 = vadd.f32 %v5779_v11, %v5778_v9 }
 0x277   : > { %v5781_v15 = vpop.f32.mrf.mxu0 }
 0x278   : > { %v1321_v14 = vmax.f32 %v5780_v12, 1e-10 }
 0x279   : > { %v5782_v16 = vpop.f32.mrf.mxu0 }
 0x27a   : > { %5890 = vlog2.f32 %v1321_v14  ;;  %v5783_v2 = vadd.f32 %v5782_v16, %v5781_v15 }
 0x27c   : > { %v1322_v17 = vmax.f32 %v5783_v2, 1e-10 }
 0x27e   : > { %5892 = vlog2.f32 %v1322_v17 }
 0x283   : > { %v5889_v18 = vpop.eup %5888 }
 0x284   : > { %v1324_v20 = vmul.f32 0.6931472, %v5889_v18 }
 0x286   : > { %v1329_v8 = vmul.f32 0.4342945, %v1324_v20 }
 0x287   : > { %v5891_v21 = vpop.eup %5890 }
 0x288   : > { %v1326_v22 = vmul.f32 0.6931472, %v5891_v21  ;;  %v1332_v27 = vmul.f32 10.0, %v1329_v8 }
 0x28a   : > { %v1330_v23 = vmul.f32 0.4342945, %v1326_v22  ;;  %v1336_v31 = vsel %vm1335_vm3, %v1332_v27, -inf }
 0x28b   : > { %v5893_v24 = vpop.eup %5892 }
 0x28c   : > { %v1333_v25 = vmul.f32 10.0, %v1330_v23  ;;  %v1328_v26 = vmul.f32 0.6931472, %v5893_v24 }
 0x28e   : > { %v1331_v28 = vmul.f32 0.4342945, %v1328_v26  ;;  %v1337_v29 = vsel %vm1335_vm3, %v1333_v25, -inf  ;;  %v1750_v26 = vld [vmem:[#allocation10 + $0x2f8] sm:$0xf] }
 0x28f   : > { %v1340_v32 = vmax.f32 %v1336_v31, %v1337_v29  ;;  %5586 = vmatprep.subr.msk.mxu0 %vm1475_vm8, %v1750_v26  ;;  %v1740_v31 = vld [vmem:[#allocation10 + $0x2a8] sm:$0xff] }
 0x290   : > { %v1334_v30 = vmul.f32 10.0, %v1331_v28 }
 0x292   : > { %v1339_v33 = vsel %vm1338_vm4, %v1334_v30, -inf }
 0x293   : > { %v1341_v34 = vmax.f32 %v1340_v32, %v1339_v33  ;;  %v1744_v32 = vld [vmem:[#allocation10 + $0x2c8] sm:$0xff] }
 0x295   : > { %1342 = vmax.xlane.f32.xlu0 %v1341_v34 }
 0x31e   : > { %v1343_v38 = vpop.xlane.xlu0 %1342 }
 0x31f   : > { %v1344_v39 = vrot.slane %v1343_v38, 4 }
 0x321   : > { %v1345_v19 = vmax.f32 %v1343_v38, %v1344_v39  ;;  %v1743_v38 = vld [vmem:[#allocation10 + $0x2c0] sm:$0xff]  ;;  %v1734_v39 = vld [vmem:[#allocation10 + $0x278] sm:$0xff] }
 0x323   : > { %v1346_v40 = vrot.slane %v1345_v19, 2 }
 0x325   : > { %v1347_v41 = vmax.f32 %v1345_v19, %v1346_v40 }
 0x327   : > { %v1348_v42 = vrot.slane %v1347_v41, 1 }
 0x329   : > { %v1349_v43 = vmax.f32 %v1347_v41, %v1348_v42  ;;  %v1738_v41 = vld [vmem:[#allocation10 + $0x298] sm:$0xff]  ;;  %v1733_v42 = vld [vmem:[#allocation10 + $0x270] sm:$0xff] }
 0x32b   : > { %5807 = vpush %v1349_v43  ;;  %v1737_v43 = vld [vmem:[#allocation10 + $0x290] sm:$0xff] }
 0x35c   : > { %s5808_s19 = spop %5807 }
 0x35d   : > { %s5571_s29 = sadd.f32 -80.0, %s5808_s19 }
 0x35f   : > { %v1352_v44 = vstv %s5571_s29 }
 0x360   : > { %v1353_v45 = vmax.f32 %v1332_v27, %v1352_v44  ;;  %v1354_v46 = vmax.f32 %v1333_v25, %v1352_v44  ;;  %v1355_v47 = vmax.f32 %v1334_v30, %v1352_v44  ;;  %v1746_v25 = vld [vmem:[#allocation10 + $0x2d8] sm:$0xf]  ;;  %v1745_v27 = vld [vmem:[#allocation10 + $0x2d0] sm:$0xf] }
 0x361   : > { %5576 = vmatprep.subr.msk.mxu1 %vm1475_vm8, %v1746_v25  ;;  %v1749_v30 = vld [vmem:[#allocation10 + $0x2f0] sm:$0xf]  ;;  %v1731_v25 = vld [vmem:[#allocation10 + $0x260] sm:$0xff] }
 0x362   : > { %5797 = vmatmul.mubr.msk.f32.vlgmr.msra.gmra.mxu1 %vm1335_vm3, %v1353_v45  ;;  %5587 = vmatpush1.msk.msra.mxu0 %vm1475_vm8, %v1749_v30  ;;  %v1722_v30 = vld [vmem:[#allocation10 + $0x218] sm:$0xff] }
 0x363   : > { %5799 = vmatprep.mubr.msk.f32.mxu1 %vm6087_vm5, %v6086_v36  ;;  %5577 = vmatpush1.msk.msra.mxu1 %vm1475_vm8, %v1745_v27 }
 0x364   : > { %1800 = vmatprep.subr.mxu1 %v1740_v31  ;;  %1966 = vmatprep.subr.mxu0 %v1744_v32  ;;  %v1726_v31 = vld [vmem:[#allocation10 + $0x238] sm:$0xff]  ;;  %v1721_v32 = vld [vmem:[#allocation10 + $0x210] sm:$0xff] }
 0x365   : > { %1801 = vmatpush1.msra.mxu1 %v1739_v37  ;;  %1967 = vmatpush1.msra.mxu0 %v1743_v38  ;;  %v1716_v38 = vld [vmem:[#allocation10 + $0x1e8] sm:$0xff] }
 0x366   : > { %5800 = vmatmul.mubr.msk.f32.gmra.mxu1 %vm1335_vm3, %v1354_v46  ;;  %1802 = vmatprep.subr.mxu1 %v1734_v39  ;;  %v1720_v39 = vld [vmem:[#allocation10 + $0x208] sm:$0xff] }
 0x367   : > { %5802 = vmatprep.mubr.msk.f32.mxu1 %vm6087_vm5, %v6086_v36  ;;  %1968 = vmatprep.subr.mxu0 %v1738_v41 }
 0x368   : > { %1803 = vmatpush1.msra.mxu1 %v1733_v42  ;;  %1969 = vmatpush1.msra.mxu0 %v1737_v43  ;;  %v1715_v42 = vld [vmem:[#allocation10 + $0x1e0] sm:$0xff] }
 0x369   : > { %v1719_v43 = vld [vmem:[#allocation10 + $0x200] sm:$0xff] }
 0x36a   : > { %5803 = vmatmul.mubr.msk.f32.gmra.mxu1 %vm1335_vm3, %v1355_v47 }
 0x36b   : > { %1846 = vmatprep.mubr.f32.mxu1 %v6086_v36 }
 0x422   : > { %v6333_v48 = vpop.f32.mrf.mxu1 }
 0x423   : > { %v1452_v49 = vrot.slane %v6333_v48, 7  ;;  %v1457_v50 = vrot.slane %v6333_v48, 6 }
 0x424   : > { %v5798_v51 = vpop.f32.mrf.mxu1 }
 0x425   : > { %v1470_v52 = vsel %vm1469_vm6, %v6333_v48, %v1452_v49 }
 0x426   : > { %v1471_v53 = vsel %vm1456_vm7, %v1470_v52, %v1457_v50  ;;  %v6340_v54 = vpop.f32.mrf.mxu1 }
 0x427   : > { %v1476_v55 = vrot.slane %v1471_v53, 4  ;;  %v1493_v56 = vrot.slane %v1471_v53, 6  ;;  %v1458_v57 = vrot.slane %v6340_v54, 6 }
 0x428   : > { %v5801_v58 = vpop.f32.mrf.mxu1 }
 0x429   : > { %v1485_v59 = vsub.f32 %v1471_v53, %v1476_v55  ;;  %v1501_v60 = vsub.f32 %v1471_v53, %v1493_v56  ;;  %v1459_v61 = vsel %vm1456_vm7, %v1457_v50, %v1458_v57 }
 0x42a   : > { %v1477_v62 = vrot.slane %v1459_v61, 4  ;;  %v1494_v63 = vrot.slane %v1459_v61, 6  ;;  %v6344_v0 = vpop.f32.mrf.mxu1 }
 0x42b   : > { %v1489_v3 = vmul.f32 2.0, %v1485_v59  ;;  %v1507_v4 = vrot.slane %v1501_v60, 7  ;;  %v1460_v5 = vrot.slane %v6344_v0, 6  ;;  %v1465_v6 = vrot.slane %v6344_v0, 5 }
 0x42c   : > { %v1478_v7 = vsel %vm1475_vm8, %v1476_v55, %v1477_v62  ;;  %v1495_v1 = vsel %vm1456_vm7, %v1493_v56, %v1494_v63  ;;  %v5804_v9 = vpop.f32.mrf.mxu1  ;;  %v1467_v15 = vrot.slane %v6344_v0, 4 }
 0x42d   : > { %v1486_v10 = vsub.f32 %v1459_v61, %v1478_v7  ;;  %v1502_v11 = vsub.f32 %v1459_v61, %v1495_v1  ;;  %v1461_v12 = vsel %vm1456_vm7, %v1458_v57, %v1460_v5  ;;  %v1516_v14 = vadd.f32 %v1507_v4, %v1489_v3 }
 0x42e   : > { %v1472_v16 = vsel %vm543_vm0, %v1461_v12, %v1465_v6 }
 0x42f   : > { %v1508_v2 = vrot.slane %v1502_v11, 7  ;;  %v1479_v17 = vrot.slane %v1472_v16, 4  ;;  %v1496_v18 = vrot.slane %v1472_v16, 6  ;;  %v1490_v20 = vmul.f32 2.0, %v1486_v10 }
 0x430   : > { %v1521_v21 = vmul.f32 0.1, %v1516_v14 }
 0x431   : > { %v1488_v22 = vsub.f32 %v1467_v15, %v1479_v17  ;;  %v1497_v8 = vsel %vm1456_vm7, %v1494_v63, %v1496_v18  ;;  %v1509_v23 = vsel %vm1469_vm6, %v1507_v4, %v1508_v2  ;;  %v1480_v24 = vsel %vm1475_vm8, %v1477_v62, %v1479_v17 }
 0x432   : > { %v1503_v28 = vsub.f32 %v1472_v16, %v1497_v8  ;;  %v1517_v29 = vadd.f32 %v1509_v23, %v1490_v20  ;;  %v1526_v34 = vrot.slane %v1521_v21, 4  ;;  %v1528_v35 = vrot.slane %v1521_v21, 3 }
 0x433   : > { %v1492_v33 = vmul.f32 2.0, %v1488_v22  ;;  %v1487_v13 = vsub.f32 %v1472_v16, %v1480_v24  ;;  %v1533_v44 = vrot.slane %v1521_v21, 2  ;;  %v1728_v21 = vld [vmem:[#allocation10 + $0x248] sm:$0xff]  ;;  %v1727_v24 = vld [vmem:[#allocation10 + $0x240] sm:$0xff] }
 0x434   : > { %v1510_v19 = vrot.slane %v1503_v28, 7  ;;  %v1522_v40 = vmul.f32 0.1, %v1517_v29  ;;  %v1545_v53 = vsel %vm1469_vm6, %v1526_v34, %v1528_v35  ;;  %v1732_v22 = vld [vmem:[#allocation10 + $0x268] sm:$0xff]  ;;  %1804 = vmatprep.subr.mxu1 %v1728_v21  ;;  %v1725_v35 = vld [vmem:[#allocation10 + $0x230] sm:$0xff] }
 0x435   : > { %v1491_v45 = vmul.f32 2.0, %v1487_v13  ;;  %1970 = vmatprep.subr.mxu0 %v1732_v22  ;;  %1805 = vmatpush1.msra.mxu1 %v1727_v24 }
 0x436   : > { %v1519_v46 = vadd.f32 %v1510_v19, %v1492_v33  ;;  %v1598_v47 = vrot.slane %v1522_v40, 4  ;;  %v1534_v49 = vrot.slane %v1522_v40, 2  ;;  %v1511_v50 = vsel %vm1469_vm6, %v1508_v2, %v1510_v19  ;;  %1971 = vmatpush1.msra.mxu0 %v1731_v25  ;;  %1806 = vmatprep.subr.mxu1 %v1722_v30  ;;  %v1747_v25 = vld [vmem:[#allocation10 + $0x2e0] sm:$0xf] }
 0x437   : > { %v1518_v51 = vadd.f32 %v1511_v50, %v1491_v45  ;;  %1972 = vmatprep.subr.mxu0 %v1726_v31  ;;  %1807 = vmatpush1.msra.mxu1 %v1721_v32  ;;  %v1714_v45 = vld [vmem:[#allocation10 + $0x1d8] sm:$0xff]  ;;  %v1741_v31 = vld [vmem:[#allocation10 + $0x2b0] sm:$0xff] }
 0x438   : > { %v6361_v52 = vmul.f32 0.1, %v1519_v46  ;;  %v1599_v55 = vsel %vm1475_vm8, %v1526_v34, %v1598_v47  ;;  %v1535_v56 = vsel %vm992_vm2, %v1533_v44, %v1534_v49  ;;  %1973 = vmatpush1.msra.mxu0 %v1725_v35  ;;  %1808 = vmatprep.subr.mxu1 %v1716_v38  ;;  %v1710_v44 = vld [vmem:[#allocation10 + $0x1b8] sm:$0xff]  ;;  %v1709_v46 = vld [vmem:[#allocation10 + $0x1b0] sm:$0xff]  ;;  %v1687_v35 = vld [vmem:[#allocation10 + $0x108] sm:$0xff] }
 0x439   : > { %1604 = vrot.lane.b32.xlu0 %v1599_v55, %s6088_s30  ;;  %v1546_v57 = vsel %vm1456_vm7, %v1545_v53, %v1535_v56  ;;  %v6368_v58 = vmul.f32 0.1, %v1518_v51  ;;  %1974 = vmatprep.subr.mxu0 %v1720_v39  ;;  %v1713_v51 = vld [vmem:[#allocation10 + $0x1d0] sm:$0xff]  ;;  %v1704_v53 = vld [vmem:[#allocation10 + $0x188] sm:$0xff]  ;;  %v1730_v38 = vld [vmem:[#allocation10 + $0x258] sm:$0xff] }
 0x43a   : > { %v1538_v59 = vrot.slane %v6361_v52, 2  ;;  %v1550_v60 = vrot.slane %v1546_v57, 4  ;;  %v1567_v61 = vrot.slane %v1546_v57, 6  ;;  %v1543_v1 = vrot.slane %v6361_v52, 1  ;;  %1809 = vmatpush1.msra.mxu1 %v1715_v42  ;;  %1975 = vmatpush1.msra.mxu0 %v1719_v43  ;;  %v1708_v55 = vld [vmem:[#allocation10 + $0x1a8] sm:$0xff]  ;;  %v1692_v32 = vld [vmem:[#allocation10 + $0x130] sm:$0xff] }
 0x43b   : > { %v1600_v62 = vrot.slane %v6368_v58, 4  ;;  %v1536_v63 = vrot.slane %v6368_v58, 2  ;;  %1810 = vmatprep.subr.mxu1 %v1710_v44  ;;  %1976 = vmatprep.subr.mxu0 %v1714_v45  ;;  %v1681_v39 = vld [vmem:[#allocation10 + $0xd8] sm:$0xff]  ;;  %v1724_v42 = vld [vmem:[#allocation10 + $0x228] sm:$0xff] }
 0x43c   : > { %v1559_v3 = vsub.f32 %v1546_v57, %v1550_v60  ;;  %v1575_v4 = vsub.f32 %v1546_v57, %v1567_v61  ;;  %1811 = vmatpush1.msra.mxu1 %v1709_v46  ;;  %1977 = vmatpush1.msra.mxu0 %v1713_v51  ;;  %v1703_v57 = vld [vmem:[#allocation10 + $0x180] sm:$0xff]  ;;  %v1675_v44 = vld [vmem:[#allocation10 + $0xa8] sm:$0xff]  ;;  %v1717_v51 = vld [vmem:[#allocation10 + $0x1f0] sm:$0xff] }
 0x43d   : > { %v1601_v5 = vsel %vm1475_vm8, %v1598_v47, %v1600_v62  ;;  %v1537_v6 = vsel %vm992_vm2, %v1534_v49, %v1536_v63  ;;  %v1539_v7 = vsel %vm992_vm2, %v1536_v63, %v1538_v59  ;;  %v1707_v59 = vld [vmem:[#allocation10 + $0x1a0] sm:$0xff]  ;;  %1812 = vmatprep.subr.mxu1 %v1704_v53  ;;  %1978 = vmatprep.subr.mxu0 %v1708_v55  ;;  %v1668_v53 = vld [vmem:[#allocation10 + $0x70] sm:$0xff]  ;;  %v1712_v55 = vld [vmem:[#allocation10 + $0x1c8] sm:$0xff] }
 0x43e   : > { %1606 = vrot.lane.b32.xlu1 %v1601_v5, %s6088_s30  ;;  %v1568_v9 = vrot.slane %v1537_v6, 6  ;;  %v1551_v10 = vrot.slane %v1537_v6, 4  ;;  %v1563_v11 = vmul.f32 2.0, %v1559_v3  ;;  %v1581_v12 = vrot.slane %v1575_v4, 7  ;;  %v1699_v3 = vld [vmem:[#allocation10 + $0x168] sm:$0xf]  ;;  %1813 = vmatpush1.msra.mxu1 %v1703_v57 }
 0x43f   : > { %v1547_v14 = vsel %vm543_vm0, %v1539_v7, %v1543_v1  ;;  %1979 = vmatpush1.msra.mxu0 %v1707_v59  ;;  %v1723_v46 = vld [vmem:[#allocation10 + $0x220] sm:$0xff] }
 0x440   : > { %v1552_v15 = vsel %vm1475_vm8, %v1550_v60, %v1551_v10  ;;  %v1569_v16 = vsel %vm1456_vm7, %v1567_v61, %v1568_v9  ;;  %v1553_v2 = vrot.slane %v1547_v14, 4  ;;  %v1570_v20 = vrot.slane %v1547_v14, 6  ;;  %v1748_v60 = vld [vmem:[#allocation10 + $0x2e8] sm:$0xf]  ;;  %5596 = vmatprep.subr.msk.mxu0 %vm1475_vm8, %v1699_v3  ;;  %v1711_v57 = vld [vmem:[#allocation10 + $0x1c0] sm:$0xff]  ;;  %v1656_v3 = vld [vmem:[#allocation10 + $0x10] sm:$0xff] }
 0x441   : > { %v1560_v17 = vsub.f32 %v1537_v6, %v1552_v15  ;;  %v1576_v18 = vsub.f32 %v1537_v6, %v1569_v16  ;;  %v1590_v8 = vadd.f32 %v1581_v12, %v1563_v11  ;;  %5581 = vmatprep.subr.msk.mxu1 %vm1475_vm8, %v1748_v60  ;;  %v1662_v59 = vld [vmem:[#allocation10 + $0x40] sm:$0xff]  ;;  %v1706_v60 = vld [vmem:[#allocation10 + $0x198] sm:$0xff] }
 0x442   : > { %v1554_v23 = vsel %vm1475_vm8, %v1551_v10, %v1553_v2  ;;  %v1571_v29 = vsel %vm1456_vm7, %v1568_v9, %v1570_v20  ;;  %v1562_v34 = vsub.f32 %v6361_v52, %v1553_v2  ;;  %v1602_v9 = vrot.slane %v6361_v52, 4 }
 0x443   : > { %v1564_v26 = vmul.f32 2.0, %v1560_v17  ;;  %v1582_v27 = vrot.slane %v1576_v18, 7  ;;  %v1561_v28 = vsub.f32 %v1547_v14, %v1554_v23  ;;  %v1577_v33 = vsub.f32 %v1547_v14, %v1571_v29 }
 0x444   : > { %v1594_v40 = vmul.f32 0.1, %v1590_v8  ;;  %v1566_v50 = vmul.f32 2.0, %v1562_v34  ;;  %v1603_v11 = vsel %vm1475_vm8, %v1600_v62, %v1602_v9  ;;  %v1736_v34 = vld [vmem:[#allocation10 + $0x288] sm:$0xff] }
 0x445   : > { %v1583_v13 = vsel %vm1469_vm6, %v1581_v12, %v1582_v27  ;;  %v1565_v37 = vmul.f32 2.0, %v1561_v28  ;;  %v1584_v41 = vrot.slane %v1577_v33, 7  ;;  %v1693_v28 = vld [vmem:[#allocation10 + $0x138] sm:$0xff]  ;;  %v2342_v9 = vld [vmem:[#allocation10 + $0x428] sm:$0xff] }
 0x446   : > { %v1591_v19 = vadd.f32 %v1583_v13, %v1564_v26  ;;  %v1617_v61 = vrot.slane %v1594_v40, 4  ;;  %v1698_v26 = vld [vmem:[#allocation10 + $0x160] sm:$0xf]  ;;  %v1729_v40 = vld [vmem:[#allocation10 + $0x250] sm:$0xff] }
 0x447   : > { %v1585_v49 = vsel %vm1469_vm6, %v1582_v27, %v1584_v41  ;;  %v1593_v6 = vadd.f32 %v1584_v41, %v1566_v50  ;;  %v1742_v27 = vld [vmem:[#allocation10 + $0x2b8] sm:$0xff]  ;;  %v1735_v13 = vld [vmem:[#allocation10 + $0x280] sm:$0xff]  ;;  %v1680_v41 = vld [vmem:[#allocation10 + $0xd0] sm:$0xff] }
 0x448   : > { %v1595_v47 = vmul.f32 0.1, %v1591_v19  ;;  %v1592_v56 = vadd.f32 %v1585_v49, %v1565_v37  ;;  %v1686_v37 = vld [vmem:[#allocation10 + $0x100] sm:$0xff]  ;;  %v1718_v49 = vld [vmem:[#allocation10 + $0x1f8] sm:$0xff] }
 0x449   : > { %v1597_v10 = vmul.f32 0.1, %v1593_v6  ;;  %v1669_v50 = vld [vmem:[#allocation10 + $0x78] sm:$0xff]  ;;  %v1696_v6 = vld [vmem:[#allocation10 + $0x150] sm:$0xf] }
 0x44a   : > { %v1618_v63 = vrot.slane %v1595_v47, 4  ;;  %v1596_v4 = vmul.f32 0.1, %v1592_v56  ;;  %v1674_v47 = vld [vmem:[#allocation10 + $0xa0] sm:$0xff]  ;;  %v1663_v56 = vld [vmem:[#allocation10 + $0x48] sm:$0xff] }
 0x44b   : > { %v1622_v12 = vrot.slane %v1597_v10, 4  ;;  %v1690_v10 = vld [vmem:[#allocation10 + $0x120] sm:$0xff] }
 0x44c   : > { %v1619_v5 = vsel %vm1475_vm8, %v1617_v61, %v1618_v63  ;;  %v1620_v7 = vrot.slane %v1596_v4, 4  ;;  %v1657_v61 = vld [vmem:[#allocation10 + $0x18] sm:$0xff] }
 0x44d   : > { %1624 = vrot.lane.b32.xlu1 %v1619_v5, %s6089_s9  ;;  %v1697_v4 = vld [vmem:[#allocation10 + $0x158] sm:$0xf] }
 0x44e   : > { %v1621_v1 = vsel %vm1475_vm8, %v1618_v63, %v1620_v7  ;;  %v1623_v14 = vsel %vm1475_vm8, %v1620_v7, %v1622_v12  ;;  %v1705_v63 = vld [vmem:[#allocation10 + $0x190] sm:$0xff]  ;;  %v2348_v5 = vld [vmem:[#allocation10 + $0x458] sm:$0xf] }
 0x44f   : > { %v2347_v7 = vld [vmem:[#allocation10 + $0x450] sm:$0xf]  ;;  %v1685_v12 = vld [vmem:[#allocation10 + $0xf8] sm:$0xff] }
 0x451   : > { %1626 = vrot.lane.b32.xlu1 %v1621_v1, %s6089_s9  ;;  %v1691_v1 = vld [vmem:[#allocation10 + $0x128] sm:$0xff] }
 0x455   : > { %1608 = vrot.lane.b32.xlu1 %v1603_v11, %s6088_s30  ;;  %v2341_v11 = vld [vmem:[#allocation10 + $0x420] sm:$0xff] }
 0x459   : > { %1628 = vrot.lane.b32.xlu1 %v1623_v14, %s6089_s9  ;;  %v2336_v14 = vld [vmem:[#allocation10 + $0x3f8] sm:$0xff] }
 0x4ab   : > { %v1605_v16 = vpop.permute.xlu0 %1604 }
 0x4ac   : > { %v1634_v2 = vsel %vm1633_vm9, %v6333_v48, %v1605_v16  ;;  %v2335_v16 = vld [vmem:[#allocation10 + $0x3f0] sm:$0xff] }
 0x4b0   : > { %v1607_v15 = vpop.permute.xlu1 %1606 }
 0x4b1   : > { %v1635_v58 = vsel %vm1633_vm9, %v6340_v54, %v1607_v15  ;;  %v1684_v15 = vld [vmem:[#allocation10 + $0xf0] sm:$0xff] }
 0x4bf   : > { %v1625_v52 = vpop.permute.xlu1 %1624 }
 0x4c0   : > { %v1638_v17 = vsel %vm1637_vm10, %v1634_v2, %v1625_v52  ;;  %v1679_v2 = vld [vmem:[#allocation10 + $0xc8] sm:$0xff] }
 0x4c1   : > { %v1645_v18 = vrot.slane %v1638_v17, 3  ;;  %v2330_v52 = vld [vmem:[#allocation10 + $0x3c8] sm:$0xff]  ;;  %v1678_v17 = vld [vmem:[#allocation10 + $0xc0] sm:$0xff] }
 0x4c3   : > { %v1627_v62 = vpop.permute.xlu1 %1626  ;;  %v6405_v21 = vsel %vm1644_vm11, 0.0, %v1645_v18 }
 0x4c4   : > { %v1639_v20 = vsel %vm1637_vm10, %v1635_v58, %v1627_v62  ;;  %v1752_v48 = vrot.slane %v6405_v21, 1  ;;  %v1673_v58 = vld [vmem:[#allocation10 + $0x98] sm:$0xff] }
 0x4c5   : > { %v1646_v22 = vrot.slane %v1639_v20, 3  ;;  %v2324_v62 = vld [vmem:[#allocation10 + $0x398] sm:$0xff]  ;;  %v1672_v20 = vld [vmem:[#allocation10 + $0x90] sm:$0xff] }
 0x4c7   : > { %v6408_v8 = vsel %vm1644_vm11, %v1645_v18, %v1646_v22  ;;  %v1609_v23 = vpop.permute.xlu1 %1608  ;;  %v2329_v18 = vld [vmem:[#allocation10 + $0x3c0] sm:$0xff] }
 0x4c8   : > { %v1753_v24 = vrot.slane %v6408_v8, 1  ;;  %v1636_v29 = vsel %vm1633_vm9, %v6344_v0, %v1609_v23  ;;  %v1667_v23 = vld [vmem:[#allocation10 + $0x68] sm:$0xff] }
 0x4ca   : > { %v6413_v54 = vsel %vm543_vm0, %v1752_v48, %v1753_v24  ;;  %v2318_v48 = vld [vmem:[#allocation10 + $0x368] sm:$0xff] }
 0x4cb   : > { %5578 = vmatmul.mubr.msk.f32.vlgmr.msra.gmra.mxu1 %vm1757_vm12, %v6413_v54  ;;  %5588 = vmatmul.mubr.msk.f32.vlgmr.msra.gmra.mxu0 %vm1757_vm12, %v6413_v54  ;;  %v1629_v30 = vpop.permute.xlu1 %1628 }
 0x4cc   : > { %5582 = vmatpush1.msk.msra.mxu1 %vm1475_vm8, %v1747_v25  ;;  %5597 = vmatpush1.msk.msra.mxu0 %vm1475_vm8, %v1698_v26  ;;  %v6424_v33 = vsel %vm1637_vm10, %v1636_v29, %v1629_v30  ;;  %v2317_v25 = vld [vmem:[#allocation10 + $0x360] sm:$0xff]  ;;  %v1661_v26 = vld [vmem:[#allocation10 + $0x38] sm:$0xff]  ;;  %v1655_v29 = vld [vmem:[#allocation10 + $0x8] sm:$0xff] }
 0x4cd   : > { %v1648_v0 = vrot.slane %v6424_v33, 3  ;;  %1883 = vmatprep.subr.mxu1 %v1742_v27  ;;  %2156 = vmatprep.subr.mxu0 %v1693_v28  ;;  %v1660_v27 = vld [vmem:[#allocation10 + $0x30] sm:$0xff]  ;;  %v2306_v30 = vld [vmem:[#allocation10 + $0x308] sm:$0xff]  ;;  %v2678_v33 = vld [vmem:[#allocation10 + $0x560] sm:$0xff] }
 0x4ce   : > { %1884 = vmatpush1.msra.mxu1 %v1741_v31  ;;  %2157 = vmatpush1.msra.mxu0 %v1692_v32  ;;  %v2311_v28 = vld [vmem:[#allocation10 + $0x330] sm:$0xff]  ;;  %v1654_v31 = vld [vmem:[#allocation10] sm:$0xff] }
 0x4cf   : > { %v6430_v19 = vsel %vm1644_vm11, %v1646_v22, %v1648_v0  ;;  %1885 = vmatprep.subr.mxu1 %v1736_v34  ;;  %2158 = vmatprep.subr.mxu0 %v1687_v35  ;;  %v2323_v22 = vld [vmem:[#allocation10 + $0x390] sm:$0xff]  ;;  %v2305_v32 = vld [vmem:[#allocation10 + $0x300] sm:$0xff]  ;;  %v2354_v34 = vrot.slane %v6408_v8, 2  ;;  %v1701_v35 = vld [vmem:[#allocation10 + $0x178] sm:$0xf] }
 0x4d0   : > { %1886 = vmatpush1.msra.mxu1 %v1735_v13  ;;  %2159 = vmatpush1.msra.mxu0 %v1686_v37  ;;  %v6433_v43 = vrot.slane %v6430_v19, 1  ;;  %v2353_v13 = vrot.slane %v6405_v21, 2  ;;  %v2352_v37 = vld [vmem:[#allocation10 + $0x478] sm:$0xf] }
 0x4d1   : > { %1887 = vmatprep.subr.mxu1 %v1730_v38  ;;  %2160 = vmatprep.subr.mxu0 %v1681_v39  ;;  %v1700_v38 = vld [vmem:[#allocation10 + $0x170] sm:$0xf] }
 0x4d2   : > { %1888 = vmatpush1.msra.mxu1 %v1729_v40  ;;  %2161 = vmatpush1.msra.mxu0 %v1680_v41  ;;  %v6437_v45 = vsel %vm543_vm0, %v1753_v24, %v6433_v43  ;;  %v1666_v24 = vld [vmem:[#allocation10 + $0x60] sm:$0xff]  ;;  %v2351_v39 = vld [vmem:[#allocation10 + $0x470] sm:$0xf]  ;;  %v6481_v40 = vsel %vm992_vm2, %v2353_v13, %v2354_v34  ;;  %v1695_v41 = vld [vmem:[#allocation10 + $0x148] sm:$0xff] }
 0x4d3   : > { %1852 = vmatprep.mubr.f32.mxu1 %v6086_v36  ;;  %1889 = vmatprep.subr.mxu1 %v1724_v42  ;;  %v2346_v42 = vld [vmem:[#allocation10 + $0x448] sm:$0xff]  ;;  %v2665_v13 = vld [vmem:[#allocation10 + $0x4f8] sm:$0xff] }
 0x4d4   : > { %2018 = vmatprep.mubr.f32.mxu0 %v6086_v36  ;;  %2162 = vmatprep.subr.mxu0 %v1675_v44  ;;  %v1694_v44 = vld [vmem:[#allocation10 + $0x140] sm:$0xff] }
 0x4d5   : > { %5579 = vmatmul.mubr.msk.f32.gmra.mxu1 %vm1757_vm12, %v6437_v45  ;;  %5589 = vmatmul.mubr.msk.f32.gmra.mxu0 %vm1757_vm12, %v6437_v45 }
 0x4d6   : > { %1890 = vmatpush1.msra.mxu1 %v1723_v46  ;;  %2163 = vmatpush1.msra.mxu0 %v1674_v47  ;;  %v2345_v46 = vld [vmem:[#allocation10 + $0x440] sm:$0xff]  ;;  %v6489_v47 = vrot.slane %v6430_v19, 2 }
 0x4d7   : > { %1891 = vmatprep.subr.mxu1 %v1718_v49  ;;  %2164 = vmatprep.subr.mxu0 %v1669_v50  ;;  %v1689_v49 = vld [vmem:[#allocation10 + $0x118] sm:$0xff] }
 0x4d8   : > { %1892 = vmatpush1.msra.mxu1 %v1717_v51  ;;  %2165 = vmatpush1.msra.mxu0 %v1668_v53  ;;  %v2340_v50 = vld [vmem:[#allocation10 + $0x418] sm:$0xff]  ;;  %v1688_v51 = vld [vmem:[#allocation10 + $0x110] sm:$0xff] }
 0x4d9   : > { %1858 = vmatprep.mubr.f32.mxu1 %v6086_v36  ;;  %1893 = vmatprep.subr.mxu1 %v1712_v55  ;;  %v2339_v53 = vld [vmem:[#allocation10 + $0x410] sm:$0xff]  ;;  %v6497_v55 = vsel %vm992_vm2, %v2354_v34, %v6489_v47  ;;  %v2670_v34 = vld [vmem:[#allocation10 + $0x520] sm:$0xff] }
 0x4da   : > { %2024 = vmatprep.mubr.f32.mxu0 %v6086_v36  ;;  %2166 = vmatprep.subr.mxu0 %v1663_v56  ;;  %v1683_v56 = vld [vmem:[#allocation10 + $0xe8] sm:$0xff] }
 0x4db   : > { %5580 = vmatmul.mubr.msk.f32.gmra.mxu1 %vm1757_vm12, %v6433_v43  ;;  %5590 = vmatmul.mubr.msk.f32.gmra.mxu0 %vm1757_vm12, %v6433_v43 }
 0x4dc   : > { %1894 = vmatpush1.msra.mxu1 %v1711_v57  ;;  %2167 = vmatpush1.msra.mxu0 %v1662_v59  ;;  %v2334_v57 = vld [vmem:[#allocation10 + $0x3e8] sm:$0xff]  ;;  %v1682_v59 = vld [vmem:[#allocation10 + $0xe0] sm:$0xff] }
 0x4dd   : > { %1895 = vmatprep.subr.mxu1 %v1706_v60  ;;  %2168 = vmatprep.subr.mxu0 %v1657_v61  ;;  %v2333_v60 = vld [vmem:[#allocation10 + $0x3e0] sm:$0xff]  ;;  %v1677_v61 = vld [vmem:[#allocation10 + $0xb8] sm:$0xff] }
 0x4de   : > { %1896 = vmatpush1.msra.mxu1 %v1705_v63  ;;  %2169 = vmatpush1.msra.mxu0 %v1656_v3  ;;  %v2328_v63 = vld [vmem:[#allocation10 + $0x3b8] sm:$0xff]  ;;  %v1676_v3 = vld [vmem:[#allocation10 + $0xb0] sm:$0xff] }
 0x4df   : > { %1929 = vmatprep.mubr.f32.mxu1 %v6086_v36  ;;  %5591 = vmatprep.subr.msk.mxu1 %vm1475_vm8, %v1697_v4  ;;  %v2327_v4 = vld [vmem:[#allocation10 + $0x3b0] sm:$0xff] }
 0x4e0   : > { %2202 = vmatprep.mubr.f32.mxu0 %v6086_v36  ;;  %5606 = vmatprep.subr.msk.mxu0 %vm1475_vm8, %v2348_v5  ;;  %v1671_v5 = vld [vmem:[#allocation10 + $0x88] sm:$0xff] }
 0x4e1   : > { %5583 = vmatmul.mubr.msk.f32.vlgmr.msra.gmra.mxu1 %vm1757_vm12, %v6413_v54  ;;  %5598 = vmatmul.mubr.msk.f32.vlgmr.msra.gmra.mxu0 %vm1757_vm12, %v6405_v21  ;;  %v2312_v54 = vld [vmem:[#allocation10 + $0x338] sm:$0xff] }
 0x4e2   : > { %5592 = vmatpush1.msk.msra.mxu1 %vm1475_vm8, %v1696_v6  ;;  %5607 = vmatpush1.msk.msra.mxu0 %vm1475_vm8, %v2347_v7  ;;  %v2322_v6 = vld [vmem:[#allocation10 + $0x388] sm:$0xff]  ;;  %v1670_v7 = vld [vmem:[#allocation10 + $0x80] sm:$0xff] }
 0x4e3   : > { %2073 = vmatprep.subr.mxu1 %v1691_v1  ;;  %2400 = vmatprep.subr.mxu0 %v2342_v9  ;;  %v2321_v1 = vld [vmem:[#allocation10 + $0x380] sm:$0xff]  ;;  %v1665_v9 = vld [vmem:[#allocation10 + $0x58] sm:$0xff] }
 0x4e4   : > { %2074 = vmatpush1.msra.mxu1 %v1690_v10  ;;  %2401 = vmatpush1.msra.mxu0 %v2341_v11  ;;  %v2316_v10 = vld [vmem:[#allocation10 + $0x358] sm:$0xff]  ;;  %v1664_v11 = vld [vmem:[#allocation10 + $0x50] sm:$0xff] }
 0x4e5   : > { %1935 = vmatprep.mubr.f32.mxu1 %v6086_v36  ;;  %2075 = vmatprep.subr.mxu1 %v1685_v12  ;;  %v2315_v12 = vld [vmem:[#allocation10 + $0x350] sm:$0xff] }
 0x4e6   : > { %2208 = vmatprep.mubr.f32.mxu0 %v6086_v36  ;;  %2402 = vmatprep.subr.mxu0 %v2336_v14  ;;  %v1659_v14 = vld [vmem:[#allocation10 + $0x28] sm:$0xff] }
 0x4e7   : > { %5584 = vmatmul.mubr.msk.f32.gmra.mxu1 %vm1757_vm12, %v6437_v45  ;;  %5599 = vmatmul.mubr.msk.f32.gmra.mxu0 %vm1757_vm12, %v6408_v8 }
 0x4e8   : > { %2076 = vmatpush1.msra.mxu1 %v1684_v15  ;;  %2403 = vmatpush1.msra.mxu0 %v2335_v16  ;;  %v2310_v15 = vld [vmem:[#allocation10 + $0x328] sm:$0xff]  ;;  %v1658_v16 = vld [vmem:[#allocation10 + $0x20] sm:$0xff] }
 0x4e9   : > { %2077 = vmatprep.subr.mxu1 %v1679_v2  ;;  %2404 = vmatprep.subr.mxu0 %v2330_v52  ;;  %v2309_v2 = vld [vmem:[#allocation10 + $0x320] sm:$0xff]  ;;  %v2350_v52 = vld [vmem:[#allocation10 + $0x468] sm:$0xf] }
 0x4ea   : > { %2078 = vmatpush1.msra.mxu1 %v1678_v17  ;;  %2405 = vmatpush1.msra.mxu0 %v2329_v18  ;;  %v2695_v17 = vld [vmem:[#allocation10 + $0x5e8] sm:$0xf]  ;;  %v2349_v18 = vld [vmem:[#allocation10 + $0x460] sm:$0xf] }
 0x4eb   : > { %1941 = vmatprep.mubr.f32.mxu1 %v6086_v36  ;;  %2079 = vmatprep.subr.mxu1 %v1673_v58  ;;  %v2694_v58 = vld [vmem:[#allocation10 + $0x5e0] sm:$0xf] }
 0x4ec   : > { %2214 = vmatprep.mubr.f32.mxu0 %v6086_v36  ;;  %2406 = vmatprep.subr.mxu0 %v2324_v62  ;;  %v2344_v62 = vld [vmem:[#allocation10 + $0x438] sm:$0xff] }
 0x4ed   : > { %5585 = vmatmul.mubr.msk.f32.gmra.mxu1 %vm1757_vm12, %v6433_v43  ;;  %5600 = vmatmul.mubr.msk.f32.gmra.mxu0 %vm1757_vm12, %v6430_v19 }
 0x4ee   : > { %2080 = vmatpush1.msra.mxu1 %v1672_v20  ;;  %2407 = vmatpush1.msra.mxu0 %v2323_v22  ;;  %v2689_v20 = vld [vmem:[#allocation10 + $0x5b8] sm:$0xff]  ;;  %v2343_v22 = vld [vmem:[#allocation10 + $0x430] sm:$0xff] }
 0x4ef   : > { %2081 = vmatprep.subr.mxu1 %v1667_v23  ;;  %2408 = vmatprep.subr.mxu0 %v2318_v48  ;;  %v2688_v23 = vld [vmem:[#allocation10 + $0x5b0] sm:$0xff]  ;;  %v2338_v48 = vld [vmem:[#allocation10 + $0x408] sm:$0xff] }
 0x4f0   : > { %2082 = vmatpush1.msra.mxu1 %v1666_v24  ;;  %2409 = vmatpush1.msra.mxu0 %v2317_v25  ;;  %v2683_v24 = vld [vmem:[#allocation10 + $0x588] sm:$0xff]  ;;  %v2337_v25 = vld [vmem:[#allocation10 + $0x400] sm:$0xff] }
 0x4f1   : > { %2083 = vmatprep.subr.mxu1 %v1661_v26  ;;  %2410 = vmatprep.subr.mxu0 %v2312_v54  ;;  %v2682_v26 = vld [vmem:[#allocation10 + $0x580] sm:$0xff]  ;;  %v2332_v54 = vld [vmem:[#allocation10 + $0x3d8] sm:$0xff] }
 0x4f2   : > { %2084 = vmatpush1.msra.mxu1 %v1660_v27  ;;  %2411 = vmatpush1.msra.mxu0 %v2311_v28  ;;  %v2677_v27 = vld [vmem:[#allocation10 + $0x558] sm:$0xff]  ;;  %v2331_v28 = vld [vmem:[#allocation10 + $0x3d0] sm:$0xff] }
 0x4f3   : > { %2085 = vmatprep.subr.mxu1 %v1655_v29  ;;  %2412 = vmatprep.subr.mxu0 %v2306_v30  ;;  %v2676_v29 = vld [vmem:[#allocation10 + $0x550] sm:$0xff]  ;;  %v2326_v30 = vld [vmem:[#allocation10 + $0x3a8] sm:$0xff] }
 0x4f4   : > { %2086 = vmatpush1.msra.mxu1 %v1654_v31  ;;  %2119 = vmatprep.mubr.f32.mxu1 %v6086_v36  ;;  %v2671_v31 = vld [vmem:[#allocation10 + $0x528] sm:$0xff] }
 0x4f5   : > { %2413 = vmatpush1.msra.mxu0 %v2305_v32  ;;  %2446 = vmatprep.mubr.f32.mxu0 %v6086_v36  ;;  %v2325_v32 = vld [vmem:[#allocation10 + $0x3a0] sm:$0xff] }
 0x4f6   : > { %5593 = vmatmul.mubr.msk.f32.vlgmr.msra.gmra.mxu1 %vm1757_vm12, %v6405_v21  ;;  %5601 = vmatprep.subr.msk.mxu1 %vm1475_vm8, %v1701_v35  ;;  %v2320_v35 = vld [vmem:[#allocation10 + $0x378] sm:$0xff] }
 0x4f7   : > { %5608 = vmatmul.mubr.msk.f32.vlgmr.msra.gmra.mxu0 %vm1757_vm12, %v6481_v40  ;;  %5616 = vmatprep.subr.msk.mxu0 %vm1475_vm8, %v2352_v37  ;;  %v2319_v37 = vld [vmem:[#allocation10 + $0x370] sm:$0xff] }
 0x4f8   : > { %5602 = vmatpush1.msk.msra.mxu1 %vm1475_vm8, %v1700_v38  ;;  %5617 = vmatpush1.msk.msra.mxu0 %vm1475_vm8, %v2351_v39  ;;  %v2664_v38 = vld [vmem:[#allocation10 + $0x4f0] sm:$0xff]  ;;  %v2314_v39 = vld [vmem:[#allocation10 + $0x348] sm:$0xff] }
 0x4f9   : > { %2239 = vmatprep.subr.mxu1 %v1695_v41  ;;  %2566 = vmatprep.subr.mxu0 %v2346_v42  ;;  %v2659_v41 = vld [vmem:[#allocation10 + $0x4c8] sm:$0xff]  ;;  %v2313_v42 = vld [vmem:[#allocation10 + $0x340] sm:$0xff] }
 0x4fa   : > { %2125 = vmatprep.mubr.f32.mxu1 %v6086_v36  ;;  %2240 = vmatpush1.msra.mxu1 %v1694_v44  ;;  %v2658_v44 = vld [vmem:[#allocation10 + $0x4c0] sm:$0xff] }
 0x4fb   : > { %2452 = vmatprep.mubr.f32.mxu0 %v6086_v36  ;;  %2567 = vmatpush1.msra.mxu0 %v2345_v46  ;;  %v2308_v46 = vld [vmem:[#allocation10 + $0x318] sm:$0xff] }
 0x4fc   : > { %5594 = vmatmul.mubr.msk.f32.gmra.mxu1 %vm1757_vm12, %v6408_v8  ;;  %2241 = vmatprep.subr.mxu1 %v1689_v49  ;;  %v2653_v49 = vld [vmem:[#allocation10 + $0x498] sm:$0xff] }
 0x4fd   : > { %5609 = vmatmul.mubr.msk.f32.gmra.mxu0 %vm1757_vm12, %v6497_v55  ;;  %2568 = vmatprep.subr.mxu0 %v2340_v50  ;;  %v2307_v50 = vld [vmem:[#allocation10 + $0x310] sm:$0xff] }
 0x4fe   : > { %2242 = vmatpush1.msra.mxu1 %v1688_v51  ;;  %2569 = vmatpush1.msra.mxu0 %v2339_v53  ;;  %v2652_v51 = vld [vmem:[#allocation10 + $0x490] sm:$0xff]  ;;  %v2699_v53 = vrot.slane %v6408_v8, 3 }
 0x4ff   : > { %2243 = vmatprep.subr.mxu1 %v1683_v56  ;;  %2570 = vmatprep.subr.mxu0 %v2334_v57  ;;  %v2693_v56 = vld [vmem:[#allocation10 + $0x5d8] sm:$0xf]  ;;  %v2698_v57 = vrot.slane %v6405_v21, 3 }
 0x500   : > { %2131 = vmatprep.mubr.f32.mxu1 %v6086_v36  ;;  %2244 = vmatpush1.msra.mxu1 %v1682_v59  ;;  %v3038_v59 = vld [vmem:[#allocation10 + $0x758] sm:$0xf] }
 0x501   : > { %2458 = vmatprep.mubr.f32.mxu0 %v6086_v36  ;;  %2571 = vmatpush1.msra.mxu0 %v2333_v60  ;;  %v2692_v60 = vld [vmem:[#allocation10 + $0x5d0] sm:$0xf] }
 0x502   : > { %5595 = vmatmul.mubr.msk.f32.gmra.mxu1 %vm1757_vm12, %v6430_v19  ;;  %2245 = vmatprep.subr.mxu1 %v1677_v61  ;;  %v3037_v61 = vld [vmem:[#allocation10 + $0x750] sm:$0xf] }
 0x503   : > { %5610 = vmatmul.mubr.msk.f32.gmra.mxu0 %vm1757_vm12, %v6489_v47  ;;  %2572 = vmatprep.subr.mxu0 %v2328_v63  ;;  %v6537_v63 = vsel %vm1644_vm11, %v2698_v57, %v2699_v53  ;;  %v3024_v57 = vld [vmem:[#allocation10 + $0x6e8] sm:$0xff] }
 0x504   : > { %2246 = vmatpush1.msra.mxu1 %v1676_v3  ;;  %2573 = vmatpush1.msra.mxu0 %v2327_v4  ;;  %v2687_v3 = vld [vmem:[#allocation10 + $0x5a8] sm:$0xff] }
 0x505   : > { %2247 = vmatprep.subr.mxu1 %v1671_v5  ;;  %2574 = vmatprep.subr.mxu0 %v2322_v6  ;;  %v3032_v4 = vld [vmem:[#allocation10 + $0x728] sm:$0xff]  ;;  %v2686_v5 = vld [vmem:[#allocation10 + $0x5a0] sm:$0xff] }
 0x506   : > { %2248 = vmatpush1.msra.mxu1 %v1670_v7  ;;  %2575 = vmatpush1.msra.mxu0 %v2321_v1  ;;  %v3031_v6 = vld [vmem:[#allocation10 + $0x720] sm:$0xff]  ;;  %v2681_v7 = vld [vmem:[#allocation10 + $0x578] sm:$0xff] }
 0x507   : > { %2249 = vmatprep.subr.mxu1 %v1665_v9  ;;  %2576 = vmatprep.subr.mxu0 %v2316_v10  ;;  %v3026_v1 = vld [vmem:[#allocation10 + $0x6f8] sm:$0xff]  ;;  %v2680_v9 = vld [vmem:[#allocation10 + $0x570] sm:$0xff] }
 0x508   : > { %2250 = vmatpush1.msra.mxu1 %v1664_v11  ;;  %2577 = vmatpush1.msra.mxu0 %v2315_v12  ;;  %v3025_v10 = vld [vmem:[#allocation10 + $0x6f0] sm:$0xff]  ;;  %v2675_v12 = vld [vmem:[#allocation10 + $0x548] sm:$0xff] }
 0x509   : > { %2251 = vmatprep.subr.mxu1 %v1659_v14  ;;  %2578 = vmatprep.subr.mxu0 %v2310_v15  ;;  %v3020_v14 = vld [vmem:[#allocation10 + $0x6c8] sm:$0xff]  ;;  %v2674_v15 = vld [vmem:[#allocation10 + $0x540] sm:$0xff] }
 0x50a   : > { %2252 = vmatpush1.msra.mxu1 %v1658_v16  ;;  %2285 = vmatprep.mubr.f32.mxu1 %v6086_v36  ;;  %v3019_v16 = vld [vmem:[#allocation10 + $0x6c0] sm:$0xff] }
 0x50b   : > { %2579 = vmatpush1.msra.mxu0 %v2309_v2  ;;  %2612 = vmatprep.mubr.f32.mxu0 %v6086_v36  ;;  %v2669_v2 = vld [vmem:[#allocation10 + $0x518] sm:$0xff] }
 0x50c   : > { %5603 = vmatmul.mubr.msk.f32.vlgmr.msra.gmra.mxu1 %vm1757_vm12, %v6405_v21  ;;  %5611 = vmatprep.subr.msk.mxu1 %vm1475_vm8, %v2350_v52  ;;  %v3014_v52 = vld [vmem:[#allocation10 + $0x698] sm:$0xff] }
 0x50d   : > { %5618 = vmatmul.mubr.msk.f32.vlgmr.msra.gmra.mxu0 %vm1757_vm12, %v6481_v40  ;;  %5626 = vmatprep.subr.msk.mxu0 %vm1475_vm8, %v2695_v17  ;;  %v2668_v17 = vld [vmem:[#allocation10 + $0x510] sm:$0xff] }
 0x50e   : > { %5612 = vmatpush1.msk.msra.mxu1 %vm1475_vm8, %v2349_v18  ;;  %5627 = vmatpush1.msk.msra.mxu0 %vm1475_vm8, %v2694_v58  ;;  %v3013_v18 = vld [vmem:[#allocation10 + $0x690] sm:$0xff]  ;;  %v2663_v58 = vld [vmem:[#allocation10 + $0x4e8] sm:$0xff] }
 0x50f   : > { %2483 = vmatprep.subr.mxu1 %v2344_v62  ;;  %2828 = vmatprep.subr.mxu0 %v2689_v20  ;;  %v3008_v62 = vld [vmem:[#allocation10 + $0x668] sm:$0xff]  ;;  %v2662_v20 = vld [vmem:[#allocation10 + $0x4e0] sm:$0xff] }
 0x510   : > { %2291 = vmatprep.mubr.f32.mxu1 %v6086_v36  ;;  %2484 = vmatpush1.msra.mxu1 %v2343_v22  ;;  %v3007_v22 = vld [vmem:[#allocation10 + $0x660] sm:$0xff] }
 0x511   : > { %2618 = vmatprep.mubr.f32.mxu0 %v6086_v36  ;;  %2829 = vmatpush1.msra.mxu0 %v2688_v23  ;;  %v2657_v23 = vld [vmem:[#allocation10 + $0x4b8] sm:$0xff] }
 0x512   : > { %5604 = vmatmul.mubr.msk.f32.gmra.mxu1 %vm1757_vm12, %v6408_v8  ;;  %2485 = vmatprep.subr.mxu1 %v2338_v48  ;;  %v3002_v48 = vld [vmem:[#allocation10 + $0x638] sm:$0xff] }
 0x513   : > { %5619 = vmatmul.mubr.msk.f32.gmra.mxu0 %vm1757_vm12, %v6497_v55  ;;  %2830 = vmatprep.subr.mxu0 %v2683_v24  ;;  %v2656_v24 = vld [vmem:[#allocation10 + $0x4b0] sm:$0xff] }
 0x514   : > { %2486 = vmatpush1.msra.mxu1 %v2337_v25  ;;  %2831 = vmatpush1.msra.mxu0 %v2682_v26  ;;  %v3001_v25 = vld [vmem:[#allocation10 + $0x630] sm:$0xff]  ;;  %v2651_v26 = vld [vmem:[#allocation10 + $0x488] sm:$0xff] }
 0x515   : > { %2487 = vmatprep.subr.mxu1 %v2332_v54  ;;  %2832 = vmatprep.subr.mxu0 %v2677_v27  ;;  %v2996_v54 = vld [vmem:[#allocation10 + $0x608] sm:$0xff]  ;;  %v2650_v27 = vld [vmem:[#allocation10 + $0x480] sm:$0xff] }
 0x516   : > { %2297 = vmatprep.mubr.f32.mxu1 %v6086_v36  ;;  %2488 = vmatpush1.msra.mxu1 %v2331_v28  ;;  %v2995_v28 = vld [vmem:[#allocation10 + $0x600] sm:$0xff] }
 0x517   : > { %2624 = vmatprep.mubr.f32.mxu0 %v6086_v36  ;;  %2833 = vmatpush1.msra.mxu0 %v2676_v29  ;;  %v3045_v29 = vrot.slane %v6408_v8, 4 }
 0x518   : > { %5605 = vmatmul.mubr.msk.f32.gmra.mxu1 %vm1757_vm12, %v6430_v19  ;;  %2489 = vmatprep.subr.mxu1 %v2326_v30  ;;  %v2697_v30 = vld [vmem:[#allocation10 + $0x5f8] sm:$0xf] }
 0x519   : > { %5620 = vmatmul.mubr.msk.f32.gmra.mxu0 %vm1757_vm12, %v6489_v47  ;;  %2834 = vmatprep.subr.mxu0 %v2671_v31  ;;  %v3044_v31 = vrot.slane %v6405_v21, 4 }
 0x51a   : > { %2490 = vmatpush1.msra.mxu1 %v2325_v32  ;;  %2835 = vmatpush1.msra.mxu0 %v2670_v34  ;;  %v3042_v32 = vld [vmem:[#allocation10 + $0x778] sm:$0xf]  ;;  %v2696_v34 = vld [vmem:[#allocation10 + $0x5f0] sm:$0xf] }
 0x51b   : > { %2491 = vmatprep.subr.mxu1 %v2320_v35  ;;  %2836 = vmatprep.subr.mxu0 %v2665_v13  ;;  %v3041_v35 = vld [vmem:[#allocation10 + $0x770] sm:$0xf]  ;;  %v6571_v13 = vsel %vm1475_vm8, %v3044_v31, %v3045_v29  ;;  %v3016_v31 = vld [vmem:[#allocation10 + $0x6a8] sm:$0xff] }
 0x51c   : > { %2492 = vmatpush1.msra.mxu1 %v2319_v37  ;;  %2837 = vmatpush1.msra.mxu0 %v2664_v38  ;;  %v2691_v37 = vld [vmem:[#allocation10 + $0x5c8] sm:$0xff] }
 0x51d   : > { %2493 = vmatprep.subr.mxu1 %v2314_v39  ;;  %2838 = vmatprep.subr.mxu0 %v2659_v41  ;;  %v3036_v38 = vld [vmem:[#allocation10 + $0x748] sm:$0xff]  ;;  %v2690_v39 = vld [vmem:[#allocation10 + $0x5c0] sm:$0xff] }
 0x51e   : > { %2494 = vmatpush1.msra.mxu1 %v2313_v42  ;;  %2839 = vmatpush1.msra.mxu0 %v2658_v44  ;;  %v3035_v41 = vld [vmem:[#allocation10 + $0x740] sm:$0xff]  ;;  %v3047_v42 = vrot.slane %v6430_v19, 4  ;;  %v2685_v44 = vld [vmem:[#allocation10 + $0x598] sm:$0xff] }
 0x51f   : > { %2495 = vmatprep.subr.mxu1 %v2308_v46  ;;  %2840 = vmatprep.subr.mxu0 %v2653_v49  ;;  %v3030_v46 = vld [vmem:[#allocation10 + $0x718] sm:$0xff]  ;;  %v6583_v49 = vsel %vm1456_vm7, %v1648_v0, 0.0  ;;  %v3023_v0 = vld [vmem:[#allocation10 + $0x6e0] sm:$0xff] }
 0x520   : > { %2496 = vmatpush1.msra.mxu1 %v2307_v50  ;;  %2529 = vmatprep.mubr.f32.mxu1 %v6086_v36  ;;  %v2684_v50 = vld [vmem:[#allocation10 + $0x590] sm:$0xff] }
 0x521   : > { %2841 = vmatpush1.msra.mxu0 %v2652_v51  ;;  %2874 = vmatprep.mubr.f32.mxu0 %v6086_v36  ;;  %v3029_v51 = vld [vmem:[#allocation10 + $0x710] sm:$0xff] }
 0x522   : > { %5613 = vmatmul.mubr.msk.f32.vlgmr.msra.gmra.mxu1 %vm1757_vm12, %v6481_v40  ;;  %5621 = vmatprep.subr.msk.mxu1 %vm1475_vm8, %v2693_v56  ;;  %v6545_v40 = vrot.slane %v6430_v19, 3  ;;  %v2679_v56 = vld [vmem:[#allocation10 + $0x568] sm:$0xff] }
 0x523   : > { %5628 = vmatmul.mubr.msk.f32.vlgmr.msra.gmra.mxu0 %vm1757_vm12, %v6537_v63  ;;  %5636 = vmatprep.subr.msk.mxu0 %vm1475_vm8, %v3038_v59  ;;  %v3049_v59 = vrot.slane %v6583_v49, 4 }
 0x524   : > { %5622 = vmatpush1.msk.msra.mxu1 %vm1475_vm8, %v2692_v60  ;;  %5637 = vmatpush1.msk.msra.mxu0 %vm1475_vm8, %v3037_v61  ;;  %v6553_v11 = vsel %vm1644_vm11, %v2699_v53, %v6545_v40  ;;  %v6589_v53 = vsel %vm1475_vm8, %v3045_v29, %v3047_v42  ;;  %v2673_v60 = vld [vmem:[#allocation10 + $0x538] sm:$0xff]  ;;  %v3021_v29 = vld [vmem:[#allocation10 + $0x6d0] sm:$0xff] }
 0x525   : > { %2745 = vmatprep.subr.mxu1 %v2687_v3  ;;  %3093 = vmatprep.subr.mxu0 %v3032_v4  ;;  %v3018_v61 = vld [vmem:[#allocation10 + $0x6b8] sm:$0xff]  ;;  %v2672_v3 = vld [vmem:[#allocation10 + $0x530] sm:$0xff] }
 0x526   : > { %2535 = vmatprep.mubr.f32.mxu1 %v6086_v36  ;;  %2746 = vmatpush1.msra.mxu1 %v2686_v5  ;;  %v3017_v4 = vld [vmem:[#allocation10 + $0x6b0] sm:$0xff]  ;;  %v6599_v5 = vsel %vm1475_vm8, %v3047_v42, %v3049_v59  ;;  %v3352_v42 = vld [vmem:[#allocation10 + $0x7c8] sm:$0xff]  ;;  %v3734_v59 = vld [vmem:[#allocation10 + $0xa58] sm:$0xf] }
 0x527   : > { %2880 = vmatprep.mubr.f32.mxu0 %v6086_v36  ;;  %3094 = vmatpush1.msra.mxu0 %v3031_v6  ;;  %v2667_v6 = vld [vmem:[#allocation10 + $0x508] sm:$0xff] }
 0x528   : > { %5614 = vmatmul.mubr.msk.f32.gmra.mxu1 %vm1757_vm12, %v6497_v55  ;;  %2747 = vmatprep.subr.mxu1 %v2681_v7  ;;  %v3012_v7 = vld [vmem:[#allocation10 + $0x688] sm:$0xff] }
 0x529   : > { %5629 = vmatmul.mubr.msk.f32.gmra.mxu0 %vm1757_vm12, %v6553_v11  ;;  %3095 = vmatprep.subr.mxu0 %v3026_v1  ;;  %v2666_v1 = vld [vmem:[#allocation10 + $0x500] sm:$0xff] }
 0x52a   : > { %2748 = vmatpush1.msra.mxu1 %v2680_v9  ;;  %3096 = vmatpush1.msra.mxu0 %v3025_v10  ;;  %v3011_v9 = vld [vmem:[#allocation10 + $0x680] sm:$0xff]  ;;  %v2661_v10 = vld [vmem:[#allocation10 + $0x4d8] sm:$0xff] }
 0x52b   : > { %2749 = vmatprep.subr.mxu1 %v2675_v12  ;;  %3097 = vmatprep.subr.mxu0 %v3020_v14  ;;  %v3006_v12 = vld [vmem:[#allocation10 + $0x658] sm:$0xff]  ;;  %v2660_v14 = vld [vmem:[#allocation10 + $0x4d0] sm:$0xff] }
 0x52c   : > { %2541 = vmatprep.mubr.f32.mxu1 %v6086_v36  ;;  %2750 = vmatpush1.msra.mxu1 %v2674_v15  ;;  %v3005_v15 = vld [vmem:[#allocation10 + $0x650] sm:$0xff] }
 0x52d   : > { %2886 = vmatprep.mubr.f32.mxu0 %v6086_v36  ;;  %3098 = vmatpush1.msra.mxu0 %v3019_v16  ;;  %v2655_v16 = vld [vmem:[#allocation10 + $0x4a8] sm:$0xff] }
 0x52e   : > { %5615 = vmatmul.mubr.msk.f32.gmra.mxu1 %vm1757_vm12, %v6489_v47  ;;  %2751 = vmatprep.subr.mxu1 %v2669_v2  ;;  %v3000_v2 = vld [vmem:[#allocation10 + $0x628] sm:$0xff] }
 0x52f   : > { %5630 = vmatmul.mubr.msk.f32.gmra.mxu0 %vm1757_vm12, %v6545_v40  ;;  %3099 = vmatprep.subr.mxu0 %v3014_v52  ;;  %v2654_v52 = vld [vmem:[#allocation10 + $0x4a0] sm:$0xff] }
 0x530   : > { %2752 = vmatpush1.msra.mxu1 %v2668_v17  ;;  %3100 = vmatpush1.msra.mxu0 %v3013_v18  ;;  %v2999_v17 = vld [vmem:[#allocation10 + $0x620] sm:$0xff]  ;;  %v3040_v18 = vld [vmem:[#allocation10 + $0x768] sm:$0xf] }
 0x531   : > { %2753 = vmatprep.subr.mxu1 %v2663_v58  ;;  %3101 = vmatprep.subr.mxu0 %v3008_v62  ;;  %v3388_v58 = vld [vmem:[#allocation10 + $0x8e8] sm:$0xf]  ;;  %v3039_v62 = vld [vmem:[#allocation10 + $0x760] sm:$0xf] }
 0x532   : > { %2754 = vmatpush1.msra.mxu1 %v2662_v20  ;;  %3102 = vmatpush1.msra.mxu0 %v3007_v22  ;;  %v3387_v20 = vld [vmem:[#allocation10 + $0x8e0] sm:$0xf]  ;;  %v3034_v22 = vld [vmem:[#allocation10 + $0x738] sm:$0xff] }
 0x533   : > { %2755 = vmatprep.subr.mxu1 %v2657_v23  ;;  %3103 = vmatprep.subr.mxu0 %v3002_v48  ;;  %v3382_v23 = vld [vmem:[#allocation10 + $0x8b8] sm:$0xff]  ;;  %v3033_v48 = vld [vmem:[#allocation10 + $0x730] sm:$0xff] }
 0x534   : > { %2756 = vmatpush1.msra.mxu1 %v2656_v24  ;;  %3104 = vmatpush1.msra.mxu0 %v3001_v25  ;;  %v3381_v24 = vld [vmem:[#allocation10 + $0x8b0] sm:$0xff]  ;;  %v3028_v25 = vld [vmem:[#allocation10 + $0x708] sm:$0xff] }
 0x535   : > { %2757 = vmatprep.subr.mxu1 %v2651_v26  ;;  %3105 = vmatprep.subr.mxu0 %v2996_v54  ;;  %v3027_v26 = vld [vmem:[#allocation10 + $0x700] sm:$0xff] }
 0x536   : > { %2758 = vmatpush1.msra.mxu1 %v2650_v27  ;;  %2791 = vmatprep.mubr.f32.mxu1 %v6086_v36  ;;  %v3375_v54 = vld [vmem:[#allocation10 + $0x880] sm:$0xff]  ;;  %v3022_v27 = vld [vmem:[#allocation10 + $0x6d8] sm:$0xff] }
 0x537   : > { %3106 = vmatpush1.msra.mxu0 %v2995_v28  ;;  %3139 = vmatprep.mubr.f32.mxu0 %v6086_v36  ;;  %v3370_v28 = vld [vmem:[#allocation10 + $0x858] sm:$0xff] }
 0x538   : > { %5623 = vmatmul.mubr.msk.f32.vlgmr.msra.gmra.mxu1 %vm1757_vm12, %v6537_v63  ;;  %5631 = vmatprep.subr.msk.mxu1 %vm1475_vm8, %v2697_v30  ;;  %v3369_v30 = vld [vmem:[#allocation10 + $0x850] sm:$0xff] }
 0x539   : > { %5638 = vmatmul.mubr.msk.f32.vlgmr.msra.gmra.mxu0 %vm1757_vm12, %v6571_v13  ;;  %5646 = vmatprep.subr.msk.mxu0 %vm1475_vm8, %v3042_v32  ;;  %v3364_v32 = vld [vmem:[#allocation10 + $0x828] sm:$0xff] }
 0x53a   : > { %5632 = vmatpush1.msk.msra.mxu1 %vm1475_vm8, %v2696_v34  ;;  %5647 = vmatpush1.msk.msra.mxu0 %vm1475_vm8, %v3041_v35  ;;  %v3363_v34 = vld [vmem:[#allocation10 + $0x820] sm:$0xff]  ;;  %v3010_v35 = vld [vmem:[#allocation10 + $0x678] sm:$0xff] }
 0x53b   : > { %2911 = vmatprep.subr.mxu1 %v2691_v37  ;;  %3259 = vmatprep.subr.mxu0 %v3036_v38  ;;  %v3358_v37 = vld [vmem:[#allocation10 + $0x7f8] sm:$0xff]  ;;  %v3009_v38 = vld [vmem:[#allocation10 + $0x670] sm:$0xff] }
 0x53c   : > { %2797 = vmatprep.mubr.f32.mxu1 %v6086_v36  ;;  %2912 = vmatpush1.msra.mxu1 %v2690_v39  ;;  %v3357_v39 = vld [vmem:[#allocation10 + $0x7f0] sm:$0xff] }
 0x53d   : > { %3145 = vmatprep.mubr.f32.mxu0 %v6086_v36  ;;  %3260 = vmatpush1.msra.mxu0 %v3035_v41  ;;  %v3004_v41 = vld [vmem:[#allocation10 + $0x648] sm:$0xff] }
 0x53e   : > { %5624 = vmatmul.mubr.msk.f32.gmra.mxu1 %vm1757_vm12, %v6553_v11  ;;  %2913 = vmatprep.subr.mxu1 %v2685_v44  ;;  %v3003_v44 = vld [vmem:[#allocation10 + $0x640] sm:$0xff] }
 0x53f   : > { %5639 = vmatmul.mubr.msk.f32.gmra.mxu0 %vm1757_vm12, %v6589_v53  ;;  %3261 = vmatprep.subr.mxu0 %v3030_v46  ;;  %v3351_v46 = vld [vmem:[#allocation10 + $0x7c0] sm:$0xff] }
 0x540   : > { %2914 = vmatpush1.msra.mxu1 %v2684_v50  ;;  %3262 = vmatpush1.msra.mxu0 %v3029_v51  ;;  %v3346_v50 = vld [vmem:[#allocation10 + $0x798] sm:$0xff]  ;;  %v2997_v51 = vld [vmem:[#allocation10 + $0x610] sm:$0xff] }
 0x541   : > { %2915 = vmatprep.subr.mxu1 %v2679_v56  ;;  %3263 = vmatprep.subr.mxu0 %v3024_v57  ;;  %v3345_v56 = vld [vmem:[#allocation10 + $0x790] sm:$0xff]  ;;  %v3393_v57 = vrot.slane %v6408_v8, 5 }
 0x542   : > { %2803 = vmatprep.mubr.f32.mxu1 %v6086_v36  ;;  %2916 = vmatpush1.msra.mxu1 %v2678_v33  ;;  %v3386_v33 = vld [vmem:[#allocation10 + $0x8d8] sm:$0xf] }
 0x543   : > { %3151 = vmatprep.mubr.f32.mxu0 %v6086_v36  ;;  %3264 = vmatpush1.msra.mxu0 %v3023_v0  ;;  %v3392_v0 = vrot.slane %v6405_v21, 5 }
 0x544   : > { %5625 = vmatmul.mubr.msk.f32.gmra.mxu1 %vm1757_vm12, %v6545_v40  ;;  %2917 = vmatprep.subr.mxu1 %v2673_v60  ;;  %v3385_v60 = vld [vmem:[#allocation10 + $0x8d0] sm:$0xf] }
 0x545   : > { %5640 = vmatmul.mubr.msk.f32.gmra.mxu0 %vm1757_vm12, %v6599_v5  ;;  %3265 = vmatprep.subr.mxu0 %v3018_v61  ;;  %v3733_v61 = vld [vmem:[#allocation10 + $0xa50] sm:$0xf] }
 0x546   : > { %2918 = vmatpush1.msra.mxu1 %v2672_v3  ;;  %3266 = vmatpush1.msra.mxu0 %v3017_v4  ;;  %v6633_v3 = vsel %vm3391_vm13, %v3392_v0, %v3393_v57  ;;  %v3380_v4 = vld [vmem:[#allocation10 + $0x8a8] sm:$0xff] }
 0x547   : > { %2919 = vmatprep.subr.mxu1 %v2667_v6  ;;  %3267 = vmatprep.subr.mxu0 %v3012_v7  ;;  %v3728_v6 = vld [vmem:[#allocation10 + $0xa28] sm:$0xff]  ;;  %v3379_v7 = vld [vmem:[#allocation10 + $0x8a0] sm:$0xff] }
 0x548   : > { %2920 = vmatpush1.msra.mxu1 %v2666_v1  ;;  %3268 = vmatpush1.msra.mxu0 %v3011_v9  ;;  %v3727_v1 = vld [vmem:[#allocation10 + $0xa20] sm:$0xff]  ;;  %v3374_v9 = vld [vmem:[#allocation10 + $0x878] sm:$0xff]  ;;  %v3720_v0 = vld [vmem:[#allocation10 + $0x9e8] sm:$0xff] }
 0x549   : > { %2921 = vmatprep.subr.mxu1 %v2661_v10  ;;  %3269 = vmatprep.subr.mxu0 %v3006_v12  ;;  %v3722_v10 = vld [vmem:[#allocation10 + $0x9f8] sm:$0xff]  ;;  %v3373_v12 = vld [vmem:[#allocation10 + $0x870] sm:$0xff] }
 0x54a   : > { %2922 = vmatpush1.msra.mxu1 %v2660_v14  ;;  %3270 = vmatpush1.msra.mxu0 %v3005_v15  ;;  %v3721_v14 = vld [vmem:[#allocation10 + $0x9f0] sm:$0xff] }
 0x54b   : > { %2923 = vmatprep.subr.mxu1 %v2655_v16  ;;  %3271 = vmatprep.subr.mxu0 %v3000_v2  ;;  %v3368_v16 = vld [vmem:[#allocation10 + $0x848] sm:$0xff] }
 0x54c   : > { %2924 = vmatpush1.msra.mxu1 %v2654_v52  ;;  %2957 = vmatprep.mubr.f32.mxu1 %v6086_v36  ;;  %v3716_v2 = vld [vmem:[#allocation10 + $0x9c8] sm:$0xff]  ;;  %v3367_v52 = vld [vmem:[#allocation10 + $0x840] sm:$0xff] }
 0x54d   : > { %3272 = vmatpush1.msra.mxu0 %v2999_v17  ;;  %3305 = vmatprep.mubr.f32.mxu0 %v6086_v36  ;;  %v3715_v17 = vld [vmem:[#allocation10 + $0x9c0] sm:$0xff] }
 0x54e   : > { %5633 = vmatmul.mubr.msk.f32.vlgmr.msra.gmra.mxu1 %vm1757_vm12, %v6537_v63  ;;  %5641 = vmatprep.subr.msk.mxu1 %vm1475_vm8, %v3040_v18  ;;  %v3376_v63 = vld [vmem:[#allocation10 + $0x888] sm:$0xff]  ;;  %v3397_v18 = vrot.slane %v6583_v49, 5 }
 0x54f   : > { %5648 = vmatmul.mubr.msk.f32.vlgmr.msra.gmra.mxu0 %vm1757_vm12, %v6571_v13  ;;  %5656 = vmatprep.subr.msk.mxu0 %vm1475_vm8, %v3388_v58  ;;  %v3362_v58 = vld [vmem:[#allocation10 + $0x818] sm:$0xff] }
 0x550   : > { %5642 = vmatpush1.msk.msra.mxu1 %vm1475_vm8, %v3039_v62  ;;  %5657 = vmatpush1.msk.msra.mxu0 %vm1475_vm8, %v3387_v20  ;;  %v3361_v62 = vld [vmem:[#allocation10 + $0x810] sm:$0xff] }
 0x551   : > { %3176 = vmatprep.subr.mxu1 %v3034_v22  ;;  %3524 = vmatprep.subr.mxu0 %v3382_v23  ;;  %v3709_v20 = vld [vmem:[#allocation10 + $0x990] sm:$0xff]  ;;  %v3356_v23 = vld [vmem:[#allocation10 + $0x7e8] sm:$0xff] }
 0x552   : > { %2963 = vmatprep.mubr.f32.mxu1 %v6086_v36  ;;  %3177 = vmatpush1.msra.mxu1 %v3033_v48  ;;  %v3704_v48 = vld [vmem:[#allocation10 + $0x968] sm:$0xff] }
 0x553   : > { %3311 = vmatprep.mubr.f32.mxu0 %v6086_v36  ;;  %3525 = vmatpush1.msra.mxu0 %v3381_v24  ;;  %v3355_v24 = vld [vmem:[#allocation10 + $0x7e0] sm:$0xff] }
 0x554   : > { %5634 = vmatmul.mubr.msk.f32.gmra.mxu1 %vm1757_vm12, %v6553_v11  ;;  %3178 = vmatprep.subr.mxu1 %v3028_v25  ;;  %v3015_v11 = vld [vmem:[#allocation10 + $0x6a0] sm:$0xff] }
 0x555   : > { %5649 = vmatmul.mubr.msk.f32.gmra.mxu0 %vm1757_vm12, %v6589_v53  ;;  %3526 = vmatprep.subr.mxu0 %v3376_v63  ;;  %v3703_v25 = vld [vmem:[#allocation10 + $0x960] sm:$0xff]  ;;  %v3350_v63 = vld [vmem:[#allocation10 + $0x7b8] sm:$0xff] }
 0x556   : > { %3179 = vmatpush1.msra.mxu1 %v3027_v26  ;;  %3527 = vmatpush1.msra.mxu0 %v3375_v54  ;;  %v3698_v26 = vld [vmem:[#allocation10 + $0x938] sm:$0xff]  ;;  %v3349_v54 = vld [vmem:[#allocation10 + $0x7b0] sm:$0xff] }
 0x557   : > { %3180 = vmatprep.subr.mxu1 %v3022_v27  ;;  %3528 = vmatprep.subr.mxu0 %v3370_v28  ;;  %v3344_v27 = vld [vmem:[#allocation10 + $0x788] sm:$0xff] }
 0x558   : > { %2969 = vmatprep.mubr.f32.mxu1 %v6086_v36  ;;  %3181 = vmatpush1.msra.mxu1 %v3021_v29  ;;  %v3692_v28 = vld [vmem:[#allocation10 + $0x908] sm:$0xff]  ;;  %v3343_v29 = vld [vmem:[#allocation10 + $0x780] sm:$0xff] }
 0x559   : > { %3317 = vmatprep.mubr.f32.mxu0 %v6086_v36  ;;  %3529 = vmatpush1.msra.mxu0 %v3369_v30  ;;  %v3691_v30 = vld [vmem:[#allocation10 + $0x900] sm:$0xff] }
 0x55a   : > { %5635 = vmatmul.mubr.msk.f32.gmra.mxu1 %vm1757_vm12, %v6545_v40  ;;  %3182 = vmatprep.subr.mxu1 %v3016_v31  ;;  %v2998_v40 = vld [vmem:[#allocation10 + $0x618] sm:$0xff]  ;;  %v3740_v31 = vrot.slane %v6408_v8, 6 }
 0x55b   : > { %5650 = vmatmul.mubr.msk.f32.gmra.mxu0 %vm1757_vm12, %v6599_v5  ;;  %3530 = vmatprep.subr.mxu0 %v3364_v32  ;;  %v3390_v32 = vld [vmem:[#allocation10 + $0x8f8] sm:$0xf] }
 0x55c   : > { %3183 = vmatpush1.msra.mxu1 %v3015_v11  ;;  %3531 = vmatpush1.msra.mxu0 %v3363_v34  ;;  %v3739_v11 = vrot.slane %v6405_v21, 6  ;;  %v3738_v34 = vld [vmem:[#allocation10 + $0xa78] sm:$0xf] }
 0x55d   : > { %3184 = vmatprep.subr.mxu1 %v3010_v35  ;;  %3532 = vmatprep.subr.mxu0 %v3358_v37  ;;  %v3389_v35 = vld [vmem:[#allocation10 + $0x8f0] sm:$0xf] }
 0x55e   : > { %3185 = vmatpush1.msra.mxu1 %v3009_v38  ;;  %3533 = vmatpush1.msra.mxu0 %v3357_v39  ;;  %v3737_v37 = vld [vmem:[#allocation10 + $0xa70] sm:$0xf]  ;;  %v6668_v38 = vsel %vm1456_vm7, %v3739_v11, %v3740_v31  ;;  %v3384_v39 = vld [vmem:[#allocation10 + $0x8c8] sm:$0xff] }
 0x55f   : > { %3186 = vmatprep.subr.mxu1 %v3004_v41  ;;  %3534 = vmatprep.subr.mxu0 %v3352_v42  ;;  %v3732_v41 = vld [vmem:[#allocation10 + $0xa48] sm:$0xff]  ;;  %v3383_v42 = vld [vmem:[#allocation10 + $0x8c0] sm:$0xff] }
 0x560   : > { %3187 = vmatpush1.msra.mxu1 %v3003_v44  ;;  %3535 = vmatpush1.msra.mxu0 %v3351_v46  ;;  %v3731_v44 = vld [vmem:[#allocation10 + $0xa40] sm:$0xff]  ;;  %v3742_v46 = vrot.slane %v6430_v19, 6 }
 0x561   : > { %3188 = vmatprep.subr.mxu1 %v2998_v40  ;;  %3536 = vmatprep.subr.mxu0 %v3346_v50  ;;  %v3378_v40 = vld [vmem:[#allocation10 + $0x898] sm:$0xff] }
 0x562   : > { %3189 = vmatpush1.msra.mxu1 %v2997_v51  ;;  %3222 = vmatprep.mubr.f32.mxu1 %v6086_v36  ;;  %v3726_v50 = vld [vmem:[#allocation10 + $0xa18] sm:$0xff]  ;;  %v3377_v51 = vld [vmem:[#allocation10 + $0x890] sm:$0xff] }
 0x563   : > { %3537 = vmatpush1.msra.mxu0 %v3345_v56  ;;  %3570 = vmatprep.mubr.f32.mxu0 %v6086_v36  ;;  %v3725_v56 = vld [vmem:[#allocation10 + $0xa10] sm:$0xff] }
 0x564   : > { %5643 = vmatmul.mubr.msk.f32.vlgmr.msra.gmra.mxu1 %vm1757_vm12, %v6571_v13  ;;  %5651 = vmatprep.subr.msk.mxu1 %vm1475_vm8, %v3386_v33  ;;  %v3395_v13 = vrot.slane %v6430_v19, 5  ;;  %v3372_v33 = vld [vmem:[#allocation10 + $0x868] sm:$0xff] }
 0x565   : > { %5658 = vmatmul.mubr.msk.f32.vlgmr.msra.gmra.mxu0 %vm1757_vm12, %v6633_v3  ;;  %5666 = vmatprep.subr.msk.mxu0 %vm1475_vm8, %v3734_v59  ;;  %v3371_v59 = vld [vmem:[#allocation10 + $0x860] sm:$0xff] }
 0x566   : > { %5652 = vmatpush1.msk.msra.mxu1 %vm1475_vm8, %v3385_v60  ;;  %5667 = vmatpush1.msk.msra.mxu0 %vm1475_vm8, %v3733_v61  ;;  %v6646_v15 = vsel %vm3391_vm13, %v3393_v57, %v3395_v13  ;;  %v6656_v22 = vsel %vm3391_vm13, %v3395_v13, %v3397_v18  ;;  %v6681_v57 = vsel %vm1456_vm7, %v3740_v31, %v3742_v46  ;;  %v3719_v60 = vld [vmem:[#allocation10 + $0x9e0] sm:$0xff]  ;;  %v3744_v61 = vrot.slane %v6583_v49, 6  ;;  %v3348_v18 = vld [vmem:[#allocation10 + $0x7a8] sm:$0xff] }
 0x567   : > { %3441 = vmatprep.subr.mxu1 %v3380_v4  ;;  %3788 = vmatprep.subr.mxu0 %v3728_v6  ;;  %v3366_v4 = vld [vmem:[#allocation10 + $0x838] sm:$0xff]  ;;  %v3723_v31 = vld [vmem:[#allocation10 + $0xa00] sm:$0xff] }
 0x568   : > { %3228 = vmatprep.mubr.f32.mxu1 %v6086_v36  ;;  %3442 = vmatpush1.msra.mxu1 %v3379_v7  ;;  %v3714_v6 = vld [vmem:[#allocation10 + $0x9b8] sm:$0xff]  ;;  %v3365_v7 = vld [vmem:[#allocation10 + $0x830] sm:$0xff]  ;;  %v6691_v13 = vsel %vm1456_vm7, %v3742_v46, %v3744_v61  ;;  %v3712_v46 = vld [vmem:[#allocation10 + $0x9a8] sm:$0xff] }
 0x569   : > { %3576 = vmatprep.mubr.f32.mxu0 %v6086_v36  ;;  %3789 = vmatpush1.msra.mxu0 %v3727_v1  ;;  %v3713_v1 = vld [vmem:[#allocation10 + $0x9b0] sm:$0xff] }
 0x56a   : > { %5644 = vmatmul.mubr.msk.f32.gmra.mxu1 %vm1757_vm12, %v6589_v53  ;;  %3443 = vmatprep.subr.mxu1 %v3374_v9  ;;  %v3710_v53 = vld [vmem:[#allocation10 + $0x998] sm:$0xff]  ;;  %v3360_v9 = vld [vmem:[#allocation10 + $0x808] sm:$0xff] }
 0x56b   : > { %5659 = vmatmul.mubr.msk.f32.gmra.mxu0 %vm1757_vm12, %v6646_v15  ;;  %3790 = vmatprep.subr.mxu0 %v3722_v10  ;;  %v3708_v10 = vld [vmem:[#allocation10 + $0x988] sm:$0xff] }
 0x56c   : > { %3444 = vmatpush1.msra.mxu1 %v3373_v12  ;;  %3791 = vmatpush1.msra.mxu0 %v3721_v14  ;;  %v3359_v12 = vld [vmem:[#allocation10 + $0x800] sm:$0xff] }
 0x56d   : > { %3445 = vmatprep.subr.mxu1 %v3368_v16  ;;  %3792 = vmatprep.subr.mxu0 %v3716_v2  ;;  %v3707_v14 = vld [vmem:[#allocation10 + $0x980] sm:$0xff]  ;;  %v3354_v16 = vld [vmem:[#allocation10 + $0x7d8] sm:$0xff] }
 0x56e   : > { %3234 = vmatprep.mubr.f32.mxu1 %v6086_v36  ;;  %3446 = vmatpush1.msra.mxu1 %v3367_v52  ;;  %v3702_v2 = vld [vmem:[#allocation10 + $0x958] sm:$0xff]  ;;  %v3353_v52 = vld [vmem:[#allocation10 + $0x7d0] sm:$0xff] }
 0x56f   : > { %3582 = vmatprep.mubr.f32.mxu0 %v6086_v36  ;;  %3793 = vmatpush1.msra.mxu0 %v3715_v17  ;;  %v3701_v17 = vld [vmem:[#allocation10 + $0x950] sm:$0xff] }
 0x570   : > { %5645 = vmatmul.mubr.msk.f32.gmra.mxu1 %vm1757_vm12, %v6599_v5  ;;  %3447 = vmatprep.subr.mxu1 %v3362_v58  ;;  %v3697_v5 = vld [vmem:[#allocation10 + $0x930] sm:$0xff]  ;;  %v3696_v58 = vld [vmem:[#allocation10 + $0x928] sm:$0xff] }
 0x571   : > { %5660 = vmatmul.mubr.msk.f32.gmra.mxu0 %vm1757_vm12, %v6656_v22  ;;  %3794 = vmatprep.subr.mxu0 %v3710_v53  ;;  %v3347_v53 = vld [vmem:[#allocation10 + $0x7a0] sm:$0xff] }
 0x572   : > { %3448 = vmatpush1.msra.mxu1 %v3361_v62  ;;  %3795 = vmatpush1.msra.mxu0 %v3709_v20  ;;  %v3695_v62 = vld [vmem:[#allocation10 + $0x920] sm:$0xff]  ;;  %v3736_v20 = vld [vmem:[#allocation10 + $0xa68] sm:$0xf] }
 0x573   : > { %3449 = vmatprep.subr.mxu1 %v3356_v23  ;;  %3796 = vmatprep.subr.mxu0 %v3704_v48  ;;  %v4083_v23 = vld [vmem:[#allocation10 + $0xbe8] sm:$0xf]  ;;  %v3735_v48 = vld [vmem:[#allocation10 + $0xa60] sm:$0xf] }
 0x574   : > { %3450 = vmatpush1.msra.mxu1 %v3355_v24  ;;  %3797 = vmatpush1.msra.mxu0 %v3703_v25  ;;  %v4082_v24 = vld [vmem:[#allocation10 + $0xbe0] sm:$0xf] }
 0x575   : > { %3451 = vmatprep.subr.mxu1 %v3350_v63  ;;  %3798 = vmatprep.subr.mxu0 %v3698_v26  ;;  %v3730_v26 = vld [vmem:[#allocation10 + $0xa38] sm:$0xff] }
 0x576   : > { %3452 = vmatpush1.msra.mxu1 %v3349_v54  ;;  %3799 = vmatpush1.msra.mxu0 %v3697_v5  ;;  %v4077_v54 = vld [vmem:[#allocation10 + $0xbb8] sm:$0xff]  ;;  %v3729_v5 = vld [vmem:[#allocation10 + $0xa30] sm:$0xff] }
 0x577   : > { %3453 = vmatprep.subr.mxu1 %v3344_v27  ;;  %3800 = vmatprep.subr.mxu0 %v3692_v28  ;;  %v4076_v27 = vld [vmem:[#allocation10 + $0xbb0] sm:$0xff]  ;;  %v3724_v28 = vld [vmem:[#allocation10 + $0xa08] sm:$0xff] }
 0x578   : > { %3454 = vmatpush1.msra.mxu1 %v3343_v29  ;;  %3487 = vmatprep.mubr.f32.mxu1 %v6086_v36 }
 0x579   : > { %3801 = vmatpush1.msra.mxu0 %v3691_v30  ;;  %3834 = vmatprep.mubr.f32.mxu0 %v6086_v36  ;;  %v4071_v30 = vld [vmem:[#allocation10 + $0xb88] sm:$0xff] }
 0x57a   : > { %5653 = vmatmul.mubr.msk.f32.vlgmr.msra.gmra.mxu1 %vm1757_vm12, %v6633_v3  ;;  %5661 = vmatprep.subr.msk.mxu1 %vm1475_vm8, %v3390_v32  ;;  %v4070_v32 = vld [vmem:[#allocation10 + $0xb80] sm:$0xff] }
 0x57b   : > { %5668 = vmatmul.mubr.msk.f32.vlgmr.msra.gmra.mxu0 %vm1757_vm12, %v6668_v38  ;;  %5676 = vmatprep.subr.msk.mxu0 %vm1475_vm8, %v3738_v34 }
 0x57c   : > { %5662 = vmatpush1.msk.msra.mxu1 %vm1475_vm8, %v3389_v35  ;;  %5677 = vmatpush1.msk.msra.mxu0 %vm1475_vm8, %v3737_v37  ;;  %v3718_v35 = vld [vmem:[#allocation10 + $0x9d8] sm:$0xff] }
 0x57d   : > { %3607 = vmatprep.subr.mxu1 %v3384_v39  ;;  %3954 = vmatprep.subr.mxu0 %v3732_v41  ;;  %v4065_v37 = vld [vmem:[#allocation10 + $0xb58] sm:$0xff]  ;;  %v3717_v39 = vld [vmem:[#allocation10 + $0x9d0] sm:$0xff] }
 0x57e   : > { %3493 = vmatprep.mubr.f32.mxu1 %v6086_v36  ;;  %3608 = vmatpush1.msra.mxu1 %v3383_v42 }
 0x57f   : > { %3840 = vmatprep.mubr.f32.mxu0 %v6086_v36  ;;  %3955 = vmatpush1.msra.mxu0 %v3731_v44  ;;  %v4064_v44 = vld [vmem:[#allocation10 + $0xb50] sm:$0xff] }
 0x580   : > { %5654 = vmatmul.mubr.msk.f32.gmra.mxu1 %vm1757_vm12, %v6646_v15  ;;  %3609 = vmatprep.subr.mxu1 %v3378_v40  ;;  %v3711_v40 = vld [vmem:[#allocation10 + $0x9a0] sm:$0xff] }
 0x581   : > { %5669 = vmatmul.mubr.msk.f32.gmra.mxu0 %vm1757_vm12, %v6681_v57  ;;  %3956 = vmatprep.subr.mxu0 %v3726_v50  ;;  %v4058_v50 = vld [vmem:[#allocation10 + $0xb20] sm:$0xff] }
 0x582   : > { %3610 = vmatpush1.msra.mxu1 %v3377_v51  ;;  %3957 = vmatpush1.msra.mxu0 %v3725_v56 }
 0x583   : > { %3611 = vmatprep.subr.mxu1 %v3372_v33  ;;  %3958 = vmatprep.subr.mxu0 %v3720_v0  ;;  %v3706_v33 = vld [vmem:[#allocation10 + $0x978] sm:$0xff] }
 0x584   : > { %3499 = vmatprep.mubr.f32.mxu1 %v6086_v36  ;;  %3612 = vmatpush1.msra.mxu1 %v3371_v59  ;;  %v4053_v0 = vld [vmem:[#allocation10 + $0xaf8] sm:$0xff]  ;;  %v3705_v59 = vld [vmem:[#allocation10 + $0x970] sm:$0xff] }
 0x585   : > { %3846 = vmatprep.mubr.f32.mxu0 %v6086_v36  ;;  %3959 = vmatpush1.msra.mxu0 %v3719_v60  ;;  %v4052_v60 = vld [vmem:[#allocation10 + $0xaf0] sm:$0xff] }
 0x586   : > { %5655 = vmatmul.mubr.msk.f32.gmra.mxu1 %vm1757_vm12, %v6656_v22  ;;  %3613 = vmatprep.subr.mxu1 %v3366_v4 }
 0x587   : > { %5670 = vmatmul.mubr.msk.f32.gmra.mxu0 %vm1757_vm12, %v6691_v13  ;;  %3960 = vmatprep.subr.mxu0 %v3714_v6  ;;  %v3700_v6 = vld [vmem:[#allocation10 + $0x948] sm:$0xff] }
 0x588   : > { %3614 = vmatpush1.msra.mxu1 %v3365_v7  ;;  %3961 = vmatpush1.msra.mxu0 %v3713_v1  ;;  %v4047_v7 = vld [vmem:[#allocation10 + $0xac8] sm:$0xff]  ;;  %v4046_v1 = vld [vmem:[#allocation10 + $0xac0] sm:$0xff] }
 0x589   : > { %3615 = vmatprep.subr.mxu1 %v3360_v9  ;;  %3962 = vmatprep.subr.mxu0 %v3708_v10  ;;  %v3694_v9 = vld [vmem:[#allocation10 + $0x918] sm:$0xff] }
 0x58a   : > { %3616 = vmatpush1.msra.mxu1 %v3359_v12  ;;  %3963 = vmatpush1.msra.mxu0 %v3707_v14  ;;  %v4041_v10 = vld [vmem:[#allocation10 + $0xa98] sm:$0xff]  ;;  %v3693_v12 = vld [vmem:[#allocation10 + $0x910] sm:$0xff] }
 0x58b   : > { %3617 = vmatprep.subr.mxu1 %v3354_v16  ;;  %3964 = vmatprep.subr.mxu0 %v3702_v2  ;;  %v6697_v25 = vpop.f32.mrf.mxu1  ;;  %v6699_v63 = vpop.f32.mrf.mxu0  ;;  %v4040_v2 = vld [vmem:[#allocation10 + $0xa90] sm:$0xff] }
 0x58c   : > { %3618 = vmatpush1.msra.mxu1 %v3353_v52  ;;  %3965 = vmatpush1.msra.mxu0 %v3701_v17  ;;  %v4087_v52 = vrot.slane %v6408_v8, 7 }
 0x58d   : > { %3619 = vmatprep.subr.mxu1 %v3348_v18  ;;  %3966 = vmatprep.subr.mxu0 %v3696_v58  ;;  %v6709_v29 = vpop.f32.mrf.mxu1  ;;  %v4081_v18 = vld [vmem:[#allocation10 + $0xbd8] sm:$0xf] }
 0x58e   : > { %3620 = vmatpush1.msra.mxu1 %v3347_v53  ;;  %3653 = vmatprep.mubr.f32.mxu1 %v6086_v36 }
 0x58f   : > { %3967 = vmatpush1.msra.mxu0 %v3695_v62  ;;  %4000 = vmatprep.mubr.f32.mxu0 %v6086_v36  ;;  %v4086_v62 = vrot.slane %v6405_v21, 7  ;;  %v4074_v21 = vld [vmem:[#allocation10 + $0xba0] sm:$0xff] }
 0x590   : > { %5663 = vmatmul.mubr.msk.f32.vlgmr.msra.gmra.mxu1 %vm1757_vm12, %v6633_v3  ;;  %5671 = vmatprep.subr.msk.mxu1 %vm1475_vm8, %v3736_v20  ;;  %v6711_v3 = vpop.f32.mrf.mxu0  ;;  %v4428_v20 = vld [vmem:[#allocation10 + $0xd58] sm:$0xf] }
 0x591   : > { %5678 = vmatmul.mubr.msk.f32.vlgmr.msra.gmra.mxu0 %vm1757_vm12, %v6668_v38  ;;  %5686 = vmatprep.subr.msk.mxu0 %vm1475_vm8, %v4083_v23 }
 0x592   : > { %5672 = vmatpush1.msk.msra.mxu1 %vm1475_vm8, %v3735_v48  ;;  %5687 = vmatpush1.msk.msra.mxu0 %vm1475_vm8, %v4082_v24  ;;  %v4080_v48 = vld [vmem:[#allocation10 + $0xbd0] sm:$0xf] }
 0x593   : > { %3871 = vmatprep.subr.mxu1 %v3730_v26  ;;  %4218 = vmatprep.subr.mxu0 %v4077_v54  ;;  %v4427_v24 = vld [vmem:[#allocation10 + $0xd50] sm:$0xf]  ;;  %v6753_v26 = vsel %vm1469_vm6, %v4086_v62, %v4087_v52  ;;  %v4075_v54 = vld [vmem:[#allocation10 + $0xba8] sm:$0xff]  ;;  %v4045_v62 = vld [vmem:[#allocation10 + $0xab8] sm:$0xff] }
 0x594   : > { %3659 = vmatprep.mubr.f32.mxu1 %v6086_v36  ;;  %3872 = vmatpush1.msra.mxu1 %v3729_v5  ;;  %v4422_v5 = vld [vmem:[#allocation10 + $0xd28] sm:$0xff] }
 0x595   : > { %4006 = vmatprep.mubr.f32.mxu0 %v6086_v36  ;;  %4219 = vmatpush1.msra.mxu0 %v4076_v27  ;;  %v6715_v11 = vpop.f32.mrf.mxu1  ;;  %v6717_v34 = vpop.f32.mrf.mxu0 }
 0x596   : > { %5664 = vmatmul.mubr.msk.f32.gmra.mxu1 %vm1757_vm12, %v6646_v15  ;;  %3873 = vmatprep.subr.mxu1 %v3724_v28  ;;  %v4059_v15 = vld [vmem:[#allocation10 + $0xb28] sm:$0xff] }
 0x597   : > { %5679 = vmatmul.mubr.msk.f32.gmra.mxu0 %vm1757_vm12, %v6681_v57  ;;  %4220 = vmatprep.subr.mxu0 %v4071_v30  ;;  %v6723_v41 = vpop.f32.mrf.mxu1  ;;  %v6725_v42 = vpop.f32.mrf.mxu0  ;;  %v4089_v30 = vrot.slane %v6430_v19, 7 }
 0x598   : > { %3874 = vmatpush1.msra.mxu1 %v3723_v31  ;;  %4221 = vmatpush1.msra.mxu0 %v4070_v32  ;;  %v4069_v32 = vld [vmem:[#allocation10 + $0xb78] sm:$0xff] }
 0x599   : > { %3875 = vmatprep.subr.mxu1 %v3718_v35  ;;  %4222 = vmatprep.subr.mxu0 %v4065_v37 }
 0x59a   : > { %3665 = vmatprep.mubr.f32.mxu1 %v6086_v36  ;;  %3876 = vmatpush1.msra.mxu1 %v3717_v39  ;;  %v4416_v39 = vld [vmem:[#allocation10 + $0xcf8] sm:$0xff] }
 0x59b   : > { %4012 = vmatprep.mubr.f32.mxu0 %v6086_v36  ;;  %4223 = vmatpush1.msra.mxu0 %v4064_v44  ;;  %v6729_v51 = vpop.f32.mrf.mxu1  ;;  %v6731_v56 = vpop.f32.mrf.mxu0 }
 0x59c   : > { %5665 = vmatmul.mubr.msk.f32.gmra.mxu1 %vm1757_vm12, %v6656_v22  ;;  %3877 = vmatprep.subr.mxu1 %v3712_v46  ;;  %v3699_v22 = vld [vmem:[#allocation10 + $0x940] sm:$0xff]  ;;  %v4068_v46 = vld [vmem:[#allocation10 + $0xb70] sm:$0xff] }
 0x59d   : > { %5680 = vmatmul.mubr.msk.f32.gmra.mxu0 %vm1757_vm12, %v6691_v13  ;;  %4224 = vmatprep.subr.mxu0 %v4059_v15  ;;  %v6737_v61 = vpop.f32.mrf.mxu1  ;;  %v6739_v4 = vpop.f32.mrf.mxu0  ;;  %v4415_v15 = vld [vmem:[#allocation10 + $0xcf0] sm:$0xff] }
 0x59e   : > { %3878 = vmatpush1.msra.mxu1 %v3711_v40  ;;  %4225 = vmatpush1.msra.mxu0 %v4058_v50  ;;  %v6770_v40 = vsel %vm1469_vm6, %v4087_v52, %v4089_v30  ;;  %v4063_v50 = vld [vmem:[#allocation10 + $0xb48] sm:$0xff] }
 0x59f   : > { %3879 = vmatprep.subr.mxu1 %v3706_v33  ;;  %4226 = vmatprep.subr.mxu0 %v4053_v0  ;;  %v4410_v33 = vld [vmem:[#allocation10 + $0xcc8] sm:$0xff]  ;;  %v4062_v0 = vld [vmem:[#allocation10 + $0xb40] sm:$0xff] }
 0x5a0   : > { %3880 = vmatpush1.msra.mxu1 %v3705_v59  ;;  %4227 = vmatpush1.msra.mxu0 %v4052_v60  ;;  %v4051_v52 = vld [vmem:[#allocation10 + $0xae8] sm:$0xff] }
 0x5a1   : > { %3881 = vmatprep.subr.mxu1 %v3700_v6  ;;  %4228 = vmatprep.subr.mxu0 %v4047_v7  ;;  %v1931_v14 = vpop.f32.mrf.mxu1  ;;  %v2204_v16 = vpop.f32.mrf.mxu0  ;;  %v4409_v6 = vld [vmem:[#allocation10 + $0xcc0] sm:$0xff]  ;;  %v4091_v7 = vrot.slane %v6583_v49, 7 }
 0x5a2   : > { %3882 = vmatpush1.msra.mxu1 %v3699_v22  ;;  %4229 = vmatpush1.msra.mxu0 %v4046_v1  ;;  %v6742_v17 = vadd.f32 %v2204_v16, %v1931_v14  ;;  %v4056_v14 = vld [vmem:[#allocation10 + $0xb10] sm:$0xff] }
 0x5a3   : > { %3883 = vmatprep.subr.mxu1 %v3694_v9  ;;  %4230 = vmatprep.subr.mxu0 %v4041_v10  ;;  %v1933_v58 = vpop.f32.mrf.mxu1  ;;  %v2206_v53 = vpop.f32.mrf.mxu0  ;;  %v4404_v10 = vld [vmem:[#allocation10 + $0xc98] sm:$0xff]  ;;  %v4403_v16 = vld [vmem:[#allocation10 + $0xc90] sm:$0xff] }
 0x5a4   : > { %3884 = vmatpush1.msra.mxu1 %v3693_v12  ;;  %3917 = vmatprep.mubr.f32.mxu1 %v6086_v36  ;;  %v6746_v23 = vadd.f32 %v2206_v53, %v1933_v58  ;;  %v4050_v58 = vld [vmem:[#allocation10 + $0xae0] sm:$0xff] }
 0x5a5   : > { %4231 = vmatpush1.msra.mxu0 %v4040_v2  ;;  %4264 = vmatprep.mubr.f32.mxu0 %v6086_v36  ;;  %v6784_v2 = vsel %vm1469_vm6, %v4089_v30, %v4091_v7  ;;  %v4397_v53 = vld [vmem:[#allocation10 + $0xc60] sm:$0xff] }
 0x5a6   : > { %5673 = vmatmul.mubr.msk.f32.vlgmr.msra.gmra.mxu1 %vm1757_vm12, %v6668_v38  ;;  %5681 = vmatprep.subr.msk.mxu1 %vm1475_vm8, %v4081_v18  ;;  %v4421_v38 = vld [vmem:[#allocation10 + $0xd20] sm:$0xff]  ;;  %v4398_v18 = vld [vmem:[#allocation10 + $0xc68] sm:$0xff] }
 0x5a7   : > { %5688 = vmatmul.mubr.msk.f32.vlgmr.msra.gmra.mxu0 %vm1757_vm12, %v6753_v26  ;;  %5696 = vmatprep.subr.msk.mxu0 %vm1475_vm8, %v4428_v20  ;;  %v1937_v27 = vpop.f32.mrf.mxu1  ;;  %v2210_v28 = vpop.f32.mrf.mxu0  ;;  %v4392_v20 = vld [vmem:[#allocation10 + $0xc38] sm:$0xff]  ;;  %v4425_v7 = vld [vmem:[#allocation10 + $0xd40] sm:$0xff] }
 0x5a8   : > { %5682 = vmatpush1.msk.msra.mxu1 %vm1475_vm8, %v4080_v48  ;;  %5697 = vmatpush1.msk.msra.mxu0 %vm1475_vm8, %v4427_v24  ;;  %v6761_v31 = vadd.f32 %v2210_v28, %v1937_v27  ;;  %v4044_v48 = vld [vmem:[#allocation10 + $0xab0] sm:$0xff]  ;;  %v4039_v24 = vld [vmem:[#allocation10 + $0xa88] sm:$0xff] }
 0x5a9   : > { %4135 = vmatprep.subr.mxu1 %v4075_v54  ;;  %4471 = vmatprep.subr.mxu0 %v4422_v5  ;;  %v1939_v35 = vpop.f32.mrf.mxu1  ;;  %v2212_v37 = vpop.f32.mrf.mxu0  ;;  %v4386_v54 = vld [vmem:[#allocation10 + $0xc08] sm:$0xff] }
 0x5aa   : > { %3923 = vmatprep.mubr.f32.mxu1 %v6086_v36  ;;  %4136 = vmatpush1.msra.mxu1 %v4074_v21  ;;  %v6764_v44 = vadd.f32 %v2212_v37, %v1939_v35  ;;  %v4038_v21 = vld [vmem:[#allocation10 + $0xa80] sm:$0xff] }
 0x5ab   : > { %4270 = vmatprep.mubr.f32.mxu0 %v6086_v36  ;;  %4472 = vmatpush1.msra.mxu0 %v4421_v38  ;;  %v4385_v38 = vld [vmem:[#allocation10 + $0xc00] sm:$0xff] }
 0x5ac   : > { %5674 = vmatmul.mubr.msk.f32.gmra.mxu1 %vm1757_vm12, %v6681_v57  ;;  %4137 = vmatprep.subr.mxu1 %v4069_v32  ;;  %v4057_v57 = vld [vmem:[#allocation10 + $0xb18] sm:$0xff] }
 0x5ad   : > { %5689 = vmatmul.mubr.msk.f32.gmra.mxu0 %vm1757_vm12, %v6770_v40  ;;  %4473 = vmatprep.subr.mxu0 %v4416_v39  ;;  %v1943_v59 = vpop.f32.mrf.mxu1  ;;  %v2216_v60 = vpop.f32.mrf.mxu0  ;;  %v4085_v32 = vld [vmem:[#allocation10 + $0xbf8] sm:$0xf] }
 0x5ae   : > { %4138 = vmatpush1.msra.mxu1 %v4068_v46  ;;  %4474 = vmatpush1.msra.mxu0 %v4415_v15  ;;  %v6775_v22 = vadd.f32 %v2216_v60, %v1943_v59  ;;  %v4432_v46 = vld [vmem:[#allocation10 + $0xd78] sm:$0xf]  ;;  %v4431_v15 = vld [vmem:[#allocation10 + $0xd70] sm:$0xf]  ;;  %v4078_v59 = vld [vmem:[#allocation10 + $0xbc0] sm:$0xff] }
 0x5af   : > { %4139 = vmatprep.subr.mxu1 %v4063_v50  ;;  %4475 = vmatprep.subr.mxu0 %v4410_v33  ;;  %v1945_v1 = vpop.f32.mrf.mxu1  ;;  %v2218_v9 = vpop.f32.mrf.mxu0  ;;  %v4079_v33 = vld [vmem:[#allocation10 + $0xbc8] sm:$0xff] }
 0x5b0   : > { %3929 = vmatprep.mubr.f32.mxu1 %v6086_v36  ;;  %4140 = vmatpush1.msra.mxu1 %v4062_v0  ;;  %v6778_v12 = vadd.f32 %v2218_v9, %v1945_v1  ;;  %v4426_v0 = vld [vmem:[#allocation10 + $0xd48] sm:$0xff]  ;;  %v4073_v1 = vld [vmem:[#allocation10 + $0xb98] sm:$0xff] }
 0x5b1   : > { %4276 = vmatprep.mubr.f32.mxu0 %v6086_v36  ;;  %4476 = vmatpush1.msra.mxu0 %v4409_v6 }
 0x5b2   : > { %5675 = vmatmul.mubr.msk.f32.gmra.mxu1 %vm1757_vm12, %v6691_v13  ;;  %4141 = vmatprep.subr.mxu1 %v4057_v57  ;;  %v4391_v13 = vld [vmem:[#allocation10 + $0xc30] sm:$0xff] }
 0x5b3   : > { %5690 = vmatmul.mubr.msk.f32.gmra.mxu0 %vm1757_vm12, %v6784_v2  ;;  %4477 = vmatprep.subr.mxu0 %v4404_v10 }
 0x5b4   : > { %4142 = vmatpush1.msra.mxu1 %v4056_v14  ;;  %4478 = vmatpush1.msra.mxu0 %v4403_v16  ;;  %v4420_v16 = vld [vmem:[#allocation10 + $0xd18] sm:$0xff] }
 0x5b5   : > { %4143 = vmatprep.subr.mxu1 %v4051_v52  ;;  %4479 = vmatprep.subr.mxu0 %v4398_v18  ;;  %v4419_v52 = vld [vmem:[#allocation10 + $0xd10] sm:$0xff] }
 0x5b6   : > { %4144 = vmatpush1.msra.mxu1 %v4050_v58  ;;  %4480 = vmatpush1.msra.mxu0 %v4397_v53  ;;  %v2121_v5 = vpop.f32.mrf.mxu1  ;;  %v4067_v58 = vld [vmem:[#allocation10 + $0xb68] sm:$0xff] }
 0x5b7   : > { %4145 = vmatprep.subr.mxu1 %v4045_v62  ;;  %4481 = vmatprep.subr.mxu0 %v4392_v20  ;;  %v2122_v27 = vadd.f32 %v2121_v5, %v6697_v25  ;;  %v2448_v28 = vpop.f32.mrf.mxu0  ;;  %v4084_v25 = vld [vmem:[#allocation10 + $0xbf0] sm:$0xf]  ;;  %v4414_v53 = vld [vmem:[#allocation10 + $0xce8] sm:$0xff] }
 0x5b8   : > { %4146 = vmatpush1.msra.mxu1 %v4044_v48  ;;  %4482 = vmatpush1.msra.mxu0 %v4391_v13  ;;  %v2123_v30 = vpop.f32.mrf.mxu1  ;;  %v4413_v13 = vld [vmem:[#allocation10 + $0xce0] sm:$0xff] }
 0x5b9   : > { %4147 = vmatprep.subr.mxu1 %v4039_v24  ;;  %4483 = vmatprep.subr.mxu0 %v4386_v54  ;;  %v6789_v35 = vadd.f32 %v2448_v28, %v2122_v27  ;;  %v2124_v37 = vadd.f32 %v2123_v30, %v6709_v29  ;;  %v2450_v39 = vpop.f32.mrf.mxu0  ;;  %v4061_v54 = vld [vmem:[#allocation10 + $0xb38] sm:$0xff] }
 0x5ba   : > { %4148 = vmatpush1.msra.mxu1 %v4038_v21  ;;  %4181 = vmatprep.mubr.f32.mxu1 %v6086_v36  ;;  %v4408_v27 = vld [vmem:[#allocation10 + $0xcb8] sm:$0xff] }
 0x5bb   : > { %4484 = vmatpush1.msra.mxu0 %v4385_v38  ;;  %4517 = vmatprep.mubr.f32.mxu0 %v6086_v36  ;;  %v6794_v50 = vadd.f32 %v2450_v39, %v2124_v37  ;;  %v4407_v38 = vld [vmem:[#allocation10 + $0xcb0] sm:$0xff]  ;;  %v4402_v37 = vld [vmem:[#allocation10 + $0xc88] sm:$0xff]  ;;  %v4401_v39 = vld [vmem:[#allocation10 + $0xc80] sm:$0xff] }
 0x5bc   : > { %5683 = vmatmul.mubr.msk.f32.vlgmr.msra.gmra.mxu1 %vm1757_vm12, %v6753_v26  ;;  %5691 = vmatprep.subr.msk.mxu1 %vm1475_vm8, %v4085_v32  ;;  %v2127_v29 = vpop.f32.mrf.mxu1  ;;  %v4055_v32 = vld [vmem:[#allocation10 + $0xb08] sm:$0xff] }
 0x5bd   : > { %5698 = vmatmul.mubr.msk.f32.vlgmr.msra.gmra.mxu0 %vm1757_vm12, %v6408_v8  ;;  %5706 = vmatprep.subr.msk.mxu0 %vm1475_vm8, %v4432_v46  ;;  %v2128_v60 = vadd.f32 %v2127_v29, %v6715_v11  ;;  %v2454_v6 = vpop.f32.mrf.mxu0  ;;  %v4072_v11 = vld [vmem:[#allocation10 + $0xb90] sm:$0xff]  ;;  %v4049_v46 = vld [vmem:[#allocation10 + $0xad8] sm:$0xff]  ;;  %v4390_v29 = vld [vmem:[#allocation10 + $0xc28] sm:$0xff] }
 0x5be   : > { %5692 = vmatpush1.msk.msra.mxu1 %vm1475_vm8, %v4084_v25  ;;  %5707 = vmatpush1.msk.msra.mxu0 %vm1475_vm8, %v4431_v15  ;;  %v2129_v57 = vpop.f32.mrf.mxu1  ;;  %v4396_v25 = vld [vmem:[#allocation10 + $0xc58] sm:$0xff]  ;;  %v4048_v15 = vld [vmem:[#allocation10 + $0xad0] sm:$0xff] }
 0x5bf   : > { %4301 = vmatprep.subr.mxu1 %v4079_v33  ;;  %4637 = vmatprep.subr.mxu0 %v4426_v0  ;;  %v6805_v9 = vadd.f32 %v2454_v6, %v2128_v60  ;;  %v2130_v10 = vadd.f32 %v2129_v57, %v6723_v41  ;;  %v2456_v14 = vpop.f32.mrf.mxu0  ;;  %v4066_v41 = vld [vmem:[#allocation10 + $0xb60] sm:$0xff]  ;;  %v4395_v33 = vld [vmem:[#allocation10 + $0xc50] sm:$0xff]  ;;  %v4043_v0 = vld [vmem:[#allocation10 + $0xaa8] sm:$0xff] }
 0x5c0   : > { %4187 = vmatprep.mubr.f32.mxu1 %v6086_v36  ;;  %4302 = vmatpush1.msra.mxu1 %v4078_v59  ;;  %v4042_v60 = vld [vmem:[#allocation10 + $0xaa0] sm:$0xff] }
 0x5c1   : > { %4523 = vmatprep.mubr.f32.mxu0 %v6086_v36  ;;  %4638 = vmatpush1.msra.mxu0 %v4425_v7  ;;  %v6810_v18 = vadd.f32 %v2456_v14, %v2130_v10  ;;  %v4389_v57 = vld [vmem:[#allocation10 + $0xc20] sm:$0xff]  ;;  %v4430_v10 = vld [vmem:[#allocation10 + $0xd68] sm:$0xf] }
 0x5c2   : > { %5684 = vmatmul.mubr.msk.f32.gmra.mxu1 %vm1757_vm12, %v6770_v40  ;;  %4303 = vmatprep.subr.mxu1 %v4073_v1  ;;  %v2133_v62 = vpop.f32.mrf.mxu1 }
 0x5c3   : > { %5699 = vmatmul.mubr.msk.f32.gmra.mxu0 %vm1757_vm12, %v6430_v19  ;;  %4639 = vmatprep.subr.mxu0 %v4420_v16  ;;  %v2134_v20 = vadd.f32 %v2133_v62, %v6729_v51  ;;  %v2460_v48 = vpop.f32.mrf.mxu0  ;;  %v4060_v51 = vld [vmem:[#allocation10 + $0xb30] sm:$0xff]  ;;  %v4424_v62 = vld [vmem:[#allocation10 + $0xd38] sm:$0xff] }
 0x5c4   : > { %4304 = vmatpush1.msra.mxu1 %v4072_v11  ;;  %4640 = vmatpush1.msra.mxu0 %v4419_v52  ;;  %v2135_v24 = vpop.f32.mrf.mxu1  ;;  %v4766_v52 = vld [vmem:[#allocation10 + $0xee8] sm:$0xf] }
 0x5c5   : > { %4305 = vmatprep.subr.mxu1 %v4067_v58  ;;  %4641 = vmatprep.subr.mxu0 %v4414_v53  ;;  %v6817_v5 = vadd.f32 %v2460_v48, %v2134_v20  ;;  %v2136_v21 = vadd.f32 %v2135_v24, %v6737_v61  ;;  %v2462_v28 = vpop.f32.mrf.mxu0  ;;  %v4054_v61 = vld [vmem:[#allocation10 + $0xb00] sm:$0xff]  ;;  %v4423_v20 = vld [vmem:[#allocation10 + $0xd30] sm:$0xff] }
 0x5c6   : > { %4193 = vmatprep.mubr.f32.mxu1 %v6086_v36  ;;  %4306 = vmatpush1.msra.mxu1 %v4066_v41  ;;  %v4765_v58 = vld [vmem:[#allocation10 + $0xee0] sm:$0xf]  ;;  %v4760_v41 = vld [vmem:[#allocation10 + $0xeb8] sm:$0xff]  ;;  %v4759_v24 = vld [vmem:[#allocation10 + $0xeb0] sm:$0xff] }
 0x5c7   : > { %4529 = vmatprep.mubr.f32.mxu0 %v6086_v36  ;;  %4642 = vmatpush1.msra.mxu0 %v4413_v13  ;;  %v6822_v30 = vadd.f32 %v2462_v28, %v2136_v21 }
 0x5c8   : > { %5685 = vmatmul.mubr.msk.f32.gmra.mxu1 %vm1757_vm12, %v6784_v2  ;;  %4307 = vmatprep.subr.mxu1 %v4061_v54  ;;  %v4418_v54 = vld [vmem:[#allocation10 + $0xd08] sm:$0xff] }
 0x5c9   : > { %5700 = vmatmul.mubr.msk.f32.gmra.mxu0 %vm1757_vm12, %v6583_v49  ;;  %4643 = vmatprep.subr.mxu0 %v4408_v27 }
 0x5ca   : > { %4308 = vmatpush1.msra.mxu1 %v4060_v51  ;;  %4644 = vmatpush1.msra.mxu0 %v4407_v38  ;;  %v4754_v51 = vld [vmem:[#allocation10 + $0xe88] sm:$0xff]  ;;  %v4753_v38 = vld [vmem:[#allocation10 + $0xe80] sm:$0xff] }
 0x5cb   : > { %4309 = vmatprep.subr.mxu1 %v4055_v32  ;;  %4645 = vmatprep.subr.mxu0 %v4402_v37  ;;  %v4412_v37 = vld [vmem:[#allocation10 + $0xcd8] sm:$0xff] }
 0x5cc   : > { %4310 = vmatpush1.msra.mxu1 %v4054_v61  ;;  %4646 = vmatpush1.msra.mxu0 %v4401_v39  ;;  %v2287_v59 = vpop.f32.mrf.mxu1  ;;  %v4748_v61 = vld [vmem:[#allocation10 + $0xe58] sm:$0xff] }
 0x5cd   : > { %4311 = vmatprep.subr.mxu1 %v4049_v46  ;;  %4647 = vmatprep.subr.mxu0 %v4396_v25  ;;  %v2288_v6 = vadd.f32 %v2287_v59, %v6699_v63  ;;  %v2614_v7 = vpop.f32.mrf.mxu0  ;;  %v4429_v63 = vld [vmem:[#allocation10 + $0xd60] sm:$0xf]  ;;  %v4742_v59 = vld [vmem:[#allocation10 + $0xe28] sm:$0xff] }
 0x5ce   : > { %4312 = vmatpush1.msra.mxu1 %v4048_v15  ;;  %4648 = vmatpush1.msra.mxu0 %v4395_v33  ;;  %v2289_v1 = vpop.f32.mrf.mxu1  ;;  %v4747_v15 = vld [vmem:[#allocation10 + $0xe50] sm:$0xff] }
 0x5cf   : > { %4313 = vmatprep.subr.mxu1 %v4043_v0  ;;  %4649 = vmatprep.subr.mxu0 %v4390_v29  ;;  %v6829_v14 = vadd.f32 %v2614_v7, %v2288_v6  ;;  %v2290_v16 = vadd.f32 %v2289_v1, %v6711_v3  ;;  %v2616_v11 = vpop.f32.mrf.mxu0  ;;  %v4406_v0 = vld [vmem:[#allocation10 + $0xca8] sm:$0xff]  ;;  %v4741_v6 = vld [vmem:[#allocation10 + $0xe20] sm:$0xff]  ;;  %v4736_v1 = vld [vmem:[#allocation10 + $0xdf8] sm:$0xff] }
 0x5d0   : > { %4314 = vmatpush1.msra.mxu1 %v4042_v60  ;;  %4347 = vmatprep.mubr.f32.mxu1 %v6086_v36 }
 0x5d1   : > { %4650 = vmatpush1.msra.mxu0 %v4389_v57  ;;  %4683 = vmatprep.mubr.f32.mxu0 %v6086_v36  ;;  %v6834_v53 = vadd.f32 %v2616_v11, %v2290_v16  ;;  %v4400_v57 = vld [vmem:[#allocation10 + $0xc78] sm:$0xff]  ;;  %v4394_v16 = vld [vmem:[#allocation10 + $0xc48] sm:$0xff] }
 0x5d2   : > { %5693 = vmatmul.mubr.msk.f32.vlgmr.msra.gmra.mxu1 %vm1757_vm12, %v6753_v26  ;;  %5701 = vmatprep.subr.msk.mxu1 %vm1475_vm8, %v4430_v10  ;;  %v2293_v3 = vpop.f32.mrf.mxu1  ;;  %v4735_v10 = vld [vmem:[#allocation10 + $0xdf0] sm:$0xff]  ;;  %v4730_v11 = vld [vmem:[#allocation10 + $0xdc8] sm:$0xff] }
 0x5d3   : > { %5708 = vmatmul.mubr.msk.f32.vlgmr.msra.gmra.mxu0 %vm1757_vm12, %v6408_v8  ;;  %5716 = vmatprep.subr.msk.mxu0 %vm1475_vm8, %v4766_v52  ;;  %v2294_v48 = vadd.f32 %v2293_v3, %v6717_v34  ;;  %v2620_v13 = vpop.f32.mrf.mxu0  ;;  %v4417_v34 = vld [vmem:[#allocation10 + $0xd00] sm:$0xff] }
 0x5d4   : > { %5702 = vmatpush1.msk.msra.mxu1 %vm1475_vm8, %v4429_v63  ;;  %5717 = vmatpush1.msk.msra.mxu0 %vm1475_vm8, %v4765_v58  ;;  %v2295_v26 = vpop.f32.mrf.mxu1  ;;  %v4393_v52 = vld [vmem:[#allocation10 + $0xc40] sm:$0xff]  ;;  %v4724_v58 = vld [vmem:[#allocation10 + $0xd98] sm:$0xff] }
 0x5d5   : > { %4554 = vmatprep.subr.mxu1 %v4424_v62  ;;  %4894 = vmatprep.subr.mxu0 %v4760_v41  ;;  %v6845_v21 = vadd.f32 %v2620_v13, %v2294_v48  ;;  %v2296_v27 = vadd.f32 %v2295_v26, %v6725_v42  ;;  %v2622_v28 = vpop.f32.mrf.mxu0  ;;  %v4411_v42 = vld [vmem:[#allocation10 + $0xcd0] sm:$0xff]  ;;  %v4729_v63 = vld [vmem:[#allocation10 + $0xdc0] sm:$0xff] }
 0x5d6   : > { %4353 = vmatprep.mubr.f32.mxu1 %v6086_v36  ;;  %4555 = vmatpush1.msra.mxu1 %v4423_v20  ;;  %v4387_v41 = vld [vmem:[#allocation10 + $0xc10] sm:$0xff] }
 0x5d7   : > { %4689 = vmatprep.mubr.f32.mxu0 %v6086_v36  ;;  %4895 = vmatpush1.msra.mxu0 %v4759_v24  ;;  %v6850_v32 = vadd.f32 %v2622_v28, %v2296_v27  ;;  %v4723_v48 = vld [vmem:[#allocation10 + $0xd90] sm:$0xff]  ;;  %v4764_v24 = vld [vmem:[#allocation10 + $0xed8] sm:$0xf] }
 0x5d8   : > { %5694 = vmatmul.mubr.msk.f32.gmra.mxu1 %vm1757_vm12, %v6770_v40  ;;  %4556 = vmatprep.subr.mxu1 %v4418_v54  ;;  %v2299_v39 = vpop.f32.mrf.mxu1  ;;  %v5104_v28 = vld [vmem:[#allocation10 + $0x1058] sm:$0xf] }
 0x5d9   : > { %5709 = vmatmul.mubr.msk.f32.gmra.mxu0 %vm1757_vm12, %v6430_v19  ;;  %4896 = vmatprep.subr.mxu0 %v4754_v51  ;;  %v2300_v46 = vadd.f32 %v2299_v39, %v6731_v56  ;;  %v2626_v25 = vpop.f32.mrf.mxu0  ;;  %v4405_v56 = vld [vmem:[#allocation10 + $0xca0] sm:$0xff]  ;;  %v5103_v51 = vld [vmem:[#allocation10 + $0x1050] sm:$0xf] }
 0x5da   : > { %4557 = vmatpush1.msra.mxu1 %v4417_v34  ;;  %4897 = vmatpush1.msra.mxu0 %v4753_v38  ;;  %v2301_v33 = vpop.f32.mrf.mxu1  ;;  %v4758_v38 = vld [vmem:[#allocation10 + $0xea8] sm:$0xff] }
 0x5db   : > { %4558 = vmatprep.subr.mxu1 %v4412_v37  ;;  %4898 = vmatprep.subr.mxu0 %v4748_v61  ;;  %v6857_v40 = vadd.f32 %v2626_v25, %v2300_v46  ;;  %v2302_v29 = vadd.f32 %v2301_v33, %v6739_v4  ;;  %v2628_v60 = vpop.f32.mrf.mxu0  ;;  %v4399_v4 = vld [vmem:[#allocation10 + $0xc70] sm:$0xff]  ;;  %v5098_v37 = vld [vmem:[#allocation10 + $0x1028] sm:$0xff]  ;;  %v4757_v61 = vld [vmem:[#allocation10 + $0xea0] sm:$0xff] }
 0x5dc   : > { %4359 = vmatprep.mubr.f32.mxu1 %v6086_v36  ;;  %4559 = vmatpush1.msra.mxu1 %v4411_v42  ;;  %v5097_v46 = vld [vmem:[#allocation10 + $0x1020] sm:$0xff] }
 0x5dd   : > { %4695 = vmatprep.mubr.f32.mxu0 %v6086_v36  ;;  %4899 = vmatpush1.msra.mxu0 %v4747_v15  ;;  %v6862_v7 = vadd.f32 %v2628_v60, %v2302_v29  ;;  %v4752_v15 = vld [vmem:[#allocation10 + $0xe78] sm:$0xff]  ;;  %v5091_v60 = vld [vmem:[#allocation10 + $0xff0] sm:$0xff] }
 0x5de   : > { %5695 = vmatmul.mubr.msk.f32.gmra.mxu1 %vm1757_vm12, %v6784_v2  ;;  %4560 = vmatprep.subr.mxu1 %v4406_v0  ;;  %v4388_v2 = vld [vmem:[#allocation10 + $0xc18] sm:$0xff] }
 0x5df   : > { %5710 = vmatmul.mubr.msk.f32.gmra.mxu0 %vm1757_vm12, %v6583_v49  ;;  %4900 = vmatprep.subr.mxu0 %v4742_v59  ;;  %v4751_v59 = vld [vmem:[#allocation10 + $0xe70] sm:$0xff] }
 0x5e0   : > { %4561 = vmatpush1.msra.mxu1 %v4405_v56  ;;  %4901 = vmatpush1.msra.mxu0 %v4741_v6  ;;  %v4746_v6 = vld [vmem:[#allocation10 + $0xe48] sm:$0xff] }
 0x5e1   : > { %4562 = vmatprep.subr.mxu1 %v4400_v57  ;;  %4902 = vmatprep.subr.mxu0 %v4736_v1  ;;  %v5086_v57 = vld [vmem:[#allocation10 + $0xfc8] sm:$0xff] }
 0x5e2   : > { %4563 = vmatpush1.msra.mxu1 %v4399_v4  ;;  %4903 = vmatpush1.msra.mxu0 %v4735_v10  ;;  %v2531_v62 = vpop.f32.mrf.mxu1  ;;  %v4745_v4 = vld [vmem:[#allocation10 + $0xe40] sm:$0xff] }
 0x5e3   : > { %4564 = vmatprep.subr.mxu1 %v4394_v16  ;;  %4904 = vmatprep.subr.mxu0 %v4730_v11  ;;  %v2633_v3 = vadd.f32 %v2531_v62, %v6742_v17  ;;  %v2876_v20 = vpop.f32.mrf.mxu0  ;;  %v4763_v17 = vld [vmem:[#allocation10 + $0xed0] sm:$0xf] }
 0x5e4   : > { %4565 = vmatpush1.msra.mxu1 %v4393_v52  ;;  %4905 = vmatpush1.msra.mxu0 %v4729_v63  ;;  %v2533_v13 = vpop.f32.mrf.mxu1  ;;  %v4740_v52 = vld [vmem:[#allocation10 + $0xe18] sm:$0xff]  ;;  %v5079_v62 = vld [vmem:[#allocation10 + $0xf90] sm:$0xff] }
 0x5e5   : > { %4566 = vmatprep.subr.mxu1 %v4388_v2  ;;  %4906 = vmatprep.subr.mxu0 %v4724_v58  ;;  %v6869_v26 = vadd.f32 %v2876_v20, %v2633_v3  ;;  %v2634_v54 = vadd.f32 %v2533_v13, %v6746_v23  ;;  %v2878_v27 = vpop.f32.mrf.mxu0  ;;  %v5080_v2 = vld [vmem:[#allocation10 + $0xf98] sm:$0xff]  ;;  %v4734_v3 = vld [vmem:[#allocation10 + $0xde8] sm:$0xff] }
 0x5e6   : > { %4567 = vmatpush1.msra.mxu1 %v4387_v41  ;;  %4600 = vmatprep.mubr.f32.mxu1 %v6086_v36  ;;  %v5074_v20 = vld [vmem:[#allocation10 + $0xf68] sm:$0xff]  ;;  %v4728_v13 = vld [vmem:[#allocation10 + $0xdb8] sm:$0xff] }
 0x5e7   : > { %4907 = vmatpush1.msra.mxu0 %v4723_v48  ;;  %4940 = vmatprep.mubr.f32.mxu0 %v6086_v36  ;;  %v6874_v34 = vadd.f32 %v2878_v27, %v2634_v54  ;;  %v5073_v48 = vld [vmem:[#allocation10 + $0xf60] sm:$0xff]  ;;  %v4727_v54 = vld [vmem:[#allocation10 + $0xdb0] sm:$0xff] }
 0x5e8   : > { %5703 = vmatmul.mubr.msk.f32.vlgmr.msra.gmra.mxu1 %vm1757_vm12, %v6408_v8  ;;  %5711 = vmatprep.subr.msk.mxu1 %vm1475_vm8, %v4764_v24  ;;  %v2537_v23 = vpop.f32.mrf.mxu1  ;;  %v6886_v8 = vrot.slane %v6583_v49, 1  ;;  %v5068_v24 = vld [vmem:[#allocation10 + $0xf38] sm:$0xff]  ;;  %v5067_v27 = vld [vmem:[#allocation10 + $0xf30] sm:$0xff] }
 0x5e9   : > { %5718 = vmatmul.mubr.msk.f32.vlgmr.msra.gmra.mxu0 %vm1757_vm12, %v6437_v45  ;;  %5726 = vmatprep.subr.msk.mxu0 %vm1475_vm8, %v5104_v28  ;;  %v2639_v39 = vadd.f32 %v2537_v23, %v6761_v31  ;;  %v2882_v42 = vpop.f32.mrf.mxu0  ;;  %v5092_v31 = vld [vmem:[#allocation10 + $0xff8] sm:$0xff]  ;;  %v4722_v28 = vld [vmem:[#allocation10 + $0xd88] sm:$0xff] }
 0x5ea   : > { %5712 = vmatpush1.msk.msra.mxu1 %vm1475_vm8, %v4763_v17  ;;  %5727 = vmatpush1.msk.msra.mxu0 %vm1475_vm8, %v5103_v51  ;;  %v2539_v25 = vpop.f32.mrf.mxu1  ;;  %v5062_v17 = vld [vmem:[#allocation10 + $0xf08] sm:$0xff] }
 0x5eb   : > { %4811 = vmatprep.subr.mxu1 %v4758_v38  ;;  %5151 = vmatprep.subr.mxu0 %v5098_v37  ;;  %v6888_v33 = vadd.f32 %v2882_v42, %v2639_v39  ;;  %v2640_v0 = vadd.f32 %v2539_v25, %v6764_v44  ;;  %v2884_v29 = vpop.f32.mrf.mxu0  ;;  %v6900_v44 = vsel %vm543_vm0, %v6433_v43, %v6886_v8  ;;  %v4721_v38 = vld [vmem:[#allocation10 + $0xd80] sm:$0xff]  ;;  %v4768_v42 = vld [vmem:[#allocation10 + $0xef8] sm:$0xf] }
 0x5ec   : > { %4606 = vmatprep.mubr.f32.mxu1 %v6086_v36  ;;  %4812 = vmatpush1.msra.mxu1 %v4757_v61  ;;  %v5061_v61 = vld [vmem:[#allocation10 + $0xf00] sm:$0xff] }
 0x5ed   : > { %4946 = vmatprep.mubr.f32.mxu0 %v6086_v36  ;;  %5152 = vmatpush1.msra.mxu0 %v5097_v46  ;;  %v6893_v56 = vadd.f32 %v2884_v29, %v2640_v0  ;;  %v5108_v0 = vld [vmem:[#allocation10 + $0x1078] sm:$0xf]  ;;  %v5107_v29 = vld [vmem:[#allocation10 + $0x1070] sm:$0xf] }
 0x5ee   : > { %5704 = vmatmul.mubr.msk.f32.gmra.mxu1 %vm1757_vm12, %v6430_v19  ;;  %4813 = vmatprep.subr.mxu1 %v4752_v15  ;;  %v2543_v1 = vpop.f32.mrf.mxu1  ;;  %v5085_v19 = vld [vmem:[#allocation10 + $0xfc0] sm:$0xff] }
 0x5ef   : > { %5719 = vmatmul.mubr.msk.f32.gmra.mxu0 %vm1757_vm12, %v6900_v44  ;;  %5153 = vmatprep.subr.mxu0 %v5092_v31  ;;  %v2645_v10 = vadd.f32 %v2543_v1, %v6775_v22  ;;  %v2888_v16 = vpop.f32.mrf.mxu0  ;;  %v4739_v22 = vld [vmem:[#allocation10 + $0xe10] sm:$0xff] }
 0x5f0   : > { %4814 = vmatpush1.msra.mxu1 %v4751_v59  ;;  %5154 = vmatpush1.msra.mxu0 %v5091_v60  ;;  %v2545_v11 = vpop.f32.mrf.mxu1  ;;  %v4762_v59 = vld [vmem:[#allocation10 + $0xec8] sm:$0xff] }
 0x5f1   : > { %4815 = vmatprep.subr.mxu1 %v4746_v6  ;;  %5155 = vmatprep.subr.mxu0 %v5086_v57  ;;  %v6905_v43 = vadd.f32 %v2888_v16, %v2645_v10  ;;  %v2646_v63 = vadd.f32 %v2545_v11, %v6778_v12  ;;  %v2890_v58 = vpop.f32.mrf.mxu0  ;;  %v4733_v12 = vld [vmem:[#allocation10 + $0xde0] sm:$0xff]  ;;  %v5102_v60 = vld [vmem:[#allocation10 + $0x1048] sm:$0xff]  ;;  %v6934_v10 = vrot.slane %v6583_v49, 2 }
 0x5f2   : > { %4612 = vmatprep.mubr.f32.mxu1 %v6086_v36  ;;  %4816 = vmatpush1.msra.mxu1 %v4745_v4  ;;  %v4761_v6 = vld [vmem:[#allocation10 + $0xec0] sm:$0xff] }
 0x5f3   : > { %4952 = vmatprep.mubr.f32.mxu0 %v6086_v36  ;;  %5156 = vmatpush1.msra.mxu0 %v5085_v19  ;;  %v6910_v41 = vadd.f32 %v2890_v58, %v2646_v63  ;;  %v5101_v4 = vld [vmem:[#allocation10 + $0x1040] sm:$0xff]  ;;  %v4756_v19 = vld [vmem:[#allocation10 + $0xe98] sm:$0xff]  ;;  %v5095_v58 = vld [vmem:[#allocation10 + $0x1010] sm:$0xff] }
 0x5f4   : > { %5705 = vmatmul.mubr.msk.f32.gmra.mxu1 %vm1757_vm12, %v6583_v49  ;;  %4817 = vmatprep.subr.mxu1 %v4740_v52 }
 0x5f5   : > { %5720 = vmatmul.mubr.msk.f32.gmra.mxu0 %vm1757_vm12, %v6886_v8  ;;  %5157 = vmatprep.subr.mxu0 %v5080_v2  ;;  %v4755_v2 = vld [vmem:[#allocation10 + $0xe90] sm:$0xff] }
 0x5f6   : > { %4818 = vmatpush1.msra.mxu1 %v4739_v22  ;;  %5158 = vmatpush1.msra.mxu0 %v5079_v62  ;;  %v4750_v22 = vld [vmem:[#allocation10 + $0xe68] sm:$0xff] }
 0x5f7   : > { %4819 = vmatprep.subr.mxu1 %v4734_v3  ;;  %5159 = vmatprep.subr.mxu0 %v5074_v20  ;;  %v5090_v62 = vld [vmem:[#allocation10 + $0xfe8] sm:$0xff]  ;;  %v4749_v20 = vld [vmem:[#allocation10 + $0xe60] sm:$0xff] }
 0x5f8   : > { %4820 = vmatpush1.msra.mxu1 %v4733_v12  ;;  %5160 = vmatpush1.msra.mxu0 %v5073_v48  ;;  %v2793_v51 = vpop.f32.mrf.mxu1 }
 0x5f9   : > { %4821 = vmatprep.subr.mxu1 %v4728_v13  ;;  %5161 = vmatprep.subr.mxu0 %v5068_v24  ;;  %v2976_v37 = vadd.f32 %v2793_v51, %v6789_v35  ;;  %v3141_v23 = vpop.f32.mrf.mxu0  ;;  %v4767_v35 = vld [vmem:[#allocation10 + $0xef0] sm:$0xf]  ;;  %v5089_v13 = vld [vmem:[#allocation10 + $0xfe0] sm:$0xff] }
 0x5fa   : > { %4822 = vmatpush1.msra.mxu1 %v4727_v54  ;;  %5162 = vmatpush1.msra.mxu0 %v5067_v27  ;;  %v2795_v39 = vpop.f32.mrf.mxu1  ;;  %v4744_v54 = vld [vmem:[#allocation10 + $0xe38] sm:$0xff]  ;;  %v5083_v51 = vld [vmem:[#allocation10 + $0xfb0] sm:$0xff] }
 0x5fb   : > { %4823 = vmatprep.subr.mxu1 %v4722_v28  ;;  %5163 = vmatprep.subr.mxu0 %v5062_v17  ;;  %v6917_v46 = vadd.f32 %v3141_v23, %v2976_v37  ;;  %v2977_v25 = vadd.f32 %v2795_v39, %v6794_v50  ;;  %v3143_v15 = vpop.f32.mrf.mxu0  ;;  %v5084_v28 = vld [vmem:[#allocation10 + $0xfb8] sm:$0xff]  ;;  %v4738_v37 = vld [vmem:[#allocation10 + $0xe08] sm:$0xff] }
 0x5fc   : > { %4824 = vmatpush1.msra.mxu1 %v4721_v38  ;;  %4857 = vmatprep.mubr.f32.mxu1 %v6086_v36  ;;  %v5078_v23 = vld [vmem:[#allocation10 + $0xf88] sm:$0xff]  ;;  %v4732_v39 = vld [vmem:[#allocation10 + $0xdd8] sm:$0xff] }
 0x5fd   : > { %5164 = vmatpush1.msra.mxu0 %v5061_v61  ;;  %5197 = vmatprep.mubr.f32.mxu0 %v6086_v36  ;;  %v6922_v31 = vadd.f32 %v3143_v15, %v2977_v25  ;;  %v5077_v61 = vld [vmem:[#allocation10 + $0xf80] sm:$0xff]  ;;  %v4731_v25 = vld [vmem:[#allocation10 + $0xdd0] sm:$0xff] }
 0x5fe   : > { %5713 = vmatmul.mubr.msk.f32.vlgmr.msra.gmra.mxu1 %vm1757_vm12, %v6437_v45  ;;  %5721 = vmatprep.subr.msk.mxu1 %vm1475_vm8, %v4768_v42  ;;  %v2799_v50 = vpop.f32.mrf.mxu1  ;;  %v5072_v42 = vld [vmem:[#allocation10 + $0xf58] sm:$0xff]  ;;  %v5071_v15 = vld [vmem:[#allocation10 + $0xf50] sm:$0xff] }
 0x5ff   : > { %5728 = vmatmul.mubr.msk.f32.vlgmr.msra.gmra.mxu0 %vm1757_vm12, %v6497_v55  ;;  %5736 = vmatprep.subr.msk.mxu0 %vm1475_vm8, %v5108_v0  ;;  %v2982_v57 = vadd.f32 %v2799_v50, %v6805_v9  ;;  %v3147_v1 = vpop.f32.mrf.mxu0  ;;  %v5096_v9 = vld [vmem:[#allocation10 + $0x1018] sm:$0xff]  ;;  %v4726_v0 = vld [vmem:[#allocation10 + $0xda8] sm:$0xff] }
 0x600   : > { %5722 = vmatpush1.msk.msra.mxu1 %vm1475_vm8, %v4767_v35  ;;  %5737 = vmatpush1.msk.msra.mxu0 %vm1475_vm8, %v5107_v29  ;;  %v2801_v16 = vpop.f32.mrf.mxu1  ;;  %v5066_v35 = vld [vmem:[#allocation10 + $0xf28] sm:$0xff] }
 0x601   : > { %4977 = vmatprep.subr.mxu1 %v4762_v59  ;;  %5317 = vmatprep.subr.mxu0 %v5102_v60  ;;  %v6936_v11 = vadd.f32 %v3147_v1, %v2982_v57  ;;  %v2983_v52 = vadd.f32 %v2801_v16, %v6810_v18  ;;  %v3149_v63 = vpop.f32.mrf.mxu0  ;;  %v6948_v18 = vsel %vm992_vm2, %v6489_v47, %v6934_v10  ;;  %v4725_v59 = vld [vmem:[#allocation10 + $0xda0] sm:$0xff]  ;;  %v5106_v1 = vld [vmem:[#allocation10 + $0x1068] sm:$0xf] }
 0x602   : > { %4863 = vmatprep.mubr.f32.mxu1 %v6086_v36  ;;  %4978 = vmatpush1.msra.mxu1 %v4761_v6  ;;  %v5065_v6 = vld [vmem:[#allocation10 + $0xf20] sm:$0xff] }
 0x603   : > { %5203 = vmatprep.mubr.f32.mxu0 %v6086_v36  ;;  %5318 = vmatpush1.msra.mxu0 %v5101_v4  ;;  %v6941_v49 = vadd.f32 %v3149_v63, %v2983_v52  ;;  %v5105_v52 = vld [vmem:[#allocation10 + $0x1060] sm:$0xf] }
 0x604   : > { %5714 = vmatmul.mubr.msk.f32.gmra.mxu1 %vm1757_vm12, %v6900_v44  ;;  %4979 = vmatprep.subr.mxu1 %v4756_v19  ;;  %v2805_v3 = vpop.f32.mrf.mxu1 }
 0x605   : > { %5729 = vmatmul.mubr.msk.f32.gmra.mxu0 %vm1757_vm12, %v6948_v18  ;;  %5319 = vmatprep.subr.mxu0 %v5096_v9  ;;  %v2988_v12 = vadd.f32 %v2805_v3, %v6817_v5  ;;  %v3153_v48 = vpop.f32.mrf.mxu0  ;;  %v4743_v5 = vld [vmem:[#allocation10 + $0xe30] sm:$0xff] }
 0x606   : > { %4980 = vmatpush1.msra.mxu1 %v4755_v2  ;;  %5320 = vmatpush1.msra.mxu0 %v5095_v58  ;;  %v2807_v24 = vpop.f32.mrf.mxu1  ;;  %v5099_v9 = vld [vmem:[#allocation10 + $0x1030] sm:$0xff] }
 0x607   : > { %4981 = vmatprep.subr.mxu1 %v4750_v22  ;;  %5321 = vmatprep.subr.mxu0 %v5090_v62  ;;  %v6953_v47 = vadd.f32 %v3153_v48, %v2988_v12  ;;  %v2989_v27 = vadd.f32 %v2807_v24, %v6822_v30  ;;  %v3155_v17 = vpop.f32.mrf.mxu0  ;;  %v4737_v30 = vld [vmem:[#allocation10 + $0xe00] sm:$0xff] }
 0x608   : > { %4869 = vmatprep.mubr.f32.mxu1 %v6086_v36  ;;  %4982 = vmatpush1.msra.mxu1 %v4749_v20  ;;  %v5093_v62 = vld [vmem:[#allocation10 + $0x1000] sm:$0xff] }
 0x609   : > { %5209 = vmatprep.mubr.f32.mxu0 %v6086_v36  ;;  %5322 = vmatpush1.msra.mxu0 %v5089_v13  ;;  %v6958_v38 = vadd.f32 %v3155_v17, %v2989_v27  ;;  %v5082_v13 = vld [vmem:[#allocation10 + $0xfa8] sm:$0xff]  ;;  %v5075_v17 = vld [vmem:[#allocation10 + $0xf70] sm:$0xff] }
 0x60a   : > { %5715 = vmatmul.mubr.msk.f32.gmra.mxu1 %vm1757_vm12, %v6886_v8  ;;  %4983 = vmatprep.subr.mxu1 %v4744_v54  ;;  %v5081_v54 = vld [vmem:[#allocation10 + $0xfa0] sm:$0xff] }
 0x60b   : > { %5730 = vmatmul.mubr.msk.f32.gmra.mxu0 %vm1757_vm12, %v6934_v10  ;;  %5323 = vmatprep.subr.mxu0 %v5084_v28 }
 0x60c   : > { %4984 = vmatpush1.msra.mxu1 %v4743_v5  ;;  %5324 = vmatpush1.msra.mxu0 %v5083_v51  ;;  %v5070_v51 = vld [vmem:[#allocation10 + $0xf48] sm:$0xff] }
 0x60d   : > { %4985 = vmatprep.subr.mxu1 %v4738_v37  ;;  %5325 = vmatprep.subr.mxu0 %v5078_v23 }
 0x60e   : > { %4986 = vmatpush1.msra.mxu1 %v4737_v30  ;;  %5326 = vmatpush1.msra.mxu0 %v5077_v61  ;;  %v2959_v29 = vpop.f32.mrf.mxu1  ;;  %v5069_v30 = vld [vmem:[#allocation10 + $0xf40] sm:$0xff]  ;;  %v5064_v61 = vld [vmem:[#allocation10 + $0xf18] sm:$0xff] }
 0x60f   : > { %4987 = vmatprep.subr.mxu1 %v4732_v39  ;;  %5327 = vmatprep.subr.mxu0 %v5072_v42  ;;  %v2980_v60 = vadd.f32 %v2959_v29, %v6829_v14  ;;  %v3307_v50 = vpop.f32.mrf.mxu0  ;;  %v5100_v14 = vld [vmem:[#allocation10 + $0x1038] sm:$0xff]  ;;  %v5063_v39 = vld [vmem:[#allocation10 + $0xf10] sm:$0xff] }
 0x610   : > { %4988 = vmatpush1.msra.mxu1 %v4731_v25  ;;  %5328 = vmatpush1.msra.mxu0 %v5071_v15  ;;  %v2961_v57 = vpop.f32.mrf.mxu1 }
 0x611   : > { %4989 = vmatprep.subr.mxu1 %v4726_v0  ;;  %5329 = vmatprep.subr.mxu0 %v5066_v35  ;;  %v6965_v4 = vadd.f32 %v3307_v50, %v2980_v60  ;;  %v2981_v16 = vadd.f32 %v2961_v57, %v6834_v53  ;;  %v3309_v19 = vpop.f32.mrf.mxu0  ;;  %v5094_v53 = vld [vmem:[#allocation10 + $0x1008] sm:$0xff] }
 0x612   : > { %4990 = vmatpush1.msra.mxu1 %v4725_v59  ;;  %5023 = vmatprep.mubr.f32.mxu1 %v6086_v36 }
 0x613   : > { %5330 = vmatpush1.msra.mxu0 %v5065_v6  ;;  %5363 = vmatprep.mubr.f32.mxu0 %v6086_v36  ;;  %v6970_v63 = vadd.f32 %v3309_v19, %v2981_v16 }
 0x614   : > { %5723 = vmatmul.mubr.msk.f32.vlgmr.msra.gmra.mxu1 %vm1757_vm12, %v6437_v45  ;;  %5731 = vmatprep.subr.msk.mxu1 %vm1475_vm8, %v5106_v1  ;;  %v2965_v2 = vpop.f32.mrf.mxu1  ;;  %v5088_v45 = vld [vmem:[#allocation10 + $0xfd8] sm:$0xff] }
 0x615   : > { %5738 = vmatmul.mubr.msk.f32.vlgmr.msra.gmra.mxu0 %vm1757_vm12, %v6497_v55  ;;  %5732 = vmatpush1.msk.msra.mxu1 %vm1475_vm8, %v5105_v52  ;;  %v2986_v58 = vadd.f32 %v2965_v2, %v6845_v21  ;;  %v3313_v22 = vpop.f32.mrf.mxu0  ;;  %v5087_v21 = vld [vmem:[#allocation10 + $0xfd0] sm:$0xff] }
 0x616   : > { %5234 = vmatprep.subr.mxu1 %v5100_v14  ;;  %5029 = vmatprep.mubr.f32.mxu1 %v6086_v36  ;;  %v2967_v3 = vpop.f32.mrf.mxu1 }
 0x617   : > { %5235 = vmatpush1.msra.mxu1 %v5099_v9  ;;  %5369 = vmatprep.mubr.f32.mxu0 %v6086_v36  ;;  %v6981_v20 = vadd.f32 %v3313_v22, %v2986_v58  ;;  %v2987_v12 = vadd.f32 %v2967_v3, %v6850_v32  ;;  %v3315_v48 = vpop.f32.mrf.mxu0  ;;  %v5076_v32 = vld [vmem:[#allocation10 + $0xf78] sm:$0xff] }
 0x618   : > { %5724 = vmatmul.mubr.msk.f32.gmra.mxu1 %vm1757_vm12, %v6900_v44  ;;  %5236 = vmatprep.subr.mxu1 %v5094_v53 }
 0x619   : > { %5739 = vmatmul.mubr.msk.f32.gmra.mxu0 %vm1757_vm12, %v6948_v18  ;;  %5237 = vmatpush1.msra.mxu1 %v5093_v62  ;;  %v6988_v24 = vadd.f32 %v3315_v48, %v2987_v12 }
 0x61a   : > { %5238 = vmatprep.subr.mxu1 %v5088_v45  ;;  %5035 = vmatprep.mubr.f32.mxu1 %v6086_v36  ;;  %v2971_v27 = vpop.f32.mrf.mxu1 }
 0x61b   : > { %5239 = vmatpush1.msra.mxu1 %v5087_v21  ;;  %5375 = vmatprep.mubr.f32.mxu0 %v6086_v36  ;;  %v2992_v44 = vadd.f32 %v2971_v27, %v6857_v40  ;;  %v3319_v28 = vpop.f32.mrf.mxu0 }
 0x61c   : > { %5725 = vmatmul.mubr.msk.f32.gmra.mxu1 %vm1757_vm12, %v6886_v8  ;;  %5240 = vmatprep.subr.mxu1 %v5082_v13  ;;  %v2973_v5 = vpop.f32.mrf.mxu1 }
 0x61d   : > { %5740 = vmatmul.mubr.msk.f32.gmra.mxu0 %vm1757_vm12, %v6934_v10  ;;  %5241 = vmatpush1.msra.mxu1 %v5081_v54  ;;  %v6997_v37 = vadd.f32 %v3319_v28, %v2992_v44  ;;  %v2993_v23 = vadd.f32 %v2973_v5, %v6862_v7  ;;  %v3321_v40 = vpop.f32.mrf.mxu0 }
 0x61e   : > { %5242 = vmatprep.subr.mxu1 %v5076_v32  ;;  %5280 = vmatprep.mubr.f32.mxu1 %v6086_v36 }
 0x61f   : > { %5243 = vmatpush1.msra.mxu1 %v5075_v17  ;;  %v7001_v8 = vadd.f32 %v3321_v40, %v2993_v23 }
 0x620   : > { %5244 = vmatprep.subr.mxu1 %v5070_v51 }
 0x621   : > { %5245 = vmatpush1.msra.mxu1 %v5069_v30 }
 0x622   : > { %5246 = vmatprep.subr.mxu1 %v5064_v61 }
 0x623   : > { %5247 = vmatpush1.msra.mxu1 %v5063_v39 }
 0x624   : > { %5733 = vmatmul.mubr.msk.f32.vlgmr.msra.gmra.mxu1 %vm1757_vm12, %v6497_v55  ;;  %v3224_v42 = vpop.f32.mrf.mxu1 }
 0x625   : > { %5286 = vmatprep.mubr.f32.mxu1 %v6086_v36  ;;  %v3326_v7 = vadd.f32 %v3224_v42, %v6869_v26  ;;  %v3572_v25 = vpop.f32.mrf.mxu0 }
 0x626   : > { %v3226_v15 = vpop.f32.mrf.mxu1 }
 0x627   : > { %v7007_v0 = vadd.f32 %v3572_v25, %v3326_v7  ;;  %v3327_v35 = vadd.f32 %v3226_v15, %v6874_v34  ;;  %v3574_v29 = vpop.f32.mrf.mxu0 }
 0x628   : > { %5734 = vmatmul.mubr.msk.f32.gmra.mxu1 %vm1757_vm12, %v6948_v18 }
 0x629   : > { %5292 = vmatprep.mubr.f32.mxu1 %v6086_v36  ;;  %v7013_v59 = vadd.f32 %v3574_v29, %v3327_v35 }
 0x62a   : > { %v3230_v55 = vpop.f32.mrf.mxu1 }
 0x62b   : > { %v3332_v60 = vadd.f32 %v3230_v55, %v6888_v33  ;;  %v3578_v50 = vpop.f32.mrf.mxu0 }
 0x62c   : > { %5735 = vmatmul.mubr.msk.f32.gmra.mxu1 %vm1757_vm12, %v6934_v10  ;;  %v3232_v26 = vpop.f32.mrf.mxu1 }
 0x62d   : > { %v7018_v6 = vadd.f32 %v3578_v50, %v3332_v60  ;;  %v3333_v34 = vadd.f32 %v3232_v26, %v6893_v56  ;;  %v3580_v57 = vpop.f32.mrf.mxu0 }
 0x62f   : > { %v7021_v1 = vadd.f32 %v3580_v57, %v3333_v34 }
 0x630   : > { %v3236_v18 = vpop.f32.mrf.mxu1 }
 0x631   : > { %v3338_v36 = vadd.f32 %v3236_v18, %v6905_v43  ;;  %v3584_v16 = vpop.f32.mrf.mxu0 }
 0x632   : > { %v3238_v19 = vpop.f32.mrf.mxu1 }
 0x633   : > { %v7024_v52 = vadd.f32 %v3584_v16, %v3338_v36  ;;  %v3339_v33 = vadd.f32 %v3238_v19, %v6910_v41  ;;  %v3586_v14 = vpop.f32.mrf.mxu0 }
 0x635   : > { %v7027_v9 = vadd.f32 %v3586_v14, %v3339_v33 }
 0x63a   : > { %v3489_v10 = vpop.f32.mrf.mxu1 }
 0x63b   : > { %v3672_v2 = vadd.f32 %v3489_v10, %v6917_v46  ;;  %v3836_v53 = vpop.f32.mrf.mxu0 }
 0x63c   : > { %v3491_v56 = vpop.f32.mrf.mxu1 }
 0x63d   : > { %v7030_v58 = vadd.f32 %v3836_v53, %v3672_v2  ;;  %v3673_v22 = vadd.f32 %v3491_v56, %v6922_v31  ;;  %v3838_v62 = vpop.f32.mrf.mxu0 }
 0x63f   : > { %v7033_v43 = vadd.f32 %v3838_v62, %v3673_v22 }
 0x640   : > { %v3495_v3 = vpop.f32.mrf.mxu1 }
 0x641   : > { %v3678_v45 = vadd.f32 %v3495_v3, %v6936_v11  ;;  %v3842_v12 = vpop.f32.mrf.mxu0 }
 0x642   : > { %v3497_v41 = vpop.f32.mrf.mxu1 }
 0x643   : > { %v7036_v48 = vadd.f32 %v3842_v12, %v3678_v45  ;;  %v3679_v21 = vadd.f32 %v3497_v41, %v6941_v49  ;;  %v3844_v13 = vpop.f32.mrf.mxu0 }
 0x645   : > { %v7039_v46 = vadd.f32 %v3844_v13, %v3679_v21 }
 0x646   : > { %v3501_v54 = vpop.f32.mrf.mxu1 }
 0x647   : > { %v3684_v27 = vadd.f32 %v3501_v54, %v6953_v47  ;;  %v3848_v32 = vpop.f32.mrf.mxu0 }
 0x648   : > { %v3503_v31 = vpop.f32.mrf.mxu1 }
 0x649   : > { %v7042_v44 = vadd.f32 %v3848_v32, %v3684_v27  ;;  %v3685_v28 = vadd.f32 %v3503_v31, %v6958_v38  ;;  %v3850_v17 = vpop.f32.mrf.mxu0 }
 0x64b   : > { %v7045_v11 = vadd.f32 %v3850_v17, %v3685_v28 }
 0x650   : > { %v3655_v5 = vpop.f32.mrf.mxu1 }
 0x651   : > { %v3676_v51 = vadd.f32 %v3655_v5, %v6965_v4  ;;  %v4002_v23 = vpop.f32.mrf.mxu0 }
 0x652   : > { %v3657_v49 = vpop.f32.mrf.mxu1 }
 0x653   : > { %v7048_v30 = vadd.f32 %v4002_v23, %v3676_v51  ;;  %v3677_v40 = vadd.f32 %v3657_v49, %v6970_v63  ;;  %v4004_v61 = vpop.f32.mrf.mxu0 }
 0x655   : > { %v7051_v47 = vadd.f32 %v4004_v61, %v3677_v40 }
 0x656   : > { %v3661_v39 = vpop.f32.mrf.mxu1 }
 0x657   : > { %v3682_v42 = vadd.f32 %v3661_v39, %v6981_v20  ;;  %v4008_v7 = vpop.f32.mrf.mxu0 }
 0x658   : > { %v3663_v38 = vpop.f32.mrf.mxu1 }
 0x659   : > { %v7054_v25 = vadd.f32 %v4008_v7, %v3682_v42  ;;  %v3683_v15 = vadd.f32 %v3663_v38, %v6988_v24  ;;  %v4010_v35 = vpop.f32.mrf.mxu0 }
 0x65b   : > { %v7057_v4 = vadd.f32 %v4010_v35, %v3683_v15 }
 0x65c   : > { %v3667_v29 = vpop.f32.mrf.mxu1 }
 0x65d   : > { %v3688_v55 = vadd.f32 %v3667_v29, %v6997_v37  ;;  %v4014_v60 = vpop.f32.mrf.mxu0 }
 0x65e   : > { %v3669_v63 = vpop.f32.mrf.mxu1 }
 0x65f   : > { %v7060_v50 = vadd.f32 %v4014_v60, %v3688_v55  ;;  %v3689_v26 = vadd.f32 %v3669_v63, %v7001_v8  ;;  %v4016_v34 = vpop.f32.mrf.mxu0 }
 0x661   : > { %v7063_v20 = vadd.f32 %v4016_v34, %v3689_v26 }
 0x666   : > { %v3919_v57 = vpop.f32.mrf.mxu1 }
 0x667   : > { %v4021_v18 = vadd.f32 %v3919_v57, %v7007_v0  ;;  %v4266_v36 = vpop.f32.mrf.mxu0 }
 0x668   : > { %v3921_v24 = vpop.f32.mrf.mxu1 }
 0x669   : > { %v7066_v16 = vadd.f32 %v4266_v36, %v4021_v18  ;;  %v4022_v19 = vadd.f32 %v3921_v24, %v7013_v59  ;;  %v4268_v33 = vpop.f32.mrf.mxu0 }
 0x66b   : > { %v7069_v37 = vadd.f32 %v4268_v33, %v4022_v19 }
 0x66c   : > { %v3925_v14 = vpop.f32.mrf.mxu1 }
 0x66d   : > { %v4027_v10 = vadd.f32 %v3925_v14, %v7018_v6  ;;  %v4272_v2 = vpop.f32.mrf.mxu0 }
 0x66e   : > { %v3927_v8 = vpop.f32.mrf.mxu1 }
 0x66f   : > { %v7072_v53 = vadd.f32 %v4272_v2, %v4027_v10  ;;  %v4028_v56 = vadd.f32 %v3927_v8, %v7021_v1  ;;  %v4274_v22 = vpop.f32.mrf.mxu0 }
 0x671   : > { %v7075_v0 = vadd.f32 %v4274_v22, %v4028_v56 }
 0x672   : > { %v3931_v62 = vpop.f32.mrf.mxu1 }
 0x673   : > { %v4033_v3 = vadd.f32 %v3931_v62, %v7024_v52  ;;  %v4278_v45 = vpop.f32.mrf.mxu0 }
 0x674   : > { %v3933_v59 = vpop.f32.mrf.mxu1 }
 0x675   : > { %v7078_v12 = vadd.f32 %v4278_v45, %v4033_v3  ;;  %v4034_v41 = vadd.f32 %v3933_v59, %v7027_v9  ;;  %v4280_v21 = vpop.f32.mrf.mxu0 }
 0x677   : > { %v7081_v6 = vadd.f32 %v4280_v21, %v4034_v41 }
 0x67c   : > { %v4183_v13 = vpop.f32.mrf.mxu1 }
 0x67d   : > { %v4519_v54 = vpop.f32.mrf.mxu0  ;;  %v4366_v33 = vadd.f32 %v4183_v13, %v7030_v58 }
 0x67e   : > { %v4185_v27 = vpop.f32.mrf.mxu1 }
 0x67f   : > { %v4521_v32 = vpop.f32.mrf.mxu0  ;;  %v4367_v10 = vadd.f32 %v4185_v27, %v7033_v43  ;;  %v4702_v8 = vadd.f32 %v4519_v54, %v4366_v33 }
 0x681   : > { %v4703_v62 = vadd.f32 %v4521_v32, %v4367_v10 }
 0x682   : > { %v4189_v1 = vpop.f32.mrf.mxu1 }
 0x683   : > { %v4525_v31 = vpop.f32.mrf.mxu0  ;;  %v4372_v3 = vadd.f32 %v4189_v1, %v7036_v48 }
 0x684   : > { %v4191_v28 = vpop.f32.mrf.mxu1 }
 0x685   : > { %v4527_v17 = vpop.f32.mrf.mxu0  ;;  %v4373_v43 = vadd.f32 %v4191_v28, %v7039_v46  ;;  %v4708_v54 = vadd.f32 %v4525_v31, %v4372_v3 }
 0x687   : > { %v4709_v32 = vadd.f32 %v4527_v17, %v4373_v43 }
 0x688   : > { %v4195_v5 = vpop.f32.mrf.mxu1 }
 0x689   : > { %v4531_v51 = vpop.f32.mrf.mxu0  ;;  %v4378_v1 = vadd.f32 %v4195_v5, %v7042_v44 }
 0x68a   : > { %v4197_v52 = vpop.f32.mrf.mxu1 }
 0x68b   : > { %v4533_v23 = vpop.f32.mrf.mxu0 }
 0x692   : > { %v7083_v49 = vpop.f32.mrf.mxu1 }
 0x693   : > { %v7085_v40 = vpop.f32.mrf.mxu0 }
 0x694   : > { %v7087_v9 = vpop.f32.mrf.mxu1 }
 0x695   : > { %v7089_v61 = vpop.f32.mrf.mxu0 }
 0x698   : > { %v7091_v39 = vpop.f32.mrf.mxu1 }
 0x699   : > { %v7093_v42 = vpop.f32.mrf.mxu0 }
 0x69a   : > { %v7095_v7 = vpop.f32.mrf.mxu1 }
 0x69b   : > { %v7097_v38 = vpop.f32.mrf.mxu0 }
 0x69e   : > { %v7099_v15 = vpop.f32.mrf.mxu1 }
 0x69f   : > { %v7101_v35 = vpop.f32.mrf.mxu0 }
 0x6a0   : > { %v7103_v29 = vpop.f32.mrf.mxu1 }
 0x6a1   : > { %v7105_v55 = vpop.f32.mrf.mxu0 }
 0x6a8   : > { %v7107_v60 = vpop.f32.mrf.mxu1 }
 0x6a9   : > { %v7109_v63 = vpop.f32.mrf.mxu0 }
 0x6aa   : > { %v7111_v26 = vpop.f32.mrf.mxu1 }
 0x6ab   : > { %v7113_v34 = vpop.f32.mrf.mxu0 }
 0x6ae   : > { %v7115_v57 = vpop.f32.mrf.mxu1 }
 0x6af   : > { %v7117_v18 = vpop.f32.mrf.mxu0 }
 0x6b0   : > { %v7119_v36 = vpop.f32.mrf.mxu1 }
 0x6b1   : > { %v7121_v24 = vpop.f32.mrf.mxu0 }
 0x6b4   : > { %v7123_v19 = vpop.f32.mrf.mxu1 }
 0x6b5   : > { %v7126_v14 = vpop.f32.mrf.mxu0 }
 0x6b6   : > { %v7130_v2 = vpop.f32.mrf.mxu1 }
 0x6b7   : > { %v7132_v56 = vpop.f32.mrf.mxu0 }
 0x6b8   : > { %7213 = vst [vmem:[#allocation16_spill] sm:$0xff] %v7132_v56 }
 0x6be   : > { %v4859_v22 = vpop.f32.mrf.mxu1 }
 0x6bf   : > { %v5042_v45 = vadd.f32 %v4859_v22, %v4702_v8  ;;  %v5199_v59 = vpop.f32.mrf.mxu0  ;;  %v4379_v22 = vadd.f32 %v4197_v52, %v7045_v11  ;;  %v4370_v11 = vadd.f32 %v7083_v49, %v7048_v30 }
 0x6c0   : > { %v4861_v58 = vpop.f32.mrf.mxu1 }
 0x6c1   : > { %v5382_v41 = vadd.f32 %v5199_v59, %v5042_v45  ;;  %v5043_v21 = vadd.f32 %v4861_v58, %v4703_v62  ;;  %v5201_v13 = vpop.f32.mrf.mxu0  ;;  %v4714_v62 = vadd.f32 %v4531_v51, %v4378_v1  ;;  %v4715_v45 = vadd.f32 %v4533_v23, %v4379_v22 }
 0x6c2   : > { %v4371_v51 = vadd.f32 %v7087_v9, %v7051_v47  ;;  %v4376_v23 = vadd.f32 %v7091_v39, %v7054_v25  ;;  %v4382_v47 = vadd.f32 %v7099_v15, %v7060_v50 }
 0x6c3   : > { %5400 = vst [vmem:[%s7138_s16] sm:$0xff] %v5382_v41  ;;  %v5383_v27 = vadd.f32 %v5201_v13, %v5043_v21  ;;  %v4377_v13 = vadd.f32 %v7095_v7, %v7057_v4 }
 0x6c4   : > { %v4865_v48 = vpop.f32.mrf.mxu1  ;;  %v4707_v21 = vadd.f32 %v7089_v61, %v4371_v51  ;;  %v4383_v61 = vadd.f32 %v7103_v29, %v7063_v20 }
 0x6c5   : > { %5401 = vst [vmem:[%s7138_s16 + $0x8] sm:$0xff] %v5383_v27  ;;  %v5048_v33 = vadd.f32 %v4865_v48, %v4708_v54  ;;  %v5205_v10 = vpop.f32.mrf.mxu0  ;;  %v4712_v27 = vadd.f32 %v7093_v42, %v4376_v23  ;;  %v4713_v39 = vadd.f32 %v7097_v38, %v4377_v13  ;;  %v4718_v42 = vadd.f32 %v7101_v35, %v4382_v47 }
 0x6c6   : > { %v4867_v8 = vpop.f32.mrf.mxu1  ;;  %v4719_v38 = vadd.f32 %v7105_v55, %v4383_v61 }
 0x6c7   : > { %v5388_v56 = vadd.f32 %v5205_v10, %v5048_v33  ;;  %v5049_v46 = vadd.f32 %v4867_v8, %v4709_v32  ;;  %v5207_v28 = vpop.f32.mrf.mxu0 }
 0x6c9   : > { %5406 = vst [vmem:[%s7138_s16 + $0x30] sm:$0xff] %v5388_v56  ;;  %v5389_v31 = vadd.f32 %v5207_v28, %v5049_v46  ;;  %v4706_v56 = vadd.f32 %v7085_v40, %v4370_v11  ;;  %v4704_v46 = vadd.f32 %v7107_v60, %v7066_v16 }
 0x6ca   : > { %v4871_v3 = vpop.f32.mrf.mxu1 }
 0x6cb   : > { %5407 = vst [vmem:[%s7138_s16 + $0x38] sm:$0xff] %v5389_v31  ;;  %v5054_v17 = vadd.f32 %v4871_v3, %v4714_v62  ;;  %v5211_v59 = vpop.f32.mrf.mxu0  ;;  %v4705_v31 = vadd.f32 %v7111_v26, %v7069_v37  ;;  %v5044_v3 = vadd.f32 %v7109_v63, %v4704_v46  ;;  %v4716_v26 = vadd.f32 %v7123_v19, %v7078_v12 }
 0x6cc   : > { %v4873_v44 = vpop.f32.mrf.mxu1 }
 0x6cd   : > { %v5394_v5 = vadd.f32 %v5211_v59, %v5054_v17  ;;  %v5055_v58 = vadd.f32 %v4873_v44, %v4715_v45  ;;  %v5213_v43 = vpop.f32.mrf.mxu0  ;;  %v4710_v45 = vadd.f32 %v7115_v57, %v7072_v53  ;;  %v5045_v60 = vadd.f32 %v7113_v34, %v4705_v31 }
 0x6ce   : > { %v4711_v17 = vadd.f32 %v7119_v36, %v7075_v0  ;;  %v4717_v34 = vadd.f32 %v7130_v2, %v7081_v6 }
 0x6cf   : > { %5412 = vst [vmem:[%s7138_s16 + $0x60] sm:$0x1f] %v5394_v5  ;;  %v5395_v52 = vadd.f32 %v5213_v43, %v5055_v58  ;;  %v5050_v37 = vadd.f32 %v7117_v18, %v4710_v45  ;;  %v5056_v5 = vadd.f32 %v7126_v14, %v4716_v26  ;;  %v7214_v43 = vld [vmem:[#allocation16_spill] sm:$0xff] }
 0x6d0   : > { %v5051_v57 = vadd.f32 %v7121_v24, %v4711_v17  ;;  %v5057_v12 = vadd.f32 %v7214_v43, %v4717_v34 }
 0x6d1   : > { %5413 = vst [vmem:[%s7138_s16 + $0x68] sm:$0x1f] %v5395_v52 }
 0x6d4   : > { %v5025_v41 = vpop.f32.mrf.mxu1 }
 0x6d5   : > { %v5046_v54 = vadd.f32 %v5025_v41, %v4706_v56  ;;  %v5365_v30 = vpop.f32.mrf.mxu0 }
 0x6d6   : > { %v5027_v49 = vpop.f32.mrf.mxu1 }
 0x6d7   : > { %v5386_v40 = vadd.f32 %v5365_v30, %v5046_v54  ;;  %v5047_v9 = vadd.f32 %v5027_v49, %v4707_v21  ;;  %v5367_v48 = vpop.f32.mrf.mxu0 }
 0x6d8   : > { %v5031_v25 = vpop.f32.mrf.mxu1 }
 0x6d9   : > { %5404 = vst [vmem:[%s7138_s16 + $0x20] sm:$0xff] %v5386_v40  ;;  %v5387_v4 = vadd.f32 %v5367_v48, %v5047_v9  ;;  %v5052_v7 = vadd.f32 %v5031_v25, %v4712_v27  ;;  %v5371_v32 = vpop.f32.mrf.mxu0 }
 0x6da   : > { %v5033_v1 = vpop.f32.mrf.mxu1 }
 0x6db   : > { %5405 = vst.msk [vmem:[%s7138_s16 + $0x28] sm:$0xff] %vm1633_vm9, %v5387_v4  ;;  %v5392_v50 = vadd.f32 %v5371_v32, %v5052_v7  ;;  %v5053_v15 = vadd.f32 %v5033_v1, %v4713_v39  ;;  %v5373_v33 = vpop.f32.mrf.mxu0 }
 0x6dc   : > { %v5037_v10 = vpop.f32.mrf.mxu1 }
 0x6dd   : > { %5410 = vst [vmem:[%s7138_s16 + $0x50] sm:$0xff] %v5392_v50  ;;  %v5393_v20 = vadd.f32 %v5373_v33, %v5053_v15  ;;  %v5058_v29 = vadd.f32 %v5037_v10, %v4718_v42  ;;  %v5377_v8 = vpop.f32.mrf.mxu0 }
 0x6de   : > { %v5039_v22 = vpop.f32.mrf.mxu1 }
 0x6df   : > { %5411 = vst.msk [vmem:[%s7138_s16 + $0x58] sm:$0xff] %vm1633_vm9, %v5393_v20  ;;  %v5398_v35 = vadd.f32 %v5377_v8, %v5058_v29  ;;  %v5059_v28 = vadd.f32 %v5039_v22, %v4719_v38  ;;  %v5379_v62 = vpop.f32.mrf.mxu0 }
 0x6e1   : > { %5416 = vst [vmem:[%s7138_s16 + $0x80] sm:$0x1f] %v5398_v35  ;;  %v5399_v55 = vadd.f32 %v5379_v62, %v5059_v28 }
 0x6e3   : > { %5418 = vst.msk [vmem:[%s7138_s16 + $0x88] sm:$0x1f] %vm5417_vm14, %v5399_v55 }
 0x6e4   : > { %v5282_v16 = vpop.f32.mrf.mxu1 }
 0x6e5   : > { %v5384_v59 = vadd.f32 %v5282_v16, %v5044_v3 }
 0x6e6   : > { %v5284_v44 = vpop.f32.mrf.mxu1 }
 0x6e7   : > { %5402 = vst [vmem:[%s7138_s16 + $0x10] sm:$0xff] %v5384_v59  ;;  %v5385_v63 = vadd.f32 %v5284_v44, %v5045_v60 }
 0x6e8   : > { %v5288_v53 = vpop.f32.mrf.mxu1 }
 0x6e9   : > { %5403 = vst [vmem:[%s7138_s16 + $0x18] sm:$0xff] %v5385_v63  ;;  %v5390_v0 = vadd.f32 %v5288_v53, %v5050_v37 }
 0x6ea   : > { %v5290_v36 = vpop.f32.mrf.mxu1 }
 0x6eb   : > { %5408 = vst [vmem:[%s7138_s16 + $0x40] sm:$0xff] %v5390_v0  ;;  %v5391_v18 = vadd.f32 %v5290_v36, %v5051_v57 }
 0x6ec   : > { %v5294_v58 = vpop.f32.mrf.mxu1 }
 0x6ed   : > { %5409 = vst [vmem:[%s7138_s16 + $0x48] sm:$0xff] %v5391_v18  ;;  %v5396_v19 = vadd.f32 %v5294_v58, %v5056_v5 }
 0x6ee   : > { %v5296_v11 = vpop.f32.mrf.mxu1 }
 0x6ef   : > { %5414 = vst [vmem:[%s7138_s16 + $0x70] sm:$0x1f] %v5396_v19  ;;  %v5397_v52 = vadd.f32 %v5296_v11, %v5057_v12 }
 0x6f1   : > { %5415 = vst [vmem:[%s7138_s16 + $0x78] sm:$0x1f] %v5397_v52 }
 0x6f2 PF: > { %s21_s24 = sadd.s32 1, %s6072_s24  }
 0x6f3   : > { %p18_p3 = scmp.ge.s32.totalorder %s21_s24, 4  }
 0x6f5   :  { %20 = sbr.rel (!%p18_p3) target bundleno = 4 (0x4), region = 113 }
 0x6fa   :  { %5440 = vsyncpa [#allocation3], 1 }
 0x6fb   :  { %5442 = vsyncpa [#allocation3 + $0x1], 1 }
 0x6fc   :  { %5443 = vsyncpa [#allocation5], 1 }
 0x6fd   :  { %5444 = vsyncpa [#allocation8], 1 }
 0x6fe   :  { %5445 = vsyncpa [#allocation11], 1 }

</bundles_post_ra>
